<compile_context>
chip_gen: v7x
topology: tpu7x:2x2x1
jax: 0.10.0
libtpu: 0.0.40
codegen_flags: <defaults>
</compile_context>

<pallas_src>
import jax
import jax.numpy as jnp
from jax.experimental import pallas as pl
from jax.experimental.pallas import tpu as pltpu


# ----------------------------------------------------------------------------
# Fused Pallas kernel (factory closes over static sizes)
# ----------------------------------------------------------------------------
def _make_fused_kernel(num_layers, seq_len, batch, hp):
    """Kernel refs (all VMEM, full blocks, no grid):
         x_flat (T*B, D_pad),
         wih0_t (D_pad, 4*HP), whh0_t (HP, 4*HP), b0 (1, 4*HP),
         [wfused_l (2*HP, 4*HP), b_l (1, 4*HP)]  for layers 1..L-1,
         h0 (L, B, HP), c0 (L, B, HP), wout_t (HP, O_pad), bout (1, O_pad),
         pred (B, O_pad)                [output]
         gall_scr (T*B, 4*HP)           [VMEM scratch]
    """
    T, B, HP = seq_len, batch, hp
    GW = 4 * HP

    def cell(gates, c_prev):
        # Gate layout (reordered in the wrapper): [ i | f | o | g ], each HP lanes.
        ifo = jax.nn.sigmoid(gates[:, :3 * HP])   # one wide sigmoid (i, f, o)
        g_g = jnp.tanh(gates[:, 3 * HP:])          # one tanh (g)
        i_g = ifo[:, 0 * HP:1 * HP]
        f_g = ifo[:, 1 * HP:2 * HP]
        o_g = ifo[:, 2 * HP:3 * HP]
        c_new = f_g * c_prev + i_g * g_g
        h_new = o_g * jnp.tanh(c_new)
        return h_new, c_new

    def kernel(*refs):
        x_ref = refs[0]
        wih0_ref, whh0_ref, b0_ref = refs[1:4]
        idx = 4
        deep = []
        for _ in range(1, num_layers):
            deep.append((refs[idx], refs[idx + 1]))
            idx += 2
        h0_ref, c0_ref, wout_ref, bout_ref, pred_ref, gall_scr = refs[idx:idx + 6]

        # Hoisted layer-0 input projection for the WHOLE sequence (one MXU call,
        # bias folded).  Parked in VMEM scratch so it does not bloat vreg live
        # ranges across the unrolled recurrence.
        gall_scr[...] = (jnp.dot(x_ref[...], wih0_ref[...],
                                 preferred_element_type=jnp.float32)
                         + b0_ref[...])

        # Hoist resident weight reads / bias broadcasts out of the loop.
        whh0 = whh0_ref[...]
        w_deep = [wr[...] for (wr, _) in deep]
        b_deep = [jnp.broadcast_to(br[...], (B, GW)) for (_, br) in deep]

        h = [h0_ref[l] for l in range(num_layers)]
        c = [c0_ref[l] for l in range(num_layers)]

        # Layer/time wavefront: at wave step w, layer l processes time t = w - l.
        # Layers are handled deepest-first so every cell in a wave reads the
        # previous wave's h of the layer below -> cells within a wave are
        # mutually independent (T + L - 1 dependent steps instead of L * T).
        for w in range(T + num_layers - 1):
            for l in reversed(range(num_layers)):
                t = w - l
                if t < 0 or t >= T:
                    continue
                if l == 0:
                    gates = gall_scr[t * B:(t + 1) * B, :] + jnp.dot(
                        h[0], whh0, preferred_element_type=jnp.float32)
                else:
                    # Fused input+recurrent projection: one matmul per step.
                    inp = jnp.concatenate([h[l - 1], h[l]], axis=-1)   # (B, 2*HP)
                    gates = jnp.dot(inp, w_deep[l - 1],
                                    preferred_element_type=jnp.float32) + b_deep[l - 1]
                h[l], c[l] = cell(gates, c[l])

        # Fused Linear head on the final top-layer hidden state (lane-dense store).
        pred_ref[...] = (jnp.dot(h[num_layers - 1], wout_ref[...],
                                 preferred_element_type=jnp.float32)
                         + bout_ref[...]).astype(pred_ref.dtype)

    return kernel


def _full_spec(shape):
    """Whole-array VMEM block (no grid)."""
    return pl.BlockSpec(shape, lambda *_: (0,) * len(shape))


def _round_up(n, m):
    return max(m, -(-n // m) * m)


# ----------------------------------------------------------------------------
# Model wrapper (layout plumbing only: transpose / pad / pack in plain JAX)
# ----------------------------------------------------------------------------
def lstm_model_forward(input_seq, params, h0_all, c0_all):
    """input_seq: (B, T, input_size) batch_first; returns (B, output_size)."""
    B, T, D = input_seq.shape
    H = h0_all.shape[-1]
    O = params["w_out"].shape[0]
    L = len(params["lstm"])

    B_pad = _round_up(B, 8)       # full sublane group
    HP = _round_up(H, 128)        # lane-align hidden dim
    D_pad = _round_up(D, 128)     # lane-align input features
    O_pad = _round_up(O, 128)     # lane-dense output store
    GW = 4 * HP

    def pack_gate_w(w, k_pad):
        # w: (4H, k) PyTorch layout, gate rows [i, f, g, o].
        # -> (k_pad, 4*HP) transposed, gate blocks reordered to [i, f, o, g].
        # Padded rows/columns stay EXACTLY zero (required for lane-padding safety).
        wi, wf, wg, wo = jnp.split(w, 4, axis=0)
        out = jnp.zeros((k_pad, GW), jnp.float32)
        for k, blk in enumerate((wi, wf, wo, wg)):
            out = out.at[:blk.shape[1], k * HP:k * HP + H].set(blk.T)
        return out

    def pack_gate_b(b_ih, b_hh):
        b = b_ih + b_hh
        bi, bf, bg, bo = jnp.split(b, 4)
        out = jnp.zeros((1, GW), jnp.float32)
        for k, blk in enumerate((bi, bf, bo, bg)):
            out = out.at[0, k * HP:k * HP + H].set(blk)
        return out

    # batch_first -> time-major, pad batch rows and feature lanes, flatten time.
    x_tm = jnp.transpose(input_seq, (1, 0, 2))                     # (T, B, D)
    x_tm = jnp.pad(x_tm, ((0, 0), (0, B_pad - B), (0, D_pad - D)))
    x_flat = x_tm.reshape(T * B_pad, D_pad)

    # Padded h0/c0 lanes must be zero (keeps padded lanes of c/h exactly zero).
    h0 = jnp.pad(h0_all, ((0, 0), (0, B_pad - B), (0, HP - H)))    # (L, B_pad, HP)
    c0 = jnp.pad(c0_all, ((0, 0), (0, B_pad - B), (0, HP - H)))

    # Layer 0: separate Wih (hoisted) / Whh (per-step) + folded bias.
    w_ih0, w_hh0, b_ih0, b_hh0 = params["lstm"][0]
    wih0_t = pack_gate_w(w_ih0, D_pad)
    whh0_t = pack_gate_w(w_hh0, HP)
    b0 = pack_gate_b(b_ih0, b_hh0)

    # Layers >= 1: fused [Wih^T ; Whh^T] for the single per-step matmul.
    # TODO(synk): at realistic H (>= a few hundred) cast these to bf16 on v6e/v7x.
    deep_weights = []
    for (w_ih, w_hh, b_ih, b_hh) in params["lstm"][1:]:
        wfused = jnp.concatenate([pack_gate_w(w_ih, HP), pack_gate_w(w_hh, HP)],
                                 axis=0)                           # (2*HP, 4*HP)
        deep_weights.append((wfused, pack_gate_b(b_ih, b_hh)))

    wout_t = jnp.zeros((HP, O_pad), jnp.float32).at[:H, :O].set(params["w_out"].T)
    bout = jnp.zeros((1, O_pad), jnp.float32).at[0, :O].set(params["b_out"])

    args = [x_flat, wih0_t, whh0_t, b0]
    for (wf_, bf_) in deep_weights:
        args += [wf_, bf_]
    args += [h0, c0, wout_t, bout]
    in_specs = [_full_spec(a.shape) for a in args]

    kernel = _make_fused_kernel(L, T, B_pad, HP)
    pred_pad = pl.pallas_call(
        kernel,
        out_shape=jax.ShapeDtypeStruct((B_pad, O_pad), jnp.float32),
        in_specs=in_specs,
        out_specs=_full_spec((B_pad, O_pad)),
        scratch_shapes=[pltpu.VMEM((T * B_pad, GW), jnp.float32)],
    )(*args)

    return pred_pad[:B, :O]


# ----------------------------------------------------------------------------
# Pure-JAX reference (correctness check)
# ----------------------------------------------------------------------------
def lstm_model_reference(input_seq, params, h0_all, c0_all):
    x = input_seq  # (B, T, D)
    for layer, (w_ih, w_hh, b_ih, b_hh) in enumerate(params["lstm"]):
        def step(carry, x_t):
            h, c = carry
            gates = x_t @ w_ih.T + b_ih + h @ w_hh.T + b_hh
            i, f, g, o = jnp.split(gates, 4, axis=-1)
            i = jax.nn.sigmoid(i)
            f = jax.nn.sigmoid(f)
            g = jnp.tanh(g)
            o = jax.nn.sigmoid(o)
            c = f * c + i * g
            h = o * jnp.tanh(c)
            return (h, c), h

        _, hs = jax.lax.scan(step, (h0_all[layer], c0_all[layer]),
                             jnp.transpose(x, (1, 0, 2)))
        x = jnp.transpose(hs, (1, 0, 2))
    return x[:, -1, :] @ params["w_out"].T + params["b_out"]


# ----------------------------------------------------------------------------
# Parameter construction (mirrors nn.LSTM / nn.Linear shapes)
# ----------------------------------------------------------------------------
def init_params(key, input_size, hidden_size, num_layers, output_size):
    params = {"lstm": []}
    scale = 1.0 / jnp.sqrt(hidden_size)
    for layer in range(num_layers):
        d_in = input_size if layer == 0 else hidden_size
        key, k1, k2, k3, k4 = jax.random.split(key, 5)
        w_ih = jax.random.uniform(k1, (4 * hidden_size, d_in),
                                  jnp.float32, -scale, scale)
        w_hh = jax.random.uniform(k2, (4 * hidden_size, hidden_size),
                                  jnp.float32, -scale, scale)
        b_ih = jax.random.uniform(k3, (4 * hidden_size,),
                                  jnp.float32, -scale, scale)
        b_hh = jax.random.uniform(k4, (4 * hidden_size,),
                                  jnp.float32, -scale, scale)
        params["lstm"].append((w_ih, w_hh, b_ih, b_hh))
    key, k5, k6 = jax.random.split(key, 3)
    params["w_out"] = jax.random.uniform(k5, (output_size, hidden_size),
                                         jnp.float32, -scale, scale)
    params["b_out"] = jax.random.uniform(k6, (output_size,),
                                         jnp.float32, -scale, scale)
    return params, key


# ----------------------------------------------------------------------------
# Main
# ----------------------------------------------------------------------------
if __name__ == "__main__":
    input_size = 4
    hidden_size = 32
    num_layers = 2
    output_size = 3
    batch_size = 2
    seq_len = 8

    root = jax.random.PRNGKey(0)
    params, root = init_params(root, input_size, hidden_size,
                               num_layers, output_size)

    k_x, k_h, k_c = jax.random.split(root, 3)
    x = jax.random.normal(k_x, (batch_size, seq_len, input_size), jnp.float32)
    # TODO(synk): the PyTorch forward draws fresh torch.randn h_0/c_0 every call;
    # here they are deterministic draws from a fixed PRNG key.
    h0_all = jax.random.normal(k_h, (num_layers, batch_size, hidden_size),
                               jnp.float32)
    c0_all = jax.random.normal(k_c, (num_layers, batch_size, hidden_size),
                               jnp.float32)

    pred = lstm_model_forward(x, params, h0_all, c0_all)
    pred = jax.block_until_ready(pred)

    ref = lstm_model_reference(x, params, h0_all, c0_all)
    ref = jax.block_until_ready(ref)

    assert pred.shape == (batch_size, output_size), pred.shape
    assert jnp.allclose(pred, ref, atol=1e-5, rtol=1e-5), (
        f"mismatch: max abs err {jnp.max(jnp.abs(pred - ref))}")

    print("KERNEL_OK")
</pallas_src>

<mosaic_0001>
module attributes {stable_mosaic.version = 11 : i64} {
  func.func @kernel(%arg0: memref<64x128xf32, #tpu.memory_space<vmem>>, %arg1: memref<128x512xf32, #tpu.memory_space<vmem>>, %arg2: memref<128x512xf32, #tpu.memory_space<vmem>>, %arg3: memref<1x512xf32, #tpu.memory_space<vmem>>, %arg4: memref<256x512xf32, #tpu.memory_space<vmem>>, %arg5: memref<1x512xf32, #tpu.memory_space<vmem>>, %arg6: memref<2x8x128xf32, #tpu.memory_space<vmem>>, %arg7: memref<2x8x128xf32, #tpu.memory_space<vmem>>, %arg8: memref<128x128xf32, #tpu.memory_space<vmem>>, %arg9: memref<1x128xf32, #tpu.memory_space<vmem>>, %arg10: memref<8x128xf32, #tpu.memory_space<vmem>>, %arg11: memref<64x512xf32, #tpu.memory_space<vmem>>) attributes {dimension_semantics = [], scalar_prefetch = 0 : i64, scratch_operands = 1 : i64, tpu.core_type = #tpu.core_type<tc>} {
    %c0 = arith.constant 0 : index
    %c0_0 = arith.constant 0 : index
    %0 = vector.load %arg0[%c0, %c0_0] : memref<64x128xf32, #tpu.memory_space<vmem>>, vector<64x128xf32>
    %c0_1 = arith.constant 0 : index
    %c0_2 = arith.constant 0 : index
    %1 = vector.load %arg1[%c0_1, %c0_2] : memref<128x512xf32, #tpu.memory_space<vmem>>, vector<128x512xf32>
    %cst = arith.constant dense<0.000000e+00> : vector<64x512xf32>
    %2 = tpu.matmul %0, %1, %cst {dimension_numbers = #tpu.dot_dimension_numbers<[1], [0], [0], [1], [0, 0, 1, 1], [], []>} : vector<64x128xf32>, vector<128x512xf32>, vector<64x512xf32> -> vector<64x512xf32>
    %c0_3 = arith.constant 0 : index
    %c0_4 = arith.constant 0 : index
    %3 = vector.load %arg3[%c0_3, %c0_4] : memref<1x512xf32, #tpu.memory_space<vmem>>, vector<1x512xf32>
    %4 = vector.broadcast %3 : vector<1x512xf32> to vector<64x512xf32>
    %5 = arith.addf %2, %4 : vector<64x512xf32>
    %c0_5 = arith.constant 0 : index
    %c0_6 = arith.constant 0 : index
    %6 = vector.load %arg11[%c0_5, %c0_6] : memref<64x512xf32, #tpu.memory_space<vmem>>, vector<64x512xf32>
    tpu.vector_store %arg11[%c0_5, %c0_6], %5 {strides = array<i32>} : memref<64x512xf32, #tpu.memory_space<vmem>>, vector<64x512xf32>,
    %c0_7 = arith.constant 0 : index
    %c0_8 = arith.constant 0 : index
    %7 = vector.load %arg2[%c0_7, %c0_8] : memref<128x512xf32, #tpu.memory_space<vmem>>, vector<128x512xf32>
    %c0_9 = arith.constant 0 : index
    %c0_10 = arith.constant 0 : index
    %8 = vector.load %arg4[%c0_9, %c0_10] : memref<256x512xf32, #tpu.memory_space<vmem>>, vector<256x512xf32>
    %c0_11 = arith.constant 0 : index
    %c0_12 = arith.constant 0 : index
    %9 = vector.load %arg5[%c0_11, %c0_12] : memref<1x512xf32, #tpu.memory_space<vmem>>, vector<1x512xf32>
    %10 = vector.shape_cast %9 : vector<1x512xf32> to vector<1x512xf32>
    %11 = vector.broadcast %10 : vector<1x512xf32> to vector<8x512xf32>
    %c0_13 = arith.constant 0 : index
    %c0_14 = arith.constant 0 : index
    %c0_15 = arith.constant 0 : index
    %12 = vector.load %arg6[%c0_13, %c0_14, %c0_15] : memref<2x8x128xf32, #tpu.memory_space<vmem>>, vector<1x8x128xf32>
    %13 = vector.shape_cast %12 : vector<1x8x128xf32> to vector<8x128xf32>
    %c1 = arith.constant 1 : index
    %c0_16 = arith.constant 0 : index
    %c0_17 = arith.constant 0 : index
    %14 = vector.load %arg6[%c1, %c0_16, %c0_17] : memref<2x8x128xf32, #tpu.memory_space<vmem>>, vector<1x8x128xf32>
    %15 = vector.shape_cast %14 : vector<1x8x128xf32> to vector<8x128xf32>
    %c0_18 = arith.constant 0 : index
    %c0_19 = arith.constant 0 : index
    %c0_20 = arith.constant 0 : index
    %16 = vector.load %arg7[%c0_18, %c0_19, %c0_20] : memref<2x8x128xf32, #tpu.memory_space<vmem>>, vector<1x8x128xf32>
    %17 = vector.shape_cast %16 : vector<1x8x128xf32> to vector<8x128xf32>
    %c1_21 = arith.constant 1 : index
    %c0_22 = arith.constant 0 : index
    %c0_23 = arith.constant 0 : index
    %18 = vector.load %arg7[%c1_21, %c0_22, %c0_23] : memref<2x8x128xf32, #tpu.memory_space<vmem>>, vector<1x8x128xf32>
    %19 = vector.shape_cast %18 : vector<1x8x128xf32> to vector<8x128xf32>
    %c0_24 = arith.constant 0 : index
    %c0_25 = arith.constant 0 : index
    %20 = vector.load %arg11[%c0_24, %c0_25] : memref<64x512xf32, #tpu.memory_space<vmem>>, vector<8x512xf32>
    %cst_26 = arith.constant dense<0.000000e+00> : vector<8x512xf32>
    %21 = tpu.matmul %13, %7, %cst_26 {dimension_numbers = #tpu.dot_dimension_numbers<[1], [0], [0], [1], [0, 0, 1, 1], [], []>} : vector<8x128xf32>, vector<128x512xf32>, vector<8x512xf32> -> vector<8x512xf32>
    %22 = arith.addf %20, %21 : vector<8x512xf32>
    %23 = vector.extract_strided_slice %22 {offsets = [0, 0], sizes = [8, 384], strides = [1, 1]} : vector<8x512xf32> to vector<8x384xf32>
    %24 = arith.negf %23 : vector<8x384xf32>
    %25 = math.exp %24 : vector<8x384xf32>
    %cst_27 = arith.constant 1.000000e+00 : f32
    %26 = vector.broadcast %cst_27 : f32 to vector<8x384xf32>
    %27 = arith.addf %26, %25 : vector<8x384xf32>
    %28 = arith.divf %26, %27 : vector<8x384xf32>
    %29 = vector.extract_strided_slice %22 {offsets = [0, 384], sizes = [8, 128], strides = [1, 1]} : vector<8x512xf32> to vector<8x128xf32>
    %30 = math.tanh %29 : vector<8x128xf32>
    %31 = vector.extract_strided_slice %28 {offsets = [0, 0], sizes = [8, 128], strides = [1, 1]} : vector<8x384xf32> to vector<8x128xf32>
    %32 = vector.extract_strided_slice %28 {offsets = [0, 128], sizes = [8, 128], strides = [1, 1]} : vector<8x384xf32> to vector<8x128xf32>
    %33 = vector.extract_strided_slice %28 {offsets = [0, 256], sizes = [8, 128], strides = [1, 1]} : vector<8x384xf32> to vector<8x128xf32>
    %34 = arith.mulf %32, %17 : vector<8x128xf32>
    %35 = arith.mulf %31, %30 : vector<8x128xf32>
    %36 = arith.addf %34, %35 : vector<8x128xf32>
    %37 = math.tanh %36 : vector<8x128xf32>
    %38 = arith.mulf %33, %37 : vector<8x128xf32>
    %39 = tpu.concatenate %38, %15 in 1 : vector<8x128xf32>, vector<8x128xf32> -> vector<8x256xf32>
    %cst_28 = arith.constant dense<0.000000e+00> : vector<8x512xf32>
    %40 = tpu.matmul %39, %8, %cst_28 {dimension_numbers = #tpu.dot_dimension_numbers<[1], [0], [0], [1], [0, 0, 1, 1], [], []>} : vector<8x256xf32>, vector<256x512xf32>, vector<8x512xf32> -> vector<8x512xf32>
    %41 = arith.addf %40, %11 : vector<8x512xf32>
    %42 = vector.extract_strided_slice %41 {offsets = [0, 0], sizes = [8, 384], strides = [1, 1]} : vector<8x512xf32> to vector<8x384xf32>
    %43 = arith.negf %42 : vector<8x384xf32>
    %44 = math.exp %43 : vector<8x384xf32>
    %cst_29 = arith.constant 1.000000e+00 : f32
    %45 = vector.broadcast %cst_29 : f32 to vector<8x384xf32>
    %46 = arith.addf %45, %44 : vector<8x384xf32>
    %47 = arith.divf %45, %46 : vector<8x384xf32>
    %48 = vector.extract_strided_slice %41 {offsets = [0, 384], sizes = [8, 128], strides = [1, 1]} : vector<8x512xf32> to vector<8x128xf32>
    %49 = math.tanh %48 : vector<8x128xf32>
    %50 = vector.extract_strided_slice %47 {offsets = [0, 0], sizes = [8, 128], strides = [1, 1]} : vector<8x384xf32> to vector<8x128xf32>
    %51 = vector.extract_strided_slice %47 {offsets = [0, 128], sizes = [8, 128], strides = [1, 1]} : vector<8x384xf32> to vector<8x128xf32>
    %52 = vector.extract_strided_slice %47 {offsets = [0, 256], sizes = [8, 128], strides = [1, 1]} : vector<8x384xf32> to vector<8x128xf32>
    %53 = arith.mulf %51, %19 : vector<8x128xf32>
    %54 = arith.mulf %50, %49 : vector<8x128xf32>
    %55 = arith.addf %53, %54 : vector<8x128xf32>
    %56 = math.tanh %55 : vector<8x128xf32>
    %57 = arith.mulf %52, %56 : vector<8x128xf32>
    %c8 = arith.constant 8 : index
    %c0_30 = arith.constant 0 : index
    %58 = vector.load %arg11[%c8, %c0_30] : memref<64x512xf32, #tpu.memory_space<vmem>>, vector<8x512xf32>
    %cst_31 = arith.constant dense<0.000000e+00> : vector<8x512xf32>
    %59 = tpu.matmul %38, %7, %cst_31 {dimension_numbers = #tpu.dot_dimension_numbers<[1], [0], [0], [1], [0, 0, 1, 1], [], []>} : vector<8x128xf32>, vector<128x512xf32>, vector<8x512xf32> -> vector<8x512xf32>
    %60 = arith.addf %58, %59 : vector<8x512xf32>
    %61 = vector.extract_strided_slice %60 {offsets = [0, 0], sizes = [8, 384], strides = [1, 1]} : vector<8x512xf32> to vector<8x384xf32>
    %62 = arith.negf %61 : vector<8x384xf32>
    %63 = math.exp %62 : vector<8x384xf32>
    %cst_32 = arith.constant 1.000000e+00 : f32
    %64 = vector.broadcast %cst_32 : f32 to vector<8x384xf32>
    %65 = arith.addf %64, %63 : vector<8x384xf32>
    %66 = arith.divf %64, %65 : vector<8x384xf32>
    %67 = vector.extract_strided_slice %60 {offsets = [0, 384], sizes = [8, 128], strides = [1, 1]} : vector<8x512xf32> to vector<8x128xf32>
    %68 = math.tanh %67 : vector<8x128xf32>
    %69 = vector.extract_strided_slice %66 {offsets = [0, 0], sizes = [8, 128], strides = [1, 1]} : vector<8x384xf32> to vector<8x128xf32>
    %70 = vector.extract_strided_slice %66 {offsets = [0, 128], sizes = [8, 128], strides = [1, 1]} : vector<8x384xf32> to vector<8x128xf32>
    %71 = vector.extract_strided_slice %66 {offsets = [0, 256], sizes = [8, 128], strides = [1, 1]} : vector<8x384xf32> to vector<8x128xf32>
    %72 = arith.mulf %70, %36 : vector<8x128xf32>
    %73 = arith.mulf %69, %68 : vector<8x128xf32>
    %74 = arith.addf %72, %73 : vector<8x128xf32>
    %75 = math.tanh %74 : vector<8x128xf32>
    %76 = arith.mulf %71, %75 : vector<8x128xf32>
    %77 = tpu.concatenate %76, %57 in 1 : vector<8x128xf32>, vector<8x128xf32> -> vector<8x256xf32>
    %cst_33 = arith.constant dense<0.000000e+00> : vector<8x512xf32>
    %78 = tpu.matmul %77, %8, %cst_33 {dimension_numbers = #tpu.dot_dimension_numbers<[1], [0], [0], [1], [0, 0, 1, 1], [], []>} : vector<8x256xf32>, vector<256x512xf32>, vector<8x512xf32> -> vector<8x512xf32>
    %79 = arith.addf %78, %11 : vector<8x512xf32>
    %80 = vector.extract_strided_slice %79 {offsets = [0, 0], sizes = [8, 384], strides = [1, 1]} : vector<8x512xf32> to vector<8x384xf32>
    %81 = arith.negf %80 : vector<8x384xf32>
    %82 = math.exp %81 : vector<8x384xf32>
    %cst_34 = arith.constant 1.000000e+00 : f32
    %83 = vector.broadcast %cst_34 : f32 to vector<8x384xf32>
    %84 = arith.addf %83, %82 : vector<8x384xf32>
    %85 = arith.divf %83, %84 : vector<8x384xf32>
    %86 = vector.extract_strided_slice %79 {offsets = [0, 384], sizes = [8, 128], strides = [1, 1]} : vector<8x512xf32> to vector<8x128xf32>
    %87 = math.tanh %86 : vector<8x128xf32>
    %88 = vector.extract_strided_slice %85 {offsets = [0, 0], sizes = [8, 128], strides = [1, 1]} : vector<8x384xf32> to vector<8x128xf32>
    %89 = vector.extract_strided_slice %85 {offsets = [0, 128], sizes = [8, 128], strides = [1, 1]} : vector<8x384xf32> to vector<8x128xf32>
    %90 = vector.extract_strided_slice %85 {offsets = [0, 256], sizes = [8, 128], strides = [1, 1]} : vector<8x384xf32> to vector<8x128xf32>
    %91 = arith.mulf %89, %55 : vector<8x128xf32>
    %92 = arith.mulf %88, %87 : vector<8x128xf32>
    %93 = arith.addf %91, %92 : vector<8x128xf32>
    %94 = math.tanh %93 : vector<8x128xf32>
    %95 = arith.mulf %90, %94 : vector<8x128xf32>
    %c16 = arith.constant 16 : index
    %c0_35 = arith.constant 0 : index
    %96 = vector.load %arg11[%c16, %c0_35] : memref<64x512xf32, #tpu.memory_space<vmem>>, vector<8x512xf32>
    %cst_36 = arith.constant dense<0.000000e+00> : vector<8x512xf32>
    %97 = tpu.matmul %76, %7, %cst_36 {dimension_numbers = #tpu.dot_dimension_numbers<[1], [0], [0], [1], [0, 0, 1, 1], [], []>} : vector<8x128xf32>, vector<128x512xf32>, vector<8x512xf32> -> vector<8x512xf32>
    %98 = arith.addf %96, %97 : vector<8x512xf32>
    %99 = vector.extract_strided_slice %98 {offsets = [0, 0], sizes = [8, 384], strides = [1, 1]} : vector<8x512xf32> to vector<8x384xf32>
    %100 = arith.negf %99 : vector<8x384xf32>
    %101 = math.exp %100 : vector<8x384xf32>
    %cst_37 = arith.constant 1.000000e+00 : f32
    %102 = vector.broadcast %cst_37 : f32 to vector<8x384xf32>
    %103 = arith.addf %102, %101 : vector<8x384xf32>
    %104 = arith.divf %102, %103 : vector<8x384xf32>
    %105 = vector.extract_strided_slice %98 {offsets = [0, 384], sizes = [8, 128], strides = [1, 1]} : vector<8x512xf32> to vector<8x128xf32>
    %106 = math.tanh %105 : vector<8x128xf32>
    %107 = vector.extract_strided_slice %104 {offsets = [0, 0], sizes = [8, 128], strides = [1, 1]} : vector<8x384xf32> to vector<8x128xf32>
    %108 = vector.extract_strided_slice %104 {offsets = [0, 128], sizes = [8, 128], strides = [1, 1]} : vector<8x384xf32> to vector<8x128xf32>
    %109 = vector.extract_strided_slice %104 {offsets = [0, 256], sizes = [8, 128], strides = [1, 1]} : vector<8x384xf32> to vector<8x128xf32>
    %110 = arith.mulf %108, %74 : vector<8x128xf32>
    %111 = arith.mulf %107, %106 : vector<8x128xf32>
    %112 = arith.addf %110, %111 : vector<8x128xf32>
    %113 = math.tanh %112 : vector<8x128xf32>
    %114 = arith.mulf %109, %113 : vector<8x128xf32>
    %115 = tpu.concatenate %114, %95 in 1 : vector<8x128xf32>, vector<8x128xf32> -> vector<8x256xf32>
    %cst_38 = arith.constant dense<0.000000e+00> : vector<8x512xf32>
    %116 = tpu.matmul %115, %8, %cst_38 {dimension_numbers = #tpu.dot_dimension_numbers<[1], [0], [0], [1], [0, 0, 1, 1], [], []>} : vector<8x256xf32>, vector<256x512xf32>, vector<8x512xf32> -> vector<8x512xf32>
    %117 = arith.addf %116, %11 : vector<8x512xf32>
    %118 = vector.extract_strided_slice %117 {offsets = [0, 0], sizes = [8, 384], strides = [1, 1]} : vector<8x512xf32> to vector<8x384xf32>
    %119 = arith.negf %118 : vector<8x384xf32>
    %120 = math.exp %119 : vector<8x384xf32>
    %cst_39 = arith.constant 1.000000e+00 : f32
    %121 = vector.broadcast %cst_39 : f32 to vector<8x384xf32>
    %122 = arith.addf %121, %120 : vector<8x384xf32>
    %123 = arith.divf %121, %122 : vector<8x384xf32>
    %124 = vector.extract_strided_slice %117 {offsets = [0, 384], sizes = [8, 128], strides = [1, 1]} : vector<8x512xf32> to vector<8x128xf32>
    %125 = math.tanh %124 : vector<8x128xf32>
    %126 = vector.extract_strided_slice %123 {offsets = [0, 0], sizes = [8, 128], strides = [1, 1]} : vector<8x384xf32> to vector<8x128xf32>
    %127 = vector.extract_strided_slice %123 {offsets = [0, 128], sizes = [8, 128], strides = [1, 1]} : vector<8x384xf32> to vector<8x128xf32>
    %128 = vector.extract_strided_slice %123 {offsets = [0, 256], sizes = [8, 128], strides = [1, 1]} : vector<8x384xf32> to vector<8x128xf32>
    %129 = arith.mulf %127, %93 : vector<8x128xf32>
    %130 = arith.mulf %126, %125 : vector<8x128xf32>
    %131 = arith.addf %129, %130 : vector<8x128xf32>
    %132 = math.tanh %131 : vector<8x128xf32>
    %133 = arith.mulf %128, %132 : vector<8x128xf32>
    %c24 = arith.constant 24 : index
    %c0_40 = arith.constant 0 : index
    %134 = vector.load %arg11[%c24, %c0_40] : memref<64x512xf32, #tpu.memory_space<vmem>>, vector<8x512xf32>
    %cst_41 = arith.constant dense<0.000000e+00> : vector<8x512xf32>
    %135 = tpu.matmul %114, %7, %cst_41 {dimension_numbers = #tpu.dot_dimension_numbers<[1], [0], [0], [1], [0, 0, 1, 1], [], []>} : vector<8x128xf32>, vector<128x512xf32>, vector<8x512xf32> -> vector<8x512xf32>
    %136 = arith.addf %134, %135 : vector<8x512xf32>
    %137 = vector.extract_strided_slice %136 {offsets = [0, 0], sizes = [8, 384], strides = [1, 1]} : vector<8x512xf32> to vector<8x384xf32>
    %138 = arith.negf %137 : vector<8x384xf32>
    %139 = math.exp %138 : vector<8x384xf32>
    %cst_42 = arith.constant 1.000000e+00 : f32
    %140 = vector.broadcast %cst_42 : f32 to vector<8x384xf32>
    %141 = arith.addf %140, %139 : vector<8x384xf32>
    %142 = arith.divf %140, %141 : vector<8x384xf32>
    %143 = vector.extract_strided_slice %136 {offsets = [0, 384], sizes = [8, 128], strides = [1, 1]} : vector<8x512xf32> to vector<8x128xf32>
    %144 = math.tanh %143 : vector<8x128xf32>
    %145 = vector.extract_strided_slice %142 {offsets = [0, 0], sizes = [8, 128], strides = [1, 1]} : vector<8x384xf32> to vector<8x128xf32>
    %146 = vector.extract_strided_slice %142 {offsets = [0, 128], sizes = [8, 128], strides = [1, 1]} : vector<8x384xf32> to vector<8x128xf32>
    %147 = vector.extract_strided_slice %142 {offsets = [0, 256], sizes = [8, 128], strides = [1, 1]} : vector<8x384xf32> to vector<8x128xf32>
    %148 = arith.mulf %146, %112 : vector<8x128xf32>
    %149 = arith.mulf %145, %144 : vector<8x128xf32>
    %150 = arith.addf %148, %149 : vector<8x128xf32>
    %151 = math.tanh %150 : vector<8x128xf32>
    %152 = arith.mulf %147, %151 : vector<8x128xf32>
    %153 = tpu.concatenate %152, %133 in 1 : vector<8x128xf32>, vector<8x128xf32> -> vector<8x256xf32>
    %cst_43 = arith.constant dense<0.000000e+00> : vector<8x512xf32>
    %154 = tpu.matmul %153, %8, %cst_43 {dimension_numbers = #tpu.dot_dimension_numbers<[1], [0], [0], [1], [0, 0, 1, 1], [], []>} : vector<8x256xf32>, vector<256x512xf32>, vector<8x512xf32> -> vector<8x512xf32>
    %155 = arith.addf %154, %11 : vector<8x512xf32>
    %156 = vector.extract_strided_slice %155 {offsets = [0, 0], sizes = [8, 384], strides = [1, 1]} : vector<8x512xf32> to vector<8x384xf32>
    %157 = arith.negf %156 : vector<8x384xf32>
    %158 = math.exp %157 : vector<8x384xf32>
    %cst_44 = arith.constant 1.000000e+00 : f32
    %159 = vector.broadcast %cst_44 : f32 to vector<8x384xf32>
    %160 = arith.addf %159, %158 : vector<8x384xf32>
    %161 = arith.divf %159, %160 : vector<8x384xf32>
    %162 = vector.extract_strided_slice %155 {offsets = [0, 384], sizes = [8, 128], strides = [1, 1]} : vector<8x512xf32> to vector<8x128xf32>
    %163 = math.tanh %162 : vector<8x128xf32>
    %164 = vector.extract_strided_slice %161 {offsets = [0, 0], sizes = [8, 128], strides = [1, 1]} : vector<8x384xf32> to vector<8x128xf32>
    %165 = vector.extract_strided_slice %161 {offsets = [0, 128], sizes = [8, 128], strides = [1, 1]} : vector<8x384xf32> to vector<8x128xf32>
    %166 = vector.extract_strided_slice %161 {offsets = [0, 256], sizes = [8, 128], strides = [1, 1]} : vector<8x384xf32> to vector<8x128xf32>
    %167 = arith.mulf %165, %131 : vector<8x128xf32>
    %168 = arith.mulf %164, %163 : vector<8x128xf32>
    %169 = arith.addf %167, %168 : vector<8x128xf32>
    %170 = math.tanh %169 : vector<8x128xf32>
    %171 = arith.mulf %166, %170 : vector<8x128xf32>
    %c32 = arith.constant 32 : index
    %c0_45 = arith.constant 0 : index
    %172 = vector.load %arg11[%c32, %c0_45] : memref<64x512xf32, #tpu.memory_space<vmem>>, vector<8x512xf32>
    %cst_46 = arith.constant dense<0.000000e+00> : vector<8x512xf32>
    %173 = tpu.matmul %152, %7, %cst_46 {dimension_numbers = #tpu.dot_dimension_numbers<[1], [0], [0], [1], [0, 0, 1, 1], [], []>} : vector<8x128xf32>, vector<128x512xf32>, vector<8x512xf32> -> vector<8x512xf32>
    %174 = arith.addf %172, %173 : vector<8x512xf32>
    %175 = vector.extract_strided_slice %174 {offsets = [0, 0], sizes = [8, 384], strides = [1, 1]} : vector<8x512xf32> to vector<8x384xf32>
    %176 = arith.negf %175 : vector<8x384xf32>
    %177 = math.exp %176 : vector<8x384xf32>
    %cst_47 = arith.constant 1.000000e+00 : f32
    %178 = vector.broadcast %cst_47 : f32 to vector<8x384xf32>
    %179 = arith.addf %178, %177 : vector<8x384xf32>
    %180 = arith.divf %178, %179 : vector<8x384xf32>
    %181 = vector.extract_strided_slice %174 {offsets = [0, 384], sizes = [8, 128], strides = [1, 1]} : vector<8x512xf32> to vector<8x128xf32>
    %182 = math.tanh %181 : vector<8x128xf32>
    %183 = vector.extract_strided_slice %180 {offsets = [0, 0], sizes = [8, 128], strides = [1, 1]} : vector<8x384xf32> to vector<8x128xf32>
    %184 = vector.extract_strided_slice %180 {offsets = [0, 128], sizes = [8, 128], strides = [1, 1]} : vector<8x384xf32> to vector<8x128xf32>
    %185 = vector.extract_strided_slice %180 {offsets = [0, 256], sizes = [8, 128], strides = [1, 1]} : vector<8x384xf32> to vector<8x128xf32>
    %186 = arith.mulf %184, %150 : vector<8x128xf32>
    %187 = arith.mulf %183, %182 : vector<8x128xf32>
    %188 = arith.addf %186, %187 : vector<8x128xf32>
    %189 = math.tanh %188 : vector<8x128xf32>
    %190 = arith.mulf %185, %189 : vector<8x128xf32>
    %191 = tpu.concatenate %190, %171 in 1 : vector<8x128xf32>, vector<8x128xf32> -> vector<8x256xf32>
    %cst_48 = arith.constant dense<0.000000e+00> : vector<8x512xf32>
    %192 = tpu.matmul %191, %8, %cst_48 {dimension_numbers = #tpu.dot_dimension_numbers<[1], [0], [0], [1], [0, 0, 1, 1], [], []>} : vector<8x256xf32>, vector<256x512xf32>, vector<8x512xf32> -> vector<8x512xf32>
    %193 = arith.addf %192, %11 : vector<8x512xf32>
    %194 = vector.extract_strided_slice %193 {offsets = [0, 0], sizes = [8, 384], strides = [1, 1]} : vector<8x512xf32> to vector<8x384xf32>
    %195 = arith.negf %194 : vector<8x384xf32>
    %196 = math.exp %195 : vector<8x384xf32>
    %cst_49 = arith.constant 1.000000e+00 : f32
    %197 = vector.broadcast %cst_49 : f32 to vector<8x384xf32>
    %198 = arith.addf %197, %196 : vector<8x384xf32>
    %199 = arith.divf %197, %198 : vector<8x384xf32>
    %200 = vector.extract_strided_slice %193 {offsets = [0, 384], sizes = [8, 128], strides = [1, 1]} : vector<8x512xf32> to vector<8x128xf32>
    %201 = math.tanh %200 : vector<8x128xf32>
    %202 = vector.extract_strided_slice %199 {offsets = [0, 0], sizes = [8, 128], strides = [1, 1]} : vector<8x384xf32> to vector<8x128xf32>
    %203 = vector.extract_strided_slice %199 {offsets = [0, 128], sizes = [8, 128], strides = [1, 1]} : vector<8x384xf32> to vector<8x128xf32>
    %204 = vector.extract_strided_slice %199 {offsets = [0, 256], sizes = [8, 128], strides = [1, 1]} : vector<8x384xf32> to vector<8x128xf32>
    %205 = arith.mulf %203, %169 : vector<8x128xf32>
    %206 = arith.mulf %202, %201 : vector<8x128xf32>
    %207 = arith.addf %205, %206 : vector<8x128xf32>
    %208 = math.tanh %207 : vector<8x128xf32>
    %209 = arith.mulf %204, %208 : vector<8x128xf32>
    %c40 = arith.constant 40 : index
    %c0_50 = arith.constant 0 : index
    %210 = vector.load %arg11[%c40, %c0_50] : memref<64x512xf32, #tpu.memory_space<vmem>>, vector<8x512xf32>
    %cst_51 = arith.constant dense<0.000000e+00> : vector<8x512xf32>
    %211 = tpu.matmul %190, %7, %cst_51 {dimension_numbers = #tpu.dot_dimension_numbers<[1], [0], [0], [1], [0, 0, 1, 1], [], []>} : vector<8x128xf32>, vector<128x512xf32>, vector<8x512xf32> -> vector<8x512xf32>
    %212 = arith.addf %210, %211 : vector<8x512xf32>
    %213 = vector.extract_strided_slice %212 {offsets = [0, 0], sizes = [8, 384], strides = [1, 1]} : vector<8x512xf32> to vector<8x384xf32>
    %214 = arith.negf %213 : vector<8x384xf32>
    %215 = math.exp %214 : vector<8x384xf32>
    %cst_52 = arith.constant 1.000000e+00 : f32
    %216 = vector.broadcast %cst_52 : f32 to vector<8x384xf32>
    %217 = arith.addf %216, %215 : vector<8x384xf32>
    %218 = arith.divf %216, %217 : vector<8x384xf32>
    %219 = vector.extract_strided_slice %212 {offsets = [0, 384], sizes = [8, 128], strides = [1, 1]} : vector<8x512xf32> to vector<8x128xf32>
    %220 = math.tanh %219 : vector<8x128xf32>
    %221 = vector.extract_strided_slice %218 {offsets = [0, 0], sizes = [8, 128], strides = [1, 1]} : vector<8x384xf32> to vector<8x128xf32>
    %222 = vector.extract_strided_slice %218 {offsets = [0, 128], sizes = [8, 128], strides = [1, 1]} : vector<8x384xf32> to vector<8x128xf32>
    %223 = vector.extract_strided_slice %218 {offsets = [0, 256], sizes = [8, 128], strides = [1, 1]} : vector<8x384xf32> to vector<8x128xf32>
    %224 = arith.mulf %222, %188 : vector<8x128xf32>
    %225 = arith.mulf %221, %220 : vector<8x128xf32>
    %226 = arith.addf %224, %225 : vector<8x128xf32>
    %227 = math.tanh %226 : vector<8x128xf32>
    %228 = arith.mulf %223, %227 : vector<8x128xf32>
    %229 = tpu.concatenate %228, %209 in 1 : vector<8x128xf32>, vector<8x128xf32> -> vector<8x256xf32>
    %cst_53 = arith.constant dense<0.000000e+00> : vector<8x512xf32>
    %230 = tpu.matmul %229, %8, %cst_53 {dimension_numbers = #tpu.dot_dimension_numbers<[1], [0], [0], [1], [0, 0, 1, 1], [], []>} : vector<8x256xf32>, vector<256x512xf32>, vector<8x512xf32> -> vector<8x512xf32>
    %231 = arith.addf %230, %11 : vector<8x512xf32>
    %232 = vector.extract_strided_slice %231 {offsets = [0, 0], sizes = [8, 384], strides = [1, 1]} : vector<8x512xf32> to vector<8x384xf32>
    %233 = arith.negf %232 : vector<8x384xf32>
    %234 = math.exp %233 : vector<8x384xf32>
    %cst_54 = arith.constant 1.000000e+00 : f32
    %235 = vector.broadcast %cst_54 : f32 to vector<8x384xf32>
    %236 = arith.addf %235, %234 : vector<8x384xf32>
    %237 = arith.divf %235, %236 : vector<8x384xf32>
    %238 = vector.extract_strided_slice %231 {offsets = [0, 384], sizes = [8, 128], strides = [1, 1]} : vector<8x512xf32> to vector<8x128xf32>
    %239 = math.tanh %238 : vector<8x128xf32>
    %240 = vector.extract_strided_slice %237 {offsets = [0, 0], sizes = [8, 128], strides = [1, 1]} : vector<8x384xf32> to vector<8x128xf32>
    %241 = vector.extract_strided_slice %237 {offsets = [0, 128], sizes = [8, 128], strides = [1, 1]} : vector<8x384xf32> to vector<8x128xf32>
    %242 = vector.extract_strided_slice %237 {offsets = [0, 256], sizes = [8, 128], strides = [1, 1]} : vector<8x384xf32> to vector<8x128xf32>
    %243 = arith.mulf %241, %207 : vector<8x128xf32>
    %244 = arith.mulf %240, %239 : vector<8x128xf32>
    %245 = arith.addf %243, %244 : vector<8x128xf32>
    %246 = math.tanh %245 : vector<8x128xf32>
    %247 = arith.mulf %242, %246 : vector<8x128xf32>
    %c48 = arith.constant 48 : index
    %c0_55 = arith.constant 0 : index
    %248 = vector.load %arg11[%c48, %c0_55] : memref<64x512xf32, #tpu.memory_space<vmem>>, vector<8x512xf32>
    %cst_56 = arith.constant dense<0.000000e+00> : vector<8x512xf32>
    %249 = tpu.matmul %228, %7, %cst_56 {dimension_numbers = #tpu.dot_dimension_numbers<[1], [0], [0], [1], [0, 0, 1, 1], [], []>} : vector<8x128xf32>, vector<128x512xf32>, vector<8x512xf32> -> vector<8x512xf32>
    %250 = arith.addf %248, %249 : vector<8x512xf32>
    %251 = vector.extract_strided_slice %250 {offsets = [0, 0], sizes = [8, 384], strides = [1, 1]} : vector<8x512xf32> to vector<8x384xf32>
    %252 = arith.negf %251 : vector<8x384xf32>
    %253 = math.exp %252 : vector<8x384xf32>
    %cst_57 = arith.constant 1.000000e+00 : f32
    %254 = vector.broadcast %cst_57 : f32 to vector<8x384xf32>
    %255 = arith.addf %254, %253 : vector<8x384xf32>
    %256 = arith.divf %254, %255 : vector<8x384xf32>
    %257 = vector.extract_strided_slice %250 {offsets = [0, 384], sizes = [8, 128], strides = [1, 1]} : vector<8x512xf32> to vector<8x128xf32>
    %258 = math.tanh %257 : vector<8x128xf32>
    %259 = vector.extract_strided_slice %256 {offsets = [0, 0], sizes = [8, 128], strides = [1, 1]} : vector<8x384xf32> to vector<8x128xf32>
    %260 = vector.extract_strided_slice %256 {offsets = [0, 128], sizes = [8, 128], strides = [1, 1]} : vector<8x384xf32> to vector<8x128xf32>
    %261 = vector.extract_strided_slice %256 {offsets = [0, 256], sizes = [8, 128], strides = [1, 1]} : vector<8x384xf32> to vector<8x128xf32>
    %262 = arith.mulf %260, %226 : vector<8x128xf32>
    %263 = arith.mulf %259, %258 : vector<8x128xf32>
    %264 = arith.addf %262, %263 : vector<8x128xf32>
    %265 = math.tanh %264 : vector<8x128xf32>
    %266 = arith.mulf %261, %265 : vector<8x128xf32>
    %267 = tpu.concatenate %266, %247 in 1 : vector<8x128xf32>, vector<8x128xf32> -> vector<8x256xf32>
    %cst_58 = arith.constant dense<0.000000e+00> : vector<8x512xf32>
    %268 = tpu.matmul %267, %8, %cst_58 {dimension_numbers = #tpu.dot_dimension_numbers<[1], [0], [0], [1], [0, 0, 1, 1], [], []>} : vector<8x256xf32>, vector<256x512xf32>, vector<8x512xf32> -> vector<8x512xf32>
    %269 = arith.addf %268, %11 : vector<8x512xf32>
    %270 = vector.extract_strided_slice %269 {offsets = [0, 0], sizes = [8, 384], strides = [1, 1]} : vector<8x512xf32> to vector<8x384xf32>
    %271 = arith.negf %270 : vector<8x384xf32>
    %272 = math.exp %271 : vector<8x384xf32>
    %cst_59 = arith.constant 1.000000e+00 : f32
    %273 = vector.broadcast %cst_59 : f32 to vector<8x384xf32>
    %274 = arith.addf %273, %272 : vector<8x384xf32>
    %275 = arith.divf %273, %274 : vector<8x384xf32>
    %276 = vector.extract_strided_slice %269 {offsets = [0, 384], sizes = [8, 128], strides = [1, 1]} : vector<8x512xf32> to vector<8x128xf32>
    %277 = math.tanh %276 : vector<8x128xf32>
    %278 = vector.extract_strided_slice %275 {offsets = [0, 0], sizes = [8, 128], strides = [1, 1]} : vector<8x384xf32> to vector<8x128xf32>
    %279 = vector.extract_strided_slice %275 {offsets = [0, 128], sizes = [8, 128], strides = [1, 1]} : vector<8x384xf32> to vector<8x128xf32>
    %280 = vector.extract_strided_slice %275 {offsets = [0, 256], sizes = [8, 128], strides = [1, 1]} : vector<8x384xf32> to vector<8x128xf32>
    %281 = arith.mulf %279, %245 : vector<8x128xf32>
    %282 = arith.mulf %278, %277 : vector<8x128xf32>
    %283 = arith.addf %281, %282 : vector<8x128xf32>
    %284 = math.tanh %283 : vector<8x128xf32>
    %285 = arith.mulf %280, %284 : vector<8x128xf32>
    %c56 = arith.constant 56 : index
    %c0_60 = arith.constant 0 : index
    %286 = vector.load %arg11[%c56, %c0_60] : memref<64x512xf32, #tpu.memory_space<vmem>>, vector<8x512xf32>
    %cst_61 = arith.constant dense<0.000000e+00> : vector<8x512xf32>
    %287 = tpu.matmul %266, %7, %cst_61 {dimension_numbers = #tpu.dot_dimension_numbers<[1], [0], [0], [1], [0, 0, 1, 1], [], []>} : vector<8x128xf32>, vector<128x512xf32>, vector<8x512xf32> -> vector<8x512xf32>
    %288 = arith.addf %286, %287 : vector<8x512xf32>
    %289 = vector.extract_strided_slice %288 {offsets = [0, 0], sizes = [8, 384], strides = [1, 1]} : vector<8x512xf32> to vector<8x384xf32>
    %290 = arith.negf %289 : vector<8x384xf32>
    %291 = math.exp %290 : vector<8x384xf32>
    %cst_62 = arith.constant 1.000000e+00 : f32
    %292 = vector.broadcast %cst_62 : f32 to vector<8x384xf32>
    %293 = arith.addf %292, %291 : vector<8x384xf32>
    %294 = arith.divf %292, %293 : vector<8x384xf32>
    %295 = vector.extract_strided_slice %288 {offsets = [0, 384], sizes = [8, 128], strides = [1, 1]} : vector<8x512xf32> to vector<8x128xf32>
    %296 = math.tanh %295 : vector<8x128xf32>
    %297 = vector.extract_strided_slice %294 {offsets = [0, 0], sizes = [8, 128], strides = [1, 1]} : vector<8x384xf32> to vector<8x128xf32>
    %298 = vector.extract_strided_slice %294 {offsets = [0, 128], sizes = [8, 128], strides = [1, 1]} : vector<8x384xf32> to vector<8x128xf32>
    %299 = vector.extract_strided_slice %294 {offsets = [0, 256], sizes = [8, 128], strides = [1, 1]} : vector<8x384xf32> to vector<8x128xf32>
    %300 = arith.mulf %298, %264 : vector<8x128xf32>
    %301 = arith.mulf %297, %296 : vector<8x128xf32>
    %302 = arith.addf %300, %301 : vector<8x128xf32>
    %303 = math.tanh %302 : vector<8x128xf32>
    %304 = arith.mulf %299, %303 : vector<8x128xf32>
    %305 = tpu.concatenate %304, %285 in 1 : vector<8x128xf32>, vector<8x128xf32> -> vector<8x256xf32>
    %cst_63 = arith.constant dense<0.000000e+00> : vector<8x512xf32>
    %306 = tpu.matmul %305, %8, %cst_63 {dimension_numbers = #tpu.dot_dimension_numbers<[1], [0], [0], [1], [0, 0, 1, 1], [], []>} : vector<8x256xf32>, vector<256x512xf32>, vector<8x512xf32> -> vector<8x512xf32>
    %307 = arith.addf %306, %11 : vector<8x512xf32>
    %308 = vector.extract_strided_slice %307 {offsets = [0, 0], sizes = [8, 384], strides = [1, 1]} : vector<8x512xf32> to vector<8x384xf32>
    %309 = arith.negf %308 : vector<8x384xf32>
    %310 = math.exp %309 : vector<8x384xf32>
    %cst_64 = arith.constant 1.000000e+00 : f32
    %311 = vector.broadcast %cst_64 : f32 to vector<8x384xf32>
    %312 = arith.addf %311, %310 : vector<8x384xf32>
    %313 = arith.divf %311, %312 : vector<8x384xf32>
    %314 = vector.extract_strided_slice %307 {offsets = [0, 384], sizes = [8, 128], strides = [1, 1]} : vector<8x512xf32> to vector<8x128xf32>
    %315 = math.tanh %314 : vector<8x128xf32>
    %316 = vector.extract_strided_slice %313 {offsets = [0, 0], sizes = [8, 128], strides = [1, 1]} : vector<8x384xf32> to vector<8x128xf32>
    %317 = vector.extract_strided_slice %313 {offsets = [0, 128], sizes = [8, 128], strides = [1, 1]} : vector<8x384xf32> to vector<8x128xf32>
    %318 = vector.extract_strided_slice %313 {offsets = [0, 256], sizes = [8, 128], strides = [1, 1]} : vector<8x384xf32> to vector<8x128xf32>
    %319 = arith.mulf %317, %283 : vector<8x128xf32>
    %320 = arith.mulf %316, %315 : vector<8x128xf32>
    %321 = arith.addf %319, %320 : vector<8x128xf32>
    %322 = math.tanh %321 : vector<8x128xf32>
    %323 = arith.mulf %318, %322 : vector<8x128xf32>
    %c0_65 = arith.constant 0 : index
    %c0_66 = arith.constant 0 : index
    %324 = vector.load %arg8[%c0_65, %c0_66] : memref<128x128xf32, #tpu.memory_space<vmem>>, vector<128x128xf32>
    %cst_67 = arith.constant dense<0.000000e+00> : vector<8x128xf32>
    %325 = tpu.matmul %323, %324, %cst_67 {dimension_numbers = #tpu.dot_dimension_numbers<[1], [0], [0], [1], [0, 0, 1, 1], [], []>} : vector<8x128xf32>, vector<128x128xf32>, vector<8x128xf32> -> vector<8x128xf32>
    %c0_68 = arith.constant 0 : index
    %c0_69 = arith.constant 0 : index
    %326 = vector.load %arg9[%c0_68, %c0_69] : memref<1x128xf32, #tpu.memory_space<vmem>>, vector<1x128xf32>
    %327 = vector.broadcast %326 : vector<1x128xf32> to vector<8x128xf32>
    %328 = arith.addf %325, %327 : vector<8x128xf32>
    %c0_70 = arith.constant 0 : index
    %c0_71 = arith.constant 0 : index
    %329 = vector.load %arg10[%c0_70, %c0_71] : memref<8x128xf32, #tpu.memory_space<vmem>>, vector<8x128xf32>
    tpu.vector_store %arg10[%c0_70, %c0_71], %328 {strides = array<i32>} : memref<8x128xf32, #tpu.memory_space<vmem>>, vector<8x128xf32>,
    return
  }
}

</mosaic_0001>

<bundles_post_ra>
// kernel: tpu_custom_call.1
= control target key start
LH: loop header
LB: loop body
LE: loop exit
PB: predicated region body
PF: predicated region fallthrough
CT: control target
= control target key end

     0   :  { %15 = vsyncpa [#allocation4], 0  ;;  %s7134_s0 = inlined_call_operand.hbm [shape: f32[64,128], index: 0, kind: input, shape index: {}]   ;;  %s7135_s1 = inlined_call_operand.hbm [shape: f32[128,512], index: 1, kind: input, shape index: {}]   ;;  %s7136_s2 = inlined_call_operand.hbm [shape: f32[128,512], index: 2, kind: input, shape index: {}]   ;;  %s7137_s3 = inlined_call_operand.vmem [shape: f32[1,512], index: 3, kind: input, shape index: {}]   ;;  %s7138_s4 = inlined_call_operand.hbm [shape: f32[256,512], index: 4, kind: input, shape index: {}]   ;;  %s7139_s5 = inlined_call_operand.hbm [shape: f32[1,512], index: 5, kind: input, shape index: {}]   ;;  %s7140_s6 = inlined_call_operand.vmem [shape: f32[2,8,128], index: 6, kind: input, shape index: {}]   ;;  %s7141_s7 = inlined_call_operand.hbm [shape: f32[2,8,128], index: 7, kind: input, shape index: {}]   ;;  %s7142_s8 = inlined_call_operand.hbm [shape: f32[128,128], index: 8, kind: input, shape index: {}]   ;;  %s7143_s9 = inlined_call_operand.vmem [shape: f32[1,128], index: 9, kind: input, shape index: {}]   ;;  %s7144_s10 = inlined_call_operand.hbm [shape: f32[8,128], index: 10, kind: output, shape index: {}]  }
   0x1   :  { %16 = vsyncpa [#allocation7], 0 }
   0x2   :  { %17 = vsyncpa [#allocation10], 0 }
   0x3   :  { %18 = vsyncpa [#allocation13], 0 }
   0x4   :  { %19 = vsyncpa [#allocation5], 0  ;;  %s5780_s13 = smov [#allocation6]   ;;  %s5594_s17 = scalar_lea.hbm %s7135_s1, 8192 }
   0x5   :  { %s37_s14 = sshll.u32 %s5780_s13, 4  ;;  %p5595_p0 = scmp.ne.s32.totalorder %s7135_s1, %s5594_s17  ;;  %s38_s14 = int_to_ptr.vmem [resolvable:$true] %s37_s14 }
   0x6   :  { %p5598_p1 = scmp.lt.u32.totalorder %s5594_s17, %s7135_s1 }
   0x8   :  { %p5600_p2 = pnand %p5598_p1, %p5595_p0 }
   0xa   :  { %5603 = shalt.err (!%p5600_p2)
}
   0xb   :  { %s5604_s22 = scalar_lea.vmem %s38_s14, 8192  ;;  %p5609_p4 = scmp.lt.s32.totalorder %s38_s14, %s38_s14 }
   0xc   :  { %p5605_p3 = scmp.ne.s32.totalorder %s38_s14, %s5604_s22  ;;  %p5610_p5 = scmp.lt.s32.totalorder %s5604_s22, %s5604_s22 }
   0xe   :  { %p5611_p6 = por %p5610_p5, %p5609_p4 }
  0x10   :  { %p5612_p7 = pnand %p5611_p6, %p5605_p3 }
  0x12   :  { %5615 = shalt.err (!%p5612_p7)
}
  0x13   :  { %s5781_s23 = smov 512   ;;  %s5782_s24 = smov 32  }
  0x14   :  { %43 = dma.hbm_to_vmem [thread:$0]  %s7135_s1, 8192, %s38_s14, [#allocation7], %s5781_s23, %s5781_s23, %s5782_s24  }
  0x15   :  { %s5783_s27 = smov [#allocation9]   ;;  %s5616_s11 = scalar_lea.hbm %s7138_s4, 16384 }
  0x16   :  { %s63_s28 = sshll.u32 %s5783_s27, 4  ;;  %p5617_p8 = scmp.ne.s32.totalorder %s7138_s4, %s5616_s11  ;;  %s64_s28 = int_to_ptr.vmem [resolvable:$true] %s63_s28 }
  0x17   :  { %p5620_p9 = scmp.lt.u32.totalorder %s5616_s11, %s7138_s4 }
  0x19   :  { %p5622_p10 = pnand %p5620_p9, %p5617_p8 }
  0x1b   :  { %5625 = shalt.err (!%p5622_p10)
}
  0x1c   :  { %s5626_s17 = scalar_lea.vmem %s64_s28, 16384  ;;  %p5631_p12 = scmp.lt.s32.totalorder %s64_s28, %s64_s28 }
  0x1d   :  { %p5627_p11 = scmp.ne.s32.totalorder %s64_s28, %s5626_s17  ;;  %p5632_p13 = scmp.lt.s32.totalorder %s5626_s17, %s5626_s17 }
  0x1f   :  { %p5633_p0 = por %p5632_p13, %p5631_p12 }
  0x21   :  { %p5634_p1 = pnand %p5633_p0, %p5627_p11 }
  0x23   :  { %5637 = shalt.err (!%p5634_p1)
}
  0x24   :  { %69 = dma.hbm_to_vmem [thread:$0]  %s7138_s4, 16384, %s64_s28, [#allocation10], %s5781_s23, %s5781_s23, %s5782_s24  }
  0x25   :  { %s5784_s18 = smov [#allocation12]   ;;  %s5785_s20 = smov [#allocation3]  }
  0x26   :  { %s87_s19 = sshll.u32 %s5784_s18, 4  ;;  %s25_s21 = sshll.u32 %s5785_s20, 4  ;;  %s88_s19 = int_to_ptr.vmem [resolvable:$true] %s87_s19  ;;  %s5880_s21 = int_to_ptr.vmem [resolvable:$true] %s25_s21 }
  0x27   :  { %s5638_s26 = scalar_lea.hbm %s7141_s7, 256 }
  0x28   :  { %p5639_p2 = scmp.ne.s32.totalorder %s7141_s7, %s5638_s26  ;;  %p5642_p3 = scmp.lt.u32.totalorder %s5638_s26, %s7141_s7 }
  0x2a   :  { %p5644_p4 = pnand %p5642_p3, %p5639_p2 }
  0x2c   :  { %5647 = shalt.err (!%p5644_p4)
}
  0x2d   :  { %s5648_s4 = scalar_lea.vmem %s88_s19, 256  ;;  %p5653_p6 = scmp.lt.s32.totalorder %s88_s19, %s88_s19 }
  0x2e   :  { %p5649_p5 = scmp.ne.s32.totalorder %s88_s19, %s5648_s4  ;;  %p5654_p7 = scmp.lt.s32.totalorder %s5648_s4, %s5648_s4 }
  0x30   :  { %p5655_p8 = por %p5654_p7, %p5653_p6 }
  0x32   :  { %p5656_p9 = pnand %p5655_p8, %p5649_p5 }
  0x34   :  { %5659 = shalt.err (!%p5656_p9)
}
  0x35   :  { %s5786_s28 = smov 128   ;;  %s5787_s12 = smov 8  }
  0x36   :  { %93 = dma.hbm_to_vmem [thread:$0]  %s7141_s7, 256, %s88_s19, [#allocation13], %s5786_s28, %s5786_s28, %s5787_s12  }
  0x37   :  { %s5660_s1 = scalar_lea.hbm %s7134_s0, 1024 }
  0x38   :  { %p5661_p10 = scmp.ne.s32.totalorder %s7134_s0, %s5660_s1  ;;  %p5664_p11 = scmp.lt.u32.totalorder %s5660_s1, %s7134_s0 }
  0x3a   :  { %p5666_p12 = pnand %p5664_p11, %p5661_p10 }
  0x3c   :  { %5669 = shalt.err (!%p5666_p12)
}
  0x3d   :  { %s5670_s25 = scalar_lea.vmem %s5880_s21, 1024  ;;  %p5675_p0 = scmp.lt.s32.totalorder %s5880_s21, %s5880_s21 }
  0x3e   :  { %p5671_p13 = scmp.ne.s32.totalorder %s5880_s21, %s5670_s25  ;;  %p5676_p1 = scmp.lt.s32.totalorder %s5670_s25, %s5670_s25 }
  0x40   :  { %p5677_p2 = por %p5676_p1, %p5675_p0 }
  0x42   :  { %p5678_p3 = pnand %p5677_p2, %p5671_p13 }
  0x44   :  { %5681 = shalt.err (!%p5678_p3)
}
  0x45   :  { %31 = dma.hbm_to_vmem [thread:$0]  %s7134_s0, 1024, %s5880_s21, [#allocation4], %s5786_s28, %s5786_s28, %s5787_s12  }
  0x46   :  { %s5788_s26 = smov [#allocation8]   ;;  %s5789_s29 = smov [#allocation11]  }
  0x47   :  { %s49_s27 = sshll.u32 %s5788_s26, 4  ;;  %s76_s30 = sshll.u32 %s5789_s29, 4  ;;  %s50_s27 = int_to_ptr.vmem [resolvable:$true] %s49_s27  ;;  %s77_s30 = int_to_ptr.vmem [resolvable:$true] %s76_s30 }
  0x48   :  { %s5682_s13 = scalar_lea.hbm %s7136_s2, 8192 }
  0x49   :  { %p5683_p4 = scmp.ne.s32.totalorder %s7136_s2, %s5682_s13  ;;  %p5686_p5 = scmp.lt.u32.totalorder %s5682_s13, %s7136_s2 }
  0x4b   :  { %p5688_p6 = pnand %p5686_p5, %p5683_p4 }
  0x4d   :  { %5691 = shalt.err (!%p5688_p6)
}
  0x4e   :  { %s5692_s0 = scalar_lea.vmem %s50_s27, 8192  ;;  %p5697_p8 = scmp.lt.s32.totalorder %s50_s27, %s50_s27 }
  0x4f   :  { %p5693_p7 = scmp.ne.s32.totalorder %s50_s27, %s5692_s0  ;;  %p5698_p9 = scmp.lt.s32.totalorder %s5692_s0, %s5692_s0 }
  0x51   :  { %p5699_p10 = por %p5698_p9, %p5697_p8 }
  0x53   :  { %p5700_p11 = pnand %p5699_p10, %p5693_p7 }
  0x55   :  { %5703 = shalt.err (!%p5700_p11)
}
  0x56   :  { %55 = dma.hbm_to_vmem [thread:$0]  %s7136_s2, 8192, %s50_s27, [#allocation7], %s5781_s23, %s5781_s23, %s5782_s24  }
  0x57   :  { %s5704_s22 = scalar_lea.hbm %s7139_s5, 64 }
  0x58   :  { %p5705_p12 = scmp.ne.s32.totalorder %s7139_s5, %s5704_s22  ;;  %p5708_p13 = scmp.lt.u32.totalorder %s5704_s22, %s7139_s5 }
  0x5a   :  { %p5710_p0 = pnand %p5708_p13, %p5705_p12 }
  0x5c   :  { %5713 = shalt.err (!%p5710_p0)
}
  0x5d   :  { %s5714_s29 = scalar_lea.vmem %s77_s30, 64  ;;  %p5719_p2 = scmp.lt.s32.totalorder %s77_s30, %s77_s30 }
  0x5e   :  { %p5715_p1 = scmp.ne.s32.totalorder %s77_s30, %s5714_s29  ;;  %p5720_p3 = scmp.lt.s32.totalorder %s5714_s29, %s5714_s29 }
  0x60   :  { %p5721_p4 = por %p5720_p3, %p5719_p2 }
  0x62   :  { %p5722_p5 = pnand %p5721_p4, %p5715_p1 }
  0x64   :  { %5725 = shalt.err (!%p5722_p5)
}
  0x65   :  { %79 = dma.hbm_to_vmem [thread:$0]  %s7139_s5, 64, %s77_s30, [#allocation10]  }
  0x66   :  { %s5790_s24 = smov [#allocation14]   ;;  %s5726_s13 = scalar_lea.hbm %s7142_s8, 2048 }
  0x67   :  { %s99_s27 = sshll.u32 %s5790_s24, 4  ;;  %p5727_p6 = scmp.ne.s32.totalorder %s7142_s8, %s5726_s13  ;;  %s100_s27 = int_to_ptr.vmem [resolvable:$true] %s99_s27 }
  0x68   :  { %p5730_p7 = scmp.lt.u32.totalorder %s5726_s13, %s7142_s8 }
  0x6a   :  { %p5732_p8 = pnand %p5730_p7, %p5727_p6 }
  0x6c   :  { %5735 = shalt.err (!%p5732_p8)
}
  0x6d   :  { %s5736_s0 = scalar_lea.vmem %s100_s27, 2048  ;;  %p5741_p10 = scmp.lt.s32.totalorder %s100_s27, %s100_s27 }
  0x6e   :  { %p5737_p9 = scmp.ne.s32.totalorder %s100_s27, %s5736_s0  ;;  %p5742_p11 = scmp.lt.s32.totalorder %s5736_s0, %s5736_s0 }
  0x70   :  { %p5743_p12 = por %p5742_p11, %p5741_p10 }
  0x72   :  { %p5744_p13 = pnand %p5743_p12, %p5737_p9 }
  0x74   :  { %5747 = shalt.err (!%p5744_p13)
}
  0x75   :  { %105 = dma.hbm_to_vmem [thread:$0]  %s7142_s8, 2048, %s100_s27, [#allocation13], %s5786_s28, %s5786_s28, %s5787_s12  }
  0x76   :  { %5770 = dma.done.wait [#allocation4], 1024  }
  0x77   :  { %5771 = vsyncadd [#allocation4], 4294966272 }
  0x78   :  { %5772 = dma.done.wait [#allocation7], 16384  }
  0x79   :  { %5773 = vsyncadd [#allocation7], 4294950912 }
  0x7a   :  { %5774 = dma.done.wait [#allocation10], 16448  }
  0x7b   :  { %5775 = vsyncadd [#allocation10], 4294950848 }
  0x7c   :  { %5776 = dma.done.wait [#allocation13], 2304  }
  0x7d   :  { %5777 = vsyncadd [#allocation13], 4294964992  ;;  %v7145_v0 = vmov 0.0   ;;  %v138_v1 = vld [vmem:[#allocation6 + $0x8] sm:$0xff]  ;;  %v140_v3 = vld [vmem:[#allocation6 + $0x18] sm:$0xff]  ;;  %vm5793_vm0 = vmmov 0  }
  0x7e   :  { %287 = vmatprep.mubr.f32.mxu0 %v7145_v0  ;;  %400 = vmatprep.mubr.f32.mxu1 %v7145_v0  ;;  %v142_v2 = vld [vmem:[#allocation6 + $0x28] sm:$0xff]  ;;  %v144_v5 = vld [vmem:[#allocation6 + $0x38] sm:$0xff]  ;;  %v137_v6 = vld [vmem:[#allocation6] sm:$0xff]  ;;  %s5794_s20 = smov [#allocation15]  }
  0x7f   :  { %v3635_v4 = vpack.c.bf16 %v142_v2, %v138_v1  ;;  %v141_v7 = vld [vmem:[#allocation6 + $0x20] sm:$0xff]  ;;  %v3667_v8 = vpack.c.bf16 %v144_v5, %v140_v3  ;;  %v139_v10 = vld [vmem:[#allocation6 + $0x10] sm:$0xff]  ;;  %v146_v12 = vld [vmem:[#allocation6 + $0x48] sm:$0xff]  ;;  %s3521_s22 = sshll.u32 %s5794_s20, 4  ;;  %s3522_s22 = int_to_ptr.vmem [resolvable:$true] %s3521_s22 }
  0x80   :  { %v3637_v9 = vpack.c.bf16 %v141_v7, %v137_v6  ;;  %v143_v11 = vld [vmem:[#allocation6 + $0x30] sm:$0xff]  ;;  %v150_v14 = vld [vmem:[#allocation6 + $0x68] sm:$0xff]  ;;  %v148_v15 = vld [vmem:[#allocation6 + $0x58] sm:$0xff]  ;;  %s5748_s25 = scalar_lea.vmem %s3522_s22, 128  ;;  %p5753_p1 = scmp.lt.s32.totalorder %s3522_s22, %s3522_s22 }
  0x81   :  { %3636 = vmatprep.subr.bf16.mxu0 %v3635_v4  ;;  %v3669_v13 = vpack.c.bf16 %v143_v11, %v139_v10  ;;  %v152_v16 = vld [vmem:[#allocation6 + $0x78] sm:$0xff]  ;;  %3668 = vmatprep.subr.bf16.mxu1 %v3667_v8  ;;  %v3639_v17 = vpack.c.bf16 %v150_v14, %v146_v12  ;;  %v145_v19 = vld [vmem:[#allocation6 + $0x40] sm:$0xff]  ;;  %v147_v21 = vld [vmem:[#allocation6 + $0x50] sm:$0xff]  ;;  %p5749_p0 = scmp.ne.s32.totalorder %s3522_s22, %s5748_s25  ;;  %p5754_p2 = scmp.lt.s32.totalorder %s5748_s25, %s5748_s25 }
  0x82   :  { %3638 = vmatpush1.bf16.msra.mxu0 %v3637_v9  ;;  %v3671_v18 = vpack.c.bf16 %v152_v16, %v148_v15  ;;  %v149_v20 = vld [vmem:[#allocation6 + $0x60] sm:$0xff]  ;;  %v151_v23 = vld [vmem:[#allocation6 + $0x70] sm:$0xff]  ;;  %v154_v24 = vld [vmem:[#allocation6 + $0x88] sm:$0xff] }
  0x83   :  { %3670 = vmatpush1.bf16.msra.mxu1 %v3669_v13  ;;  %v3641_v22 = vpack.c.bf16 %v149_v20, %v145_v19  ;;  %v158_v25 = vld [vmem:[#allocation6 + $0xa8] sm:$0xff]  ;;  %3640 = vmatprep.subr.bf16.mxu0 %v3639_v17  ;;  %v3673_v26 = vpack.c.bf16 %v151_v23, %v147_v21  ;;  %v156_v28 = vld [vmem:[#allocation6 + $0x98] sm:$0xff]  ;;  %v153_v30 = vld [vmem:[#allocation6 + $0x80] sm:$0xff]  ;;  %p5755_p3 = por %p5754_p2, %p5753_p1 }
  0x84   :  { %3672 = vmatprep.subr.bf16.mxu1 %v3671_v18  ;;  %v3643_v27 = vpack.c.bf16 %v158_v25, %v154_v24  ;;  %v160_v29 = vld [vmem:[#allocation6 + $0xb8] sm:$0xff]  ;;  %v157_v32 = vld [vmem:[#allocation6 + $0xa0] sm:$0xff]  ;;  %v155_v33 = vld [vmem:[#allocation6 + $0x90] sm:$0xff] }
  0x85   :  { %v3675_v31 = vpack.c.bf16 %v160_v29, %v156_v28  ;;  %v159_v34 = vld [vmem:[#allocation6 + $0xb0] sm:$0xff]  ;;  %v3645_v35 = vpack.c.bf16 %v157_v32, %v153_v30  ;;  %v162_v36 = vld [vmem:[#allocation6 + $0xc8] sm:$0xff]  ;;  %v164_v38 = vld [vmem:[#allocation6 + $0xd8] sm:$0xff]  ;;  %p5756_p4 = pnand %p5755_p3, %p5749_p0 }
  0x86   :  { %3642 = vmatpush1.bf16.msra.mxu0 %v3641_v22  ;;  %v166_v37 = vld [vmem:[#allocation6 + $0xe8] sm:$0xff]  ;;  %v3677_v39 = vpack.c.bf16 %v159_v34, %v155_v33  ;;  %v168_v41 = vld [vmem:[#allocation6 + $0xf8] sm:$0xff]  ;;  %v161_v42 = vld [vmem:[#allocation6 + $0xc0] sm:$0xff] }
  0x87   :  { %3674 = vmatpush1.bf16.msra.mxu1 %v3673_v26  ;;  %3644 = vmatprep.subr.bf16.mxu0 %v3643_v27  ;;  %v3647_v40 = vpack.c.bf16 %v166_v37, %v162_v36  ;;  %v165_v43 = vld [vmem:[#allocation6 + $0xe0] sm:$0xff]  ;;  %v3679_v44 = vpack.c.bf16 %v168_v41, %v164_v38  ;;  %v163_v45 = vld [vmem:[#allocation6 + $0xd0] sm:$0xff]  ;;  %v170_v47 = vld [vmem:[#allocation6 + $0x108] sm:$0xff] }
  0x88   :  { %3676 = vmatprep.subr.bf16.mxu1 %v3675_v31  ;;  %v167_v46 = vld [vmem:[#allocation6 + $0xf0] sm:$0xff]  ;;  %v174_v48 = vld [vmem:[#allocation6 + $0x128] sm:$0xff]  ;;  %v172_v49 = vld [vmem:[#allocation6 + $0x118] sm:$0xff]  ;;  %v3649_v51 = vpack.c.bf16 %v165_v43, %v161_v42 }
  0x89   :  { %v176_v50 = vld [vmem:[#allocation6 + $0x138] sm:$0xff]  ;;  %v3681_v52 = vpack.c.bf16 %v167_v46, %v163_v45  ;;  %v3651_v53 = vpack.c.bf16 %v174_v48, %v170_v47  ;;  %v169_v54 = vld [vmem:[#allocation6 + $0x100] sm:$0xff]  ;;  %v171_v56 = vld [vmem:[#allocation6 + $0x110] sm:$0xff] }
  0x8a   :  { %3646 = vmatpush1.bf16.msra.mxu0 %v3645_v35  ;;  %v173_v55 = vld [vmem:[#allocation6 + $0x120] sm:$0xff]  ;;  %v3683_v57 = vpack.c.bf16 %v176_v50, %v172_v49  ;;  %v175_v58 = vld [vmem:[#allocation6 + $0x130] sm:$0xff]  ;;  %v178_v59 = vld [vmem:[#allocation6 + $0x148] sm:$0xff] }
  0x8b   :  { %3678 = vmatpush1.bf16.msra.mxu1 %v3677_v39  ;;  %3648 = vmatprep.subr.bf16.mxu0 %v3647_v40  ;;  %v182_v60 = vld [vmem:[#allocation6 + $0x168] sm:$0xff]  ;;  %v180_v61 = vld [vmem:[#allocation6 + $0x158] sm:$0xff]  ;;  %v3653_v63 = vpack.c.bf16 %v173_v55, %v169_v54  ;;  %v3685_v1 = vpack.c.bf16 %v175_v58, %v171_v56  ;;  %v177_v3 = vld [vmem:[#allocation6 + $0x140] sm:$0xff] }
  0x8c   :  { %3680 = vmatprep.subr.bf16.mxu1 %v3679_v44  ;;  %v184_v62 = vld [vmem:[#allocation6 + $0x178] sm:$0xff]  ;;  %v3655_v2 = vpack.c.bf16 %v182_v60, %v178_v59  ;;  %v181_v4 = vld [vmem:[#allocation6 + $0x160] sm:$0xff]  ;;  %v179_v5 = vld [vmem:[#allocation6 + $0x150] sm:$0xff] }
  0x8d   :  { %v3687_v6 = vpack.c.bf16 %v184_v62, %v180_v61  ;;  %v183_v7 = vld [vmem:[#allocation6 + $0x170] sm:$0xff]  ;;  %v186_v8 = vld [vmem:[#allocation6 + $0x188] sm:$0xff]  ;;  %v188_v10 = vld [vmem:[#allocation6 + $0x198] sm:$0xff]  ;;  %v3657_v12 = vpack.c.bf16 %v181_v4, %v177_v3 }
  0x8e   :  { %3650 = vmatpush1.bf16.msra.mxu0 %v3649_v51  ;;  %v190_v9 = vld [vmem:[#allocation6 + $0x1a8] sm:$0xff]  ;;  %v192_v11 = vld [vmem:[#allocation6 + $0x1b8] sm:$0xff]  ;;  %v3689_v13 = vpack.c.bf16 %v183_v7, %v179_v5  ;;  %v185_v15 = vld [vmem:[#allocation6 + $0x180] sm:$0xff] }
  0x8f   :  { %3682 = vmatpush1.bf16.msra.mxu1 %v3681_v52  ;;  %3652 = vmatprep.subr.bf16.mxu0 %v3651_v53  ;;  %v3659_v14 = vpack.c.bf16 %v190_v9, %v186_v8  ;;  %v189_v16 = vld [vmem:[#allocation6 + $0x1a0] sm:$0xff]  ;;  %v187_v17 = vld [vmem:[#allocation6 + $0x190] sm:$0xff]  ;;  %v3691_v18 = vpack.c.bf16 %v192_v11, %v188_v10  ;;  %v194_v20 = vld [vmem:[#allocation6 + $0x1c8] sm:$0xff] }
  0x90   :  { %3684 = vmatprep.subr.bf16.mxu1 %v3683_v57  ;;  %v191_v19 = vld [vmem:[#allocation6 + $0x1b0] sm:$0xff]  ;;  %v198_v21 = vld [vmem:[#allocation6 + $0x1e8] sm:$0xff]  ;;  %v196_v22 = vld [vmem:[#allocation6 + $0x1d8] sm:$0xff]  ;;  %v3661_v24 = vpack.c.bf16 %v189_v16, %v185_v15 }
  0x91   :  { %v200_v23 = vld [vmem:[#allocation6 + $0x1f8] sm:$0xff]  ;;  %v3693_v25 = vpack.c.bf16 %v191_v19, %v187_v17  ;;  %v3663_v26 = vpack.c.bf16 %v198_v21, %v194_v20  ;;  %v193_v27 = vld [vmem:[#allocation6 + $0x1c0] sm:$0xff]  ;;  %v195_v29 = vld [vmem:[#allocation6 + $0x1d0] sm:$0xff] }
  0x92   :  { %3654 = vmatpush1.bf16.msra.mxu0 %v3653_v63  ;;  %v197_v28 = vld [vmem:[#allocation6 + $0x1e0] sm:$0xff]  ;;  %v3695_v30 = vpack.c.bf16 %v200_v23, %v196_v22  ;;  %v199_v31 = vld [vmem:[#allocation6 + $0x1f0] sm:$0xff]  ;;  %v482_v32 = vld [vmem:[#allocation8 + $0x8] sm:$0xff] }
  0x93   :  { %3686 = vmatpush1.bf16.msra.mxu1 %v3685_v1  ;;  %3656 = vmatprep.subr.bf16.mxu0 %v3655_v2  ;;  %v486_v33 = vld [vmem:[#allocation8 + $0x28] sm:$0xff]  ;;  %v484_v34 = vld [vmem:[#allocation8 + $0x18] sm:$0xff]  ;;  %v3665_v36 = vpack.c.bf16 %v197_v28, %v193_v27  ;;  %v3697_v37 = vpack.c.bf16 %v199_v31, %v195_v29  ;;  %v481_v39 = vld [vmem:[#allocation8] sm:$0xff] }
  0x94   :  { %3688 = vmatprep.subr.bf16.mxu1 %v3687_v6  ;;  %v488_v35 = vld [vmem:[#allocation8 + $0x38] sm:$0xff]  ;;  %v5961_v38 = vpack.c.bf16 %v486_v33, %v482_v32  ;;  %v485_v40 = vld [vmem:[#allocation8 + $0x20] sm:$0xff]  ;;  %v483_v42 = vld [vmem:[#allocation8 + $0x10] sm:$0xff] }
  0x95   :  { %v5963_v41 = vpack.c.bf16 %v488_v35, %v484_v34  ;;  %v487_v43 = vld [vmem:[#allocation8 + $0x30] sm:$0xff]  ;;  %v490_v44 = vld [vmem:[#allocation8 + $0x48] sm:$0xff]  ;;  %v129_v46 = vld [vmem:[#allocation3] sm:$0xff]  ;;  %v5965_v47 = vpack.c.bf16 %v485_v40, %v481_v39 }
  0x96   :  { %3658 = vmatpush1.bf16.msra.mxu0 %v3657_v12  ;;  %7281 = vst [vmem:[#allocation21_spill] sm:$0xff] %v5961_v38  ;;  %v494_v45 = vld [vmem:[#allocation8 + $0x68] sm:$0xff]  ;;  %v492_v48 = vld [vmem:[#allocation8 + $0x58] sm:$0xff]  ;;  %v5968_v50 = vpack.c.bf16 %v487_v43, %v483_v42  ;;  %v489_v51 = vld [vmem:[#allocation8 + $0x40] sm:$0xff] }
  0x97   :  { %3690 = vmatpush1.bf16.msra.mxu1 %v3689_v13  ;;  %3660 = vmatprep.subr.bf16.mxu0 %v3659_v14  ;;  %7282 = vst [vmem:[#allocation22_spill] sm:$0xff] %v5963_v41  ;;  %v496_v49 = vld [vmem:[#allocation8 + $0x78] sm:$0xff]  ;;  %v493_v52 = vld [vmem:[#allocation8 + $0x60] sm:$0xff]  ;;  %v5971_v53 = vpack.c.bf16 %v494_v45, %v490_v44  ;;  %v491_v54 = vld [vmem:[#allocation8 + $0x50] sm:$0xff] }
  0x98   :  { %3692 = vmatprep.subr.bf16.mxu1 %v3691_v18  ;;  %v495_v55 = vld [vmem:[#allocation8 + $0x70] sm:$0xff]  ;;  %v5973_v56 = vpack.c.bf16 %v496_v49, %v492_v48  ;;  %v498_v57 = vld [vmem:[#allocation8 + $0x88] sm:$0xff]  ;;  %v5976_v60 = vpack.c.bf16 %v493_v52, %v489_v51  ;;  %v500_v61 = vld [vmem:[#allocation8 + $0x98] sm:$0xff] }
  0x99   :  { %v502_v58 = vld [vmem:[#allocation8 + $0xa8] sm:$0xff]  ;;  %v504_v62 = vld [vmem:[#allocation8 + $0xb8] sm:$0xff]  ;;  %v5980_v63 = vpack.c.bf16 %v495_v55, %v491_v54  ;;  %v497_v1 = vld [vmem:[#allocation8 + $0x80] sm:$0xff] }
  0x9a   :  { %3662 = vmatpush1.bf16.msra.mxu0 %v3661_v24  ;;  %v130_v59 = vld [vmem:[#allocation3 + $0x8] sm:$0xff]  ;;  %v501_v2 = vld [vmem:[#allocation8 + $0xa0] sm:$0xff]  ;;  %v5984_v3 = vpack.c.bf16 %v502_v58, %v498_v57  ;;  %v499_v4 = vld [vmem:[#allocation8 + $0x90] sm:$0xff]  ;;  %v5987_v6 = vpack.c.bf16 %v504_v62, %v500_v61 }
  0x9b   :  { %3694 = vmatpush1.bf16.msra.mxu1 %v3693_v25  ;;  %3664 = vmatprep.subr.bf16.mxu0 %v3663_v26  ;;  %v503_v5 = vld [vmem:[#allocation8 + $0xb0] sm:$0xff]  ;;  %v506_v7 = vld [vmem:[#allocation8 + $0xc8] sm:$0xff]  ;;  %v5990_v10 = vpack.c.bf16 %v501_v2, %v497_v1  ;;  %v508_v11 = vld [vmem:[#allocation8 + $0xd8] sm:$0xff] }
  0x9c   :  { %3696 = vmatprep.subr.bf16.mxu1 %v3695_v30  ;;  %v510_v8 = vld [vmem:[#allocation8 + $0xe8] sm:$0xff]  ;;  %v131_v9 = vld [vmem:[#allocation3 + $0x10] sm:$0xff]  ;;  %v512_v12 = vld [vmem:[#allocation8 + $0xf8] sm:$0xff]  ;;  %v5994_v13 = vpack.c.bf16 %v503_v5, %v499_v4 }
  0x9d   :  { %v505_v14 = vld [vmem:[#allocation8 + $0xc0] sm:$0xff]  ;;  %v5998_v16 = vpack.c.bf16 %v510_v8, %v506_v7  ;;  %v507_v17 = vld [vmem:[#allocation8 + $0xd0] sm:$0xff]  ;;  %v6001_v19 = vpack.c.bf16 %v512_v12, %v508_v11  ;;  %v514_v20 = vld [vmem:[#allocation8 + $0x108] sm:$0xff] }
  0x9e   :  { %3666 = vmatpush1.bf16.msra.mxu0 %v3665_v36  ;;  %v509_v15 = vld [vmem:[#allocation8 + $0xe0] sm:$0xff]  ;;  %v511_v18 = vld [vmem:[#allocation8 + $0xf0] sm:$0xff]  ;;  %v518_v21 = vld [vmem:[#allocation8 + $0x128] sm:$0xff] }
  0x9f   :  { %3698 = vmatpush1.bf16.msra.mxu1 %v3697_v37  ;;  %3700 = vmatprep.subr.bf16.mxu0 %v5961_v38  ;;  %v132_v22 = vld [vmem:[#allocation3 + $0x18] sm:$0xff]  ;;  %v6004_v23 = vpack.c.bf16 %v509_v15, %v505_v14  ;;  %v6008_v26 = vpack.c.bf16 %v511_v18, %v507_v17  ;;  %v513_v27 = vld [vmem:[#allocation8 + $0x100] sm:$0xff]  ;;  %v6012_v29 = vpack.c.bf16 %v518_v21, %v514_v20  ;;  %v515_v30 = vld [vmem:[#allocation8 + $0x110] sm:$0xff] }
  0xa0   :  { %3732 = vmatprep.subr.bf16.mxu1 %v5963_v41  ;;  %v516_v24 = vld [vmem:[#allocation8 + $0x118] sm:$0xff]  ;;  %v517_v28 = vld [vmem:[#allocation8 + $0x120] sm:$0xff]  ;;  %v519_v31 = vld [vmem:[#allocation8 + $0x130] sm:$0xff] }
  0xa1   :  { %288 = vmatmul.mubr.f32.vlgmr.msra.gmra.mrb[0].mxu0 %v129_v46  ;;  %v520_v25 = vld [vmem:[#allocation8 + $0x138] sm:$0xff]  ;;  %v522_v33 = vld [vmem:[#allocation8 + $0x148] sm:$0xff]  ;;  %v133_v35 = vld [vmem:[#allocation3 + $0x20] sm:$0xff]  ;;  %v6018_v36 = vpack.c.bf16 %v517_v28, %v513_v27  ;;  %v6022_v40 = vpack.c.bf16 %v519_v31, %v515_v30 }
  0xa2   :  { %401 = vmatmul.mubr.f32.vlgmr.msra.gmra.mrb[0].mxu1 %v129_v46  ;;  %3702 = vmatpush1.bf16.msra.mxu0 %v5965_v47  ;;  %v6015_v32 = vpack.c.bf16 %v520_v25, %v516_v24  ;;  %v526_v34 = vld [vmem:[#allocation8 + $0x168] sm:$0xff]  ;;  %v524_v37 = vld [vmem:[#allocation8 + $0x158] sm:$0xff]  ;;  %v521_v42 = vld [vmem:[#allocation8 + $0x140] sm:$0xff] }
  0xa3   :  { %3734 = vmatpush1.bf16.msra.mxu1 %v5968_v50  ;;  %293 = vmatprep.mubr.f32.mxu0 %v7145_v0  ;;  %v528_v39 = vld [vmem:[#allocation8 + $0x178] sm:$0xff]  ;;  %v525_v43 = vld [vmem:[#allocation8 + $0x160] sm:$0xff]  ;;  %v6026_v44 = vpack.c.bf16 %v526_v34, %v522_v33  ;;  %v523_v45 = vld [vmem:[#allocation8 + $0x150] sm:$0xff] }
  0xa4   :  { %406 = vmatprep.mubr.f32.mxu1 %v7145_v0  ;;  %3704 = vmatprep.subr.bf16.mxu0 %v5971_v53  ;;  %v527_v46 = vld [vmem:[#allocation8 + $0x170] sm:$0xff]  ;;  %v6029_v48 = vpack.c.bf16 %v528_v39, %v524_v37  ;;  %v530_v49 = vld [vmem:[#allocation8 + $0x188] sm:$0xff]  ;;  %v6032_v54 = vpack.c.bf16 %v525_v43, %v521_v42  ;;  %v532_v55 = vld [vmem:[#allocation8 + $0x198] sm:$0xff] }
  0xa5   :  { %294 = vmatmul.mubr.f32.gmra.mrb[2].mxu0 %v130_v59  ;;  %3736 = vmatprep.subr.bf16.mxu1 %v5973_v56  ;;  %v534_v51 = vld [vmem:[#allocation8 + $0x1a8] sm:$0xff]  ;;  %v536_v57 = vld [vmem:[#allocation8 + $0x1b8] sm:$0xff]  ;;  %v6036_v58 = vpack.c.bf16 %v527_v46, %v523_v45  ;;  %v533_v61 = vld [vmem:[#allocation8 + $0x1a0] sm:$0xff] }
  0xa6   :  { %407 = vmatmul.mubr.f32.gmra.mrb[2].mxu1 %v130_v59  ;;  %3706 = vmatpush1.bf16.msra.mxu0 %v5976_v60  ;;  %v134_v52 = vld [vmem:[#allocation3 + $0x28] sm:$0xff]  ;;  %v529_v59 = vld [vmem:[#allocation8 + $0x180] sm:$0xff]  ;;  %v6040_v62 = vpack.c.bf16 %v534_v51, %v530_v49  ;;  %v531_v1 = vld [vmem:[#allocation8 + $0x190] sm:$0xff]  ;;  %v6043_v4 = vpack.c.bf16 %v536_v57, %v532_v55 }
  0xa7   :  { %3738 = vmatpush1.bf16.msra.mxu1 %v5980_v63  ;;  %299 = vmatprep.mubr.f32.mxu0 %v7145_v0  ;;  %v535_v2 = vld [vmem:[#allocation8 + $0x1b0] sm:$0xff]  ;;  %v538_v5 = vld [vmem:[#allocation8 + $0x1c8] sm:$0xff]  ;;  %v540_v11 = vld [vmem:[#allocation8 + $0x1d8] sm:$0xff] }
  0xa8   :  { %412 = vmatprep.mubr.f32.mxu1 %v7145_v0  ;;  %3708 = vmatprep.subr.bf16.mxu0 %v5984_v3  ;;  %v542_v7 = vld [vmem:[#allocation8 + $0x1e8] sm:$0xff]  ;;  %v135_v8 = vld [vmem:[#allocation3 + $0x30] sm:$0xff]  ;;  %v544_v12 = vld [vmem:[#allocation8 + $0x1f8] sm:$0xff]  ;;  %v6050_v14 = vpack.c.bf16 %v535_v2, %v531_v1 }
  0xa9   :  { %300 = vmatmul.mubr.f32.gmra.mrb[4].mxu0 %v131_v9  ;;  %3740 = vmatprep.subr.bf16.mxu1 %v5987_v6  ;;  %v537_v15 = vld [vmem:[#allocation8 + $0x1c0] sm:$0xff]  ;;  %v6054_v18 = vpack.c.bf16 %v542_v7, %v538_v5  ;;  %v539_v20 = vld [vmem:[#allocation8 + $0x1d0] sm:$0xff]  ;;  %v546_v24 = vld [vmem:[#allocation9 + $0x8] sm:$0xff] }
  0xaa   :  { %413 = vmatmul.mubr.f32.gmra.mrb[4].mxu1 %v131_v9  ;;  %3710 = vmatpush1.bf16.msra.mxu0 %v5990_v10  ;;  %v6046_v9 = vpack.c.bf16 %v533_v61, %v529_v59  ;;  %v541_v17 = vld [vmem:[#allocation8 + $0x1e0] sm:$0xff]  ;;  %v543_v21 = vld [vmem:[#allocation8 + $0x1f0] sm:$0xff]  ;;  %v550_v25 = vld [vmem:[#allocation9 + $0x28] sm:$0xff] }
  0xab   :  { %3742 = vmatpush1.bf16.msra.mxu1 %v5994_v13  ;;  %305 = vmatprep.mubr.f32.mxu0 %v7145_v0  ;;  %v136_v27 = vld [vmem:[#allocation3 + $0x38] sm:$0xff]  ;;  %v6060_v28 = vpack.c.bf16 %v541_v17, %v537_v15  ;;  %v6064_v33 = vpack.c.bf16 %v543_v21, %v539_v20  ;;  %v545_v34 = vld [vmem:[#allocation9] sm:$0xff]  ;;  %v547_v37 = vld [vmem:[#allocation9 + $0x10] sm:$0xff]  ;;  %v6068_v39 = vpack.c.bf16 %v550_v25, %v546_v24 }
  0xac   :  { %418 = vmatprep.mubr.f32.mxu1 %v7145_v0  ;;  %3712 = vmatprep.subr.bf16.mxu0 %v5998_v16  ;;  %v548_v30 = vld [vmem:[#allocation9 + $0x18] sm:$0xff]  ;;  %v551_v42 = vld [vmem:[#allocation9 + $0x30] sm:$0xff]  ;;  %v554_v43 = vld [vmem:[#allocation9 + $0x48] sm:$0xff] }
  0xad   :  { %306 = vmatmul.mubr.f32.gmra.mrb[6].mxu0 %v132_v22  ;;  %3744 = vmatprep.subr.bf16.mxu1 %v6001_v19  ;;  %v552_v31 = vld [vmem:[#allocation9 + $0x38] sm:$0xff]  ;;  %v558_v45 = vld [vmem:[#allocation9 + $0x68] sm:$0xff]  ;;  %v6081_v57 = vpack.c.bf16 %v551_v42, %v547_v37  ;;  %v553_v61 = vld [vmem:[#allocation9 + $0x40] sm:$0xff] }
  0xae   :  { %419 = vmatmul.mubr.f32.gmra.mrb[6].mxu1 %v132_v22  ;;  %3714 = vmatpush1.bf16.msra.mxu0 %v6004_v23  ;;  %v6057_v22 = vpack.c.bf16 %v544_v12, %v540_v11  ;;  %v6071_v46 = vpack.c.bf16 %v552_v31, %v548_v30  ;;  %v556_v49 = vld [vmem:[#allocation9 + $0x58] sm:$0xff]  ;;  %v6083_v59 = vpack.c.bf16 %v558_v45, %v554_v43  ;;  %v557_v1 = vld [vmem:[#allocation9 + $0x60] sm:$0xff]  ;;  %v555_v2 = vld [vmem:[#allocation9 + $0x50] sm:$0xff] }
  0xaf   :  { %3746 = vmatpush1.bf16.msra.mxu1 %v6008_v26  ;;  %311 = vmatprep.mubr.f32.mxu0 %v7145_v0  ;;  %v560_v51 = vld [vmem:[#allocation9 + $0x78] sm:$0xff]  ;;  %v559_v7 = vld [vmem:[#allocation9 + $0x70] sm:$0xff]  ;;  %v566_v11 = vld [vmem:[#allocation9 + $0xa8] sm:$0xff]  ;;  %v6091_v17 = vpack.c.bf16 %v557_v1, %v553_v61 }
  0xb0   :  { %424 = vmatprep.mubr.f32.mxu1 %v7145_v0  ;;  %3716 = vmatprep.subr.bf16.mxu0 %v6012_v29  ;;  %v6087_v5 = vpack.c.bf16 %v560_v51, %v556_v49  ;;  %v564_v12 = vld [vmem:[#allocation9 + $0x98] sm:$0xff]  ;;  %v6095_v20 = vpack.c.bf16 %v559_v7, %v555_v2  ;;  %v561_v24 = vld [vmem:[#allocation9 + $0x80] sm:$0xff]  ;;  %v567_v31 = vld [vmem:[#allocation9 + $0xb0] sm:$0xff] }
  0xb1   :  { %312 = vmatmul.mubr.f32.gmra.mrb[8].mxu0 %v133_v35  ;;  %3748 = vmatprep.subr.bf16.mxu1 %v6015_v32  ;;  %v568_v15 = vld [vmem:[#allocation9 + $0xb8] sm:$0xff]  ;;  %v565_v25 = vld [vmem:[#allocation9 + $0xa0] sm:$0xff]  ;;  %v571_v61 = vld [vmem:[#allocation9 + $0xd0] sm:$0xff] }
  0xb2   :  { %425 = vmatmul.mubr.f32.gmra.mrb[8].mxu1 %v133_v35  ;;  %3718 = vmatpush1.bf16.msra.mxu0 %v6018_v36  ;;  %v549_v35 = vld [vmem:[#allocation9 + $0x20] sm:$0xff]  ;;  %v6100_v30 = vpack.c.bf16 %v568_v15, %v564_v12  ;;  %v572_v37 = vld [vmem:[#allocation9 + $0xd8] sm:$0xff]  ;;  %v6103_v43 = vpack.c.bf16 %v565_v25, %v561_v24  ;;  %v575_v2 = vld [vmem:[#allocation9 + $0xf0] sm:$0xff] }
  0xb3   :  { %3750 = vmatpush1.bf16.msra.mxu1 %v6022_v40  ;;  %317 = vmatprep.mubr.f32.mxu0 %v7145_v0  ;;  %v6077_v55 = vpack.c.bf16 %v549_v35, %v545_v34  ;;  %v570_v34 = vld [vmem:[#allocation9 + $0xc8] sm:$0xff]  ;;  %v576_v42 = vld [vmem:[#allocation9 + $0xf8] sm:$0xff]  ;;  %v569_v51 = vld [vmem:[#allocation9 + $0xc0] sm:$0xff]  ;;  %v6119_v24 = vpack.c.bf16 %v575_v2, %v571_v61 }
  0xb4   :  { %430 = vmatprep.mubr.f32.mxu1 %v7145_v0  ;;  %3720 = vmatprep.subr.bf16.mxu0 %v6026_v44  ;;  %7283 = vst [vmem:[#allocation23_spill] sm:$0xff] %v6100_v30  ;;  %v574_v35 = vld [vmem:[#allocation9 + $0xe8] sm:$0xff]  ;;  %7284 = vst [vmem:[#allocation24_spill] sm:$0xff] %v6103_v43  ;;  %v6112_v1 = vpack.c.bf16 %v576_v42, %v572_v37  ;;  %v584_v12 = vld [vmem:[#allocation9 + $0x138] sm:$0xff] }
  0xb5   :  { %318 = vmatmul.mubr.f32.gmra.mrb[10].mxu0 %v134_v52  ;;  %3752 = vmatprep.subr.bf16.mxu1 %v6029_v48  ;;  %v6109_v49 = vpack.c.bf16 %v574_v35, %v570_v34  ;;  %v578_v7 = vld [vmem:[#allocation9 + $0x108] sm:$0xff]  ;;  %7289 = vst [vmem:[#allocation29_spill] sm:$0xff] %v6119_v24  ;;  %v579_v35 = vld [vmem:[#allocation9 + $0x110] sm:$0xff]  ;;  %v588_v2 = vld [vmem:[#allocation9 + $0x158] sm:$0xff] }
  0xb6   :  { %431 = vmatmul.mubr.f32.gmra.mrb[10].mxu1 %v134_v52  ;;  %3722 = vmatpush1.bf16.msra.mxu0 %v6032_v54  ;;  %v695_v52 = vld [vmem:[%s7140_s6] sm:$0xff]  ;;  %7287 = vst [vmem:[#allocation27_spill] sm:$0xff] %v6112_v1  ;;  %v583_v37 = vld [vmem:[#allocation9 + $0x130] sm:$0xff]  ;;  %v590_v61 = vld [vmem:[#allocation9 + $0x168] sm:$0xff] }
  0xb7   :  { %3754 = vmatpush1.bf16.msra.mxu1 %v6036_v58  ;;  %323 = vmatprep.mubr.f32.mxu0 %v7145_v0  ;;  %7286 = vst [vmem:[#allocation26_spill] sm:$0xff] %v6109_v49 }
  0xb8   :  { %436 = vmatprep.mubr.f32.mxu1 %v7145_v0  ;;  %3724 = vmatprep.subr.bf16.mxu0 %v6040_v62 }
  0xb9   :  { %324 = vmatmul.mubr.f32.gmra.mrb[12].mxu0 %v135_v8  ;;  %3756 = vmatprep.subr.bf16.mxu1 %v6043_v4 }
  0xba   :  { %437 = vmatmul.mubr.f32.gmra.mrb[12].mxu1 %v135_v8  ;;  %3726 = vmatpush1.bf16.msra.mxu0 %v6046_v9  ;;  %v562_v8 = vld [vmem:[#allocation9 + $0x88] sm:$0xff] }
  0xbb   :  { %3758 = vmatpush1.bf16.msra.mxu1 %v6050_v14  ;;  %329 = vmatprep.mubr.f32.mxu0 %v7145_v0  ;;  %v6097_v21 = vpack.c.bf16 %v566_v11, %v562_v8  ;;  %v582_v8 = vld [vmem:[#allocation9 + $0x128] sm:$0xff]  ;;  %v580_v11 = vld [vmem:[#allocation9 + $0x118] sm:$0xff] }
  0xbc   :  { %442 = vmatprep.mubr.f32.mxu1 %v7145_v0  ;;  %3728 = vmatprep.subr.bf16.mxu0 %v6054_v18  ;;  %v6121_v25 = vpack.c.bf16 %v582_v8, %v578_v7  ;;  %v6124_v34 = vpack.c.bf16 %v584_v12, %v580_v11  ;;  %v592_v8 = vld [vmem:[#allocation9 + $0x178] sm:$0xff]  ;;  %v585_v11 = vld [vmem:[#allocation9 + $0x140] sm:$0xff] }
  0xbd   :  { %330 = vmatmul.mubr.f32.gmra.mrb[14].mxu0 %v136_v27  ;;  %3760 = vmatprep.subr.bf16.mxu1 %v6057_v22  ;;  %v589_v12 = vld [vmem:[#allocation9 + $0x160] sm:$0xff] }
  0xbe   :  { %443 = vmatmul.mubr.f32.gmra.mrb[14].mxu1 %v136_v27  ;;  %3730 = vmatpush1.bf16.msra.mxu0 %v6060_v28  ;;  %v563_v27 = vld [vmem:[#allocation9 + $0x90] sm:$0xff]  ;;  %7290 = vst [vmem:[#allocation30_spill] sm:$0xff] %v6121_v25  ;;  %7291 = vst [vmem:[#allocation31_spill] sm:$0xff] %v6124_v34 }
  0xbf   :  { %3762 = vmatpush1.bf16.msra.mxu1 %v6064_v33  ;;  %769 = vmatprep.mubr.f32.mxu0 %v7145_v0  ;;  %v6107_v45 = vpack.c.bf16 %v567_v31, %v563_v27  ;;  %v577_v27 = vld [vmem:[#allocation9 + $0x100] sm:$0xff] }
  0xc0   :  { %840 = vmatprep.mubr.f32.mxu1 %v7145_v0  ;;  %3764 = vmatprep.subr.bf16.mxu0 %v6068_v39  ;;  %v581_v31 = vld [vmem:[#allocation9 + $0x120] sm:$0xff] }
  0xc1   :  { %770 = vmatmul.mubr.f32.vlgmr.msra.gmra.mrb[0].mxu0 %v695_v52  ;;  %3828 = vmatprep.subr.bf16.mxu1 %v6071_v46  ;;  %7285 = vst [vmem:[#allocation25_spill] sm:$0xff] %v6107_v45  ;;  %v6127_v42 = vpack.c.bf16 %v581_v31, %v577_v27  ;;  %v6138_v27 = vpack.c.bf16 %v592_v8, %v588_v2  ;;  %v600_v2 = vld [vmem:[#allocation9 + $0x1b8] sm:$0xff]  ;;  %v593_v8 = vld [vmem:[#allocation9 + $0x180] sm:$0xff] }
  0xc2   :  { %841 = vmatmul.mubr.f32.vlgmr.msra.gmra.mrb[0].mxu1 %v695_v52  ;;  %3766 = vmatpush1.bf16.msra.mxu0 %v6077_v55  ;;  %v573_v52 = vld [vmem:[#allocation9 + $0xe0] sm:$0xff]  ;;  %v6140_v31 = vpack.c.bf16 %v589_v12, %v585_v11 }
  0xc3   :  { %3830 = vmatpush1.bf16.msra.mxu1 %v6081_v57  ;;  %3768 = vmatprep.subr.bf16.mxu0 %v6083_v59  ;;  %v6115_v15 = vpack.c.bf16 %v573_v52, %v569_v51  ;;  %7292 = vst [vmem:[#allocation32_spill] sm:$0xff] %v6127_v42  ;;  %v6131_v51 = vpack.c.bf16 %v583_v37, %v579_v35  ;;  %v586_v52 = vld [vmem:[#allocation9 + $0x148] sm:$0xff]  ;;  %7295 = vst [vmem:[#allocation35_spill] sm:$0xff] %v6138_v27  ;;  %v587_v35 = vld [vmem:[#allocation9 + $0x150] sm:$0xff] }
  0xc4   :  { %3832 = vmatprep.subr.bf16.mxu1 %v6087_v5  ;;  %v6136_v7 = vpack.c.bf16 %v590_v61, %v586_v52  ;;  %7296 = vst [vmem:[#allocation36_spill] sm:$0xff] %v6140_v31  ;;  %v591_v37 = vld [vmem:[#allocation9 + $0x170] sm:$0xff]  ;;  %v598_v52 = vld [vmem:[#allocation9 + $0x1a8] sm:$0xff]  ;;  %v596_v61 = vld [vmem:[#allocation9 + $0x198] sm:$0xff] }
  0xc5   :  { %7288 = vst [vmem:[#allocation28_spill] sm:$0xff] %v6115_v15  ;;  %7293 = vst [vmem:[#allocation33_spill] sm:$0xff] %v6131_v51  ;;  %v6143_v0 = vpack.c.bf16 %v591_v37, %v587_v35  ;;  %v597_v11 = vld [vmem:[#allocation9 + $0x1a0] sm:$0xff]  ;;  %v6150_v12 = vpack.c.bf16 %v600_v2, %v596_v61  ;;  %v595_v35 = vld [vmem:[#allocation9 + $0x190] sm:$0xff] }
  0xc6   :  { %3770 = vmatpush1.bf16.msra.mxu0 %v6091_v17  ;;  %7294 = vst [vmem:[#allocation34_spill] sm:$0xff] %v6136_v7  ;;  %v599_v37 = vld [vmem:[#allocation9 + $0x1b0] sm:$0xff]  ;;  %v608_v61 = vld [vmem:[#allocation9 + $0x1f8] sm:$0xff]  ;;  %v601_v2 = vld [vmem:[#allocation9 + $0x1c0] sm:$0xff] }
  0xc7   :  { %3834 = vmatpush1.bf16.msra.mxu1 %v6095_v20  ;;  %3772 = vmatprep.subr.bf16.mxu0 %v6097_v21  ;;  %7297 = vst [vmem:[#allocation37_spill] sm:$0xff] %v6143_v0  ;;  %7299 = vst [vmem:[#allocation39_spill] sm:$0xff] %v6150_v12 }
  0xc8   :  { %3836 = vmatprep.subr.bf16.mxu1 %v6100_v30 }
  0xca   :  { %3774 = vmatpush1.bf16.msra.mxu0 %v6103_v43 }
  0xcb   :  { %3838 = vmatpush1.bf16.msra.mxu1 %v6107_v45  ;;  %3776 = vmatprep.subr.bf16.mxu0 %v6109_v49 }
  0xcc   :  { %3840 = vmatprep.subr.bf16.mxu1 %v6112_v1 }
  0xce   :  { %3778 = vmatpush1.bf16.msra.mxu0 %v6115_v15 }
  0xcf   :  { %3842 = vmatpush1.bf16.msra.mxu1 %v6119_v24  ;;  %3780 = vmatprep.subr.bf16.mxu0 %v6121_v25  ;;  %v664_v24 = vld [vmem:[#allocation9 + $0x3b8] sm:$0xff] }
  0xd0   :  { %3844 = vmatprep.subr.bf16.mxu1 %v6124_v34  ;;  %v6152_v34 = vpack.c.bf16 %v597_v11, %v593_v8  ;;  %v605_v8 = vld [vmem:[#allocation9 + $0x1e0] sm:$0xff] }
  0xd2   :  { %3782 = vmatpush1.bf16.msra.mxu0 %v6127_v42  ;;  %7300 = vst [vmem:[#allocation40_spill] sm:$0xff] %v6152_v34 }
  0xd3   :  { %3846 = vmatpush1.bf16.msra.mxu1 %v6131_v51  ;;  %3784 = vmatprep.subr.bf16.mxu0 %v6136_v7  ;;  %v594_v51 = vld [vmem:[#allocation9 + $0x188] sm:$0xff]  ;;  %v6164_v7 = vpack.c.bf16 %v605_v8, %v601_v2  ;;  %v613_v2 = vld [vmem:[#allocation9 + $0x220] sm:$0xff] }
  0xd4   :  { %3848 = vmatprep.subr.bf16.mxu1 %v6138_v27  ;;  %v6148_v42 = vpack.c.bf16 %v598_v52, %v594_v51  ;;  %v6155_v27 = vpack.c.bf16 %v599_v37, %v595_v35  ;;  %v606_v51 = vld [vmem:[#allocation9 + $0x1e8] sm:$0xff]  ;;  %v604_v52 = vld [vmem:[#allocation9 + $0x1d8] sm:$0xff]  ;;  %v603_v35 = vld [vmem:[#allocation9 + $0x1d0] sm:$0xff] }
  0xd5   :  { %v6162_v11 = vpack.c.bf16 %v608_v61, %v604_v52  ;;  %7304 = vst [vmem:[#allocation44_spill] sm:$0xff] %v6164_v7  ;;  %v607_v37 = vld [vmem:[#allocation9 + $0x1f0] sm:$0xff]  ;;  %v616_v52 = vld [vmem:[#allocation9 + $0x238] sm:$0xff]  ;;  %v609_v61 = vld [vmem:[#allocation9 + $0x200] sm:$0xff] }
  0xd6   :  { %3786 = vmatpush1.bf16.msra.mxu0 %v6140_v31  ;;  %7298 = vst [vmem:[#allocation38_spill] sm:$0xff] %v6148_v42  ;;  %7301 = vst [vmem:[#allocation41_spill] sm:$0xff] %v6155_v27 }
  0xd7   :  { %3850 = vmatpush1.bf16.msra.mxu1 %v6143_v0  ;;  %3788 = vmatprep.subr.bf16.mxu0 %v6148_v42  ;;  %v602_v0 = vld [vmem:[#allocation9 + $0x1c8] sm:$0xff]  ;;  %7303 = vst [vmem:[#allocation43_spill] sm:$0xff] %v6162_v11  ;;  %v6176_v42 = vpack.c.bf16 %v613_v2, %v609_v61  ;;  %v617_v61 = vld [vmem:[#allocation9 + $0x240] sm:$0xff] }
  0xd8   :  { %3852 = vmatprep.subr.bf16.mxu1 %v6150_v12  ;;  %v6160_v31 = vpack.c.bf16 %v606_v51, %v602_v0  ;;  %v6167_v12 = vpack.c.bf16 %v607_v37, %v603_v35  ;;  %v614_v0 = vld [vmem:[#allocation9 + $0x228] sm:$0xff]  ;;  %v612_v51 = vld [vmem:[#allocation9 + $0x218] sm:$0xff]  ;;  %v611_v35 = vld [vmem:[#allocation9 + $0x210] sm:$0xff] }
  0xd9   :  { %v6174_v8 = vpack.c.bf16 %v616_v52, %v612_v51  ;;  %7308 = vst [vmem:[#allocation48_spill] sm:$0xff] %v6176_v42  ;;  %v615_v37 = vld [vmem:[#allocation9 + $0x230] sm:$0xff]  ;;  %v620_v51 = vld [vmem:[#allocation9 + $0x258] sm:$0xff] }
  0xda   :  { %3790 = vmatpush1.bf16.msra.mxu0 %v6152_v34  ;;  %7302 = vst [vmem:[#allocation42_spill] sm:$0xff] %v6160_v31  ;;  %7305 = vst [vmem:[#allocation45_spill] sm:$0xff] %v6167_v12  ;;  %v624_v52 = vld [vmem:[#allocation9 + $0x278] sm:$0xff] }
  0xdb   :  { %3854 = vmatpush1.bf16.msra.mxu1 %v6155_v27  ;;  %3792 = vmatprep.subr.bf16.mxu0 %v6160_v31  ;;  %v610_v27 = vld [vmem:[#allocation9 + $0x208] sm:$0xff]  ;;  %7307 = vst [vmem:[#allocation47_spill] sm:$0xff] %v6174_v8  ;;  %v6186_v2 = vpack.c.bf16 %v624_v52, %v620_v51  ;;  %v619_v31 = vld [vmem:[#allocation9 + $0x250] sm:$0xff]  ;;  %v632_v51 = vld [vmem:[#allocation9 + $0x2b8] sm:$0xff] }
  0xdc   :  { %3856 = vmatprep.subr.bf16.mxu1 %v6162_v11  ;;  %v6172_v34 = vpack.c.bf16 %v614_v0, %v610_v27  ;;  %v6179_v11 = vpack.c.bf16 %v615_v37, %v611_v35  ;;  %v622_v27 = vld [vmem:[#allocation9 + $0x268] sm:$0xff]  ;;  %v625_v52 = vld [vmem:[#allocation9 + $0x280] sm:$0xff] }
  0xdd   :  { %7311 = vst [vmem:[#allocation51_spill] sm:$0xff] %v6186_v2 }
  0xde   :  { %3794 = vmatpush1.bf16.msra.mxu0 %v6164_v7  ;;  %7306 = vst [vmem:[#allocation46_spill] sm:$0xff] %v6172_v34  ;;  %7309 = vst [vmem:[#allocation49_spill] sm:$0xff] %v6179_v11  ;;  %v621_v7 = vld [vmem:[#allocation9 + $0x260] sm:$0xff] }
  0xdf   :  { %3858 = vmatpush1.bf16.msra.mxu1 %v6167_v12  ;;  %3796 = vmatprep.subr.bf16.mxu0 %v6172_v34  ;;  %v618_v12 = vld [vmem:[#allocation9 + $0x248] sm:$0xff]  ;;  %v623_v34 = vld [vmem:[#allocation9 + $0x270] sm:$0xff]  ;;  %v6189_v35 = vpack.c.bf16 %v621_v7, %v617_v61 }
  0xe0   :  { %3860 = vmatprep.subr.bf16.mxu1 %v6174_v8  ;;  %v6184_v0 = vpack.c.bf16 %v622_v27, %v618_v12  ;;  %v6191_v37 = vpack.c.bf16 %v623_v34, %v619_v31  ;;  %v628_v12 = vld [vmem:[#allocation9 + $0x298] sm:$0xff]  ;;  %v629_v8 = vld [vmem:[#allocation9 + $0x2a0] sm:$0xff]  ;;  %v627_v34 = vld [vmem:[#allocation9 + $0x290] sm:$0xff] }
  0xe1   :  { %7312 = vst [vmem:[#allocation52_spill] sm:$0xff] %v6189_v35  ;;  %v6198_v25 = vpack.c.bf16 %v632_v51, %v628_v12  ;;  %v6200_v7 = vpack.c.bf16 %v629_v8, %v625_v52  ;;  %v631_v31 = vld [vmem:[#allocation9 + $0x2b0] sm:$0xff]  ;;  %v633_v8 = vld [vmem:[#allocation9 + $0x2c0] sm:$0xff] }
  0xe2   :  { %3798 = vmatpush1.bf16.msra.mxu0 %v6176_v42  ;;  %7310 = vst [vmem:[#allocation50_spill] sm:$0xff] %v6184_v0  ;;  %7313 = vst [vmem:[#allocation53_spill] sm:$0xff] %v6191_v37  ;;  %v626_v42 = vld [vmem:[#allocation9 + $0x288] sm:$0xff]  ;;  %v6203_v61 = vpack.c.bf16 %v631_v31, %v627_v34  ;;  %v637_v12 = vld [vmem:[#allocation9 + $0x2e0] sm:$0xff] }
  0xe3   :  { %3862 = vmatpush1.bf16.msra.mxu1 %v6179_v11  ;;  %3800 = vmatprep.subr.bf16.mxu0 %v6184_v0  ;;  %v630_v11 = vld [vmem:[#allocation9 + $0x2a8] sm:$0xff]  ;;  %7315 = vst [vmem:[#allocation55_spill] sm:$0xff] %v6198_v25  ;;  %7316 = vst [vmem:[#allocation56_spill] sm:$0xff] %v6200_v7  ;;  %v6212_v52 = vpack.c.bf16 %v637_v12, %v633_v8  ;;  %v635_v34 = vld [vmem:[#allocation9 + $0x2d0] sm:$0xff] }
  0xe4   :  { %3864 = vmatprep.subr.bf16.mxu1 %v6186_v2  ;;  %v6196_v27 = vpack.c.bf16 %v630_v11, %v626_v42  ;;  %7317 = vst [vmem:[#allocation57_spill] sm:$0xff] %v6203_v61  ;;  %v638_v2 = vld [vmem:[#allocation9 + $0x2e8] sm:$0xff]  ;;  %v640_v11 = vld [vmem:[#allocation9 + $0x2f8] sm:$0xff]  ;;  %v639_v31 = vld [vmem:[#allocation9 + $0x2f0] sm:$0xff] }
  0xe5   :  { %7320 = vst [vmem:[#allocation60_spill] sm:$0xff] %v6212_v52  ;;  %v662_v0 = vld [vmem:[#allocation9 + $0x3a8] sm:$0xff] }
  0xe6   :  { %3802 = vmatpush1.bf16.msra.mxu0 %v6189_v35  ;;  %7314 = vst [vmem:[#allocation54_spill] sm:$0xff] %v6196_v27  ;;  %v634_v35 = vld [vmem:[#allocation9 + $0x2c8] sm:$0xff] }
  0xe7   :  { %3866 = vmatpush1.bf16.msra.mxu1 %v6191_v37  ;;  %3804 = vmatprep.subr.bf16.mxu0 %v6196_v27  ;;  %v636_v37 = vld [vmem:[#allocation9 + $0x2d8] sm:$0xff]  ;;  %v6208_v42 = vpack.c.bf16 %v638_v2, %v634_v35  ;;  %v646_v27 = vld [vmem:[#allocation9 + $0x328] sm:$0xff] }
  0xe8   :  { %3868 = vmatprep.subr.bf16.mxu1 %v6198_v25  ;;  %v6210_v51 = vpack.c.bf16 %v640_v11, %v636_v37  ;;  %v6215_v25 = vpack.c.bf16 %v639_v31, %v635_v34  ;;  %v648_v35 = vld [vmem:[#allocation9 + $0x338] sm:$0xff]  ;;  %v641_v37 = vld [vmem:[#allocation9 + $0x300] sm:$0xff]  ;;  %v643_v34 = vld [vmem:[#allocation9 + $0x310] sm:$0xff] }
  0xe9   :  { %7318 = vst [vmem:[#allocation58_spill] sm:$0xff] %v6208_v42  ;;  %v645_v11 = vld [vmem:[#allocation9 + $0x320] sm:$0xff]  ;;  %v647_v31 = vld [vmem:[#allocation9 + $0x330] sm:$0xff] }
  0xea   :  { %3806 = vmatpush1.bf16.msra.mxu0 %v6200_v7  ;;  %7319 = vst [vmem:[#allocation59_spill] sm:$0xff] %v6210_v51  ;;  %7321 = vst [vmem:[#allocation61_spill] sm:$0xff] %v6215_v25  ;;  %v642_v7 = vld [vmem:[#allocation9 + $0x308] sm:$0xff]  ;;  %v6224_v12 = vpack.c.bf16 %v645_v11, %v641_v37 }
  0xeb   :  { %3870 = vmatpush1.bf16.msra.mxu1 %v6203_v61  ;;  %3808 = vmatprep.subr.bf16.mxu0 %v6208_v42  ;;  %v644_v61 = vld [vmem:[#allocation9 + $0x318] sm:$0xff]  ;;  %v6220_v2 = vpack.c.bf16 %v646_v27, %v642_v7  ;;  %v654_v42 = vld [vmem:[#allocation9 + $0x368] sm:$0xff] }
  0xec   :  { %3872 = vmatprep.subr.bf16.mxu1 %v6210_v51  ;;  %v6222_v8 = vpack.c.bf16 %v648_v35, %v644_v61  ;;  %7324 = vst [vmem:[#allocation64_spill] sm:$0xff] %v6224_v12  ;;  %v6227_v51 = vpack.c.bf16 %v647_v31, %v643_v34  ;;  %v656_v7 = vld [vmem:[#allocation9 + $0x378] sm:$0xff]  ;;  %v649_v61 = vld [vmem:[#allocation9 + $0x340] sm:$0xff]  ;;  %v651_v34 = vld [vmem:[#allocation9 + $0x350] sm:$0xff] }
  0xed   :  { %7322 = vst [vmem:[#allocation62_spill] sm:$0xff] %v6220_v2  ;;  %v653_v35 = vld [vmem:[#allocation9 + $0x360] sm:$0xff]  ;;  %v655_v31 = vld [vmem:[#allocation9 + $0x370] sm:$0xff] }
  0xee   :  { %3810 = vmatpush1.bf16.msra.mxu0 %v6212_v52  ;;  %7323 = vst [vmem:[#allocation63_spill] sm:$0xff] %v6222_v8  ;;  %7325 = vst [vmem:[#allocation65_spill] sm:$0xff] %v6227_v51  ;;  %v650_v52 = vld [vmem:[#allocation9 + $0x348] sm:$0xff]  ;;  %v6236_v11 = vpack.c.bf16 %v653_v35, %v649_v61  ;;  %v659_v61 = vld [vmem:[#allocation9 + $0x390] sm:$0xff] }
  0xef   :  { %3874 = vmatpush1.bf16.msra.mxu1 %v6215_v25  ;;  %3812 = vmatprep.subr.bf16.mxu0 %v6220_v2  ;;  %v652_v25 = vld [vmem:[#allocation9 + $0x358] sm:$0xff]  ;;  %v6232_v27 = vpack.c.bf16 %v654_v42, %v650_v52  ;;  %v658_v2 = vld [vmem:[#allocation9 + $0x388] sm:$0xff] }
  0xf0   :  { %3876 = vmatprep.subr.bf16.mxu1 %v6222_v8  ;;  %v6234_v37 = vpack.c.bf16 %v656_v7, %v652_v25  ;;  %7328 = vst [vmem:[#allocation68_spill] sm:$0xff] %v6236_v11  ;;  %v6239_v8 = vpack.c.bf16 %v655_v31, %v651_v34  ;;  %v6242_v42 = vpack.c.bf16 %v662_v0, %v658_v2  ;;  %v657_v25 = vld [vmem:[#allocation9 + $0x380] sm:$0xff]  ;;  %v663_v34 = vld [vmem:[#allocation9 + $0x3b0] sm:$0xff]  ;;  %v666_v31 = vld [vmem:[#allocation9 + $0x3c8] sm:$0xff] }
  0xf1   :  { %7326 = vst [vmem:[#allocation66_spill] sm:$0xff] %v6232_v27  ;;  %v661_v7 = vld [vmem:[#allocation9 + $0x3a0] sm:$0xff]  ;;  %v6252_v0 = vpack.c.bf16 %v663_v34, %v659_v61  ;;  %v668_v2 = vld [vmem:[#allocation9 + $0x3d8] sm:$0xff]  ;;  %v203_v34 = vlaneseq }
  0xf2   :  { %3814 = vmatpush1.bf16.msra.mxu0 %v6224_v12  ;;  %7327 = vst [vmem:[#allocation67_spill] sm:$0xff] %v6234_v37  ;;  %7329 = vst [vmem:[#allocation69_spill] sm:$0xff] %v6239_v8  ;;  %v660_v12 = vld [vmem:[#allocation9 + $0x398] sm:$0xff]  ;;  %v6248_v35 = vpack.c.bf16 %v661_v7, %v657_v25  ;;  %v671_v25 = vld [vmem:[#allocation9 + $0x3f0] sm:$0xff] }
  0xf3   :  { %3878 = vmatpush1.bf16.msra.mxu1 %v6227_v51  ;;  %3816 = vmatprep.subr.bf16.mxu0 %v6232_v27  ;;  %7330 = vst [vmem:[#allocation70_spill] sm:$0xff] %v6242_v42  ;;  %v6244_v52 = vpack.c.bf16 %v664_v24, %v660_v12  ;;  %v670_v27 = vld [vmem:[#allocation9 + $0x3e8] sm:$0xff]  ;;  %7333 = vst [vmem:[#allocation73_spill] sm:$0xff] %v6252_v0  ;;  %v672_v12 = vld [vmem:[#allocation9 + $0x3f8] sm:$0xff] }
  0xf4   :  { %3880 = vmatprep.subr.bf16.mxu1 %v6234_v37  ;;  %7332 = vst [vmem:[#allocation72_spill] sm:$0xff] %v6248_v35  ;;  %v6254_v24 = vpack.c.bf16 %v670_v27, %v666_v31  ;;  %v665_v37 = vld [vmem:[#allocation9 + $0x3c0] sm:$0xff]  ;;  %v6256_v51 = vpack.c.bf16 %v672_v12, %v668_v2  ;;  %v3533_v7 = vld [vmem:[%s7140_s6 + $0x8] sm:$0xff]  ;;  %v6273_v31 = vshrl.u32 %v203_v34, 7 }
  0xf5   :  { %7331 = vst [vmem:[#allocation71_spill] sm:$0xff] %v6244_v52  ;;  %939 = vmatprep.mubr.f32.mxu0 %v3533_v7  ;;  %1010 = vmatprep.mubr.f32.mxu1 %v3533_v7 }
  0xf6   :  { %3818 = vmatpush1.bf16.msra.mxu0 %v6236_v11  ;;  %7334 = vst [vmem:[#allocation74_spill] sm:$0xff] %v6254_v24  ;;  %7335 = vst [vmem:[#allocation75_spill] sm:$0xff] %v6256_v51  ;;  %v669_v11 = vld [vmem:[#allocation9 + $0x3e0] sm:$0xff]  ;;  %v7251_v7 = vsub.s32 2, %v6273_v31 }
  0xf7   :  { %3882 = vmatpush1.bf16.msra.mxu1 %v6239_v8  ;;  %3820 = vmatprep.subr.bf16.mxu0 %v6242_v42  ;;  %v667_v8 = vld [vmem:[#allocation9 + $0x3d0] sm:$0xff]  ;;  %v6263_v61 = vpack.c.bf16 %v669_v11, %v665_v37  ;;  %7338 = vst [vmem:[#allocation78_spill] sm:$0xff] %v6273_v31  ;;  %v201_v37 = vld [vmem:[%s7137_s3] sm:$0xf]  ;;  %v7242_v11 = vsub.s32 1, %v6273_v31 }
  0xf8   :  { %3884 = vmatprep.subr.bf16.mxu1 %v6244_v52  ;;  %v6265_v27 = vpack.c.bf16 %v671_v25, %v667_v8  ;;  %v7241_v8 = vsub.s32 0, %v6273_v31  ;;  %v698_v52 = vld [vmem:[#allocation12] sm:$0xff] }
  0xf9   :  { %7336 = vst [vmem:[#allocation76_spill] sm:$0xff] %v6263_v61  ;;  %v6286_v12 = vrot.slane %v201_v37, %v7242_v11  ;;  %v7258_v11 = vsub.s32 3, %v6273_v31 }
  0xfa   :  { %3822 = vmatpush1.bf16.msra.mxu0 %v6248_v35  ;;  %7337 = vst [vmem:[#allocation77_spill] sm:$0xff] %v6265_v27  ;;  %v6282_v2 = vrot.slane %v201_v37, %v7241_v8 }
  0xfb   :  { %3886 = vmatpush1.bf16.msra.mxu1 %v6252_v0  ;;  %3824 = vmatprep.subr.bf16.mxu0 %v6254_v24  ;;  %7340 = vst [vmem:[#allocation80_spill] sm:$0xff] %v6286_v12  ;;  %v6293_v24 = vrot.slane %v201_v37, %v7251_v7 }
  0xfc   :  { %3888 = vmatprep.subr.bf16.mxu1 %v6256_v51  ;;  %7339 = vst [vmem:[#allocation79_spill] sm:$0xff] %v6282_v2 }
  0xfd   :  { %7341 = vst [vmem:[#allocation81_spill] sm:$0xff] %v6293_v24 }
  0xfe   :  { %3826 = vmatpush1.bf16.msra.mxu0 %v6263_v61 }
  0xff   :  { %3890 = vmatpush1.bf16.msra.mxu1 %v6265_v27  ;;  %3892 = vmatprep.subr.bf16.mxu0 %v5961_v38 }
 0x100   :  { %3924 = vmatprep.subr.bf16.mxu1 %v5963_v41 }
 0x194   :  { %v771_v25 = vpop.f32.mrb[0].mxu0 }
 0x195   :  { %v5259_v34 = vadd.f32 %v771_v25, %v6282_v2  ;;  %v842_v41 = vpop.f32.mrb[0].mxu1  ;;  %v773_v38 = vpop.f32.mrb[1].mxu0  ;;  %v6299_v25 = vrot.slane %v201_v37, %v7258_v11 }
 0x196   :  { %v5260_v27 = vadd.f32 %v773_v38, %v6286_v12  ;;  %v844_v61 = vpop.f32.mrb[1].mxu1  ;;  %v5275_v0 = vadd.f32 %v842_v41, %v6293_v24 }
 0x197   :  { %v3534_v51 = vmul.f32 -1.442695, %v5259_v34  ;;  %v5276_v38 = vadd.f32 %v844_v61, %v6299_v25 }
 0x198   :  { %v3535_v8 = vmul.f32 -1.442695, %v5260_v27  ;;  %v3536_v2 = vmul.f32 -1.442695, %v5275_v0 }
 0x199   :  { %5338 = vpow2.f32 %v3534_v51 }
 0x19a   :  { %5340 = vpow2.f32 %v3535_v8 }
 0x19b   :  { %5342 = vpow2.f32 %v3536_v2 }
 0x19c   :  { %5344 = vtanh.f32 %v5276_v38  ;;  %v7348_v38 = vld [vmem:[#allocation34_spill] sm:$0xff] }
 0x1a3   :  { %v5339_v12 = vpop.eup %5338 }
 0x1a4   :  { %v860_v34 = vadd.f32 1.0, %v5339_v12  ;;  %v5341_v35 = vpop.eup %5340  ;;  %v7346_v12 = vld [vmem:[#allocation32_spill] sm:$0xff] }
 0x1a5   :  { %v861_v27 = vadd.f32 1.0, %v5341_v35  ;;  %v5343_v51 = vpop.eup %5342  ;;  %v7342_v35 = vmov 0.0  }
 0x1a6   :  { %5346 = vrcp.f32 %v860_v34  ;;  %v5345_v7 = vpop.eup %5344  ;;  %v862_v31 = vadd.f32 1.0, %v5343_v51  ;;  %v7349_v34 = vld [vmem:[#allocation35_spill] sm:$0xff]  ;;  %v7351_v51 = vld [vmem:[#allocation37_spill] sm:$0xff] }
 0x1a7   :  { %5348 = vrcp.f32 %v861_v27  ;;  %v7350_v27 = vld [vmem:[#allocation36_spill] sm:$0xff] }
 0x1a8   :  { %5350 = vrcp.f32 %v862_v31  ;;  %v7345_v31 = vld [vmem:[#allocation31_spill] sm:$0xff] }
 0x1b0   :  { %v5347_v8 = vpop.eup %5346 }
 0x1b1   :  { %v871_v41 = vmul.f32 %v5347_v8, %v5345_v7  ;;  %v5349_v24 = vpop.eup %5348  ;;  %v7347_v7 = vld [vmem:[#allocation33_spill] sm:$0xff]  ;;  %v7352_v8 = vld [vmem:[#allocation38_spill] sm:$0xff] }
 0x1b2   :  { %v870_v37 = vmul.f32 %v5349_v24, %v698_v52  ;;  %v5351_v0 = vpop.eup %5350  ;;  %v7343_v52 = vld [vmem:[#allocation29_spill] sm:$0xff]  ;;  %v7344_v24 = vld [vmem:[#allocation30_spill] sm:$0xff] }
 0x1b4   :  { %v6302_v11 = vadd.f32 %v871_v41, %v870_v37  ;;  %v7353_v41 = vld [vmem:[#allocation39_spill] sm:$0xff]  ;;  %v7354_v37 = vld [vmem:[#allocation40_spill] sm:$0xff] }
 0x1b6   :  { %5352 = vtanh.f32 %v6302_v11 }
 0x1c0   :  { %v5353_v61 = vpop.eup %5352 }
 0x1c1   :  { %v874_v2 = vmul.f32 %v5353_v61, %v5351_v0  ;;  %v7355_v0 = vld [vmem:[#allocation41_spill] sm:$0xff]  ;;  %v7356_v61 = vld [vmem:[#allocation42_spill] sm:$0xff] }
 0x1c3   :  { %940 = vmatmul.mubr.f32.vlgmr.msra.gmra.mrb[16].mxu0 %v874_v2  ;;  %1011 = vmatmul.mubr.f32.vlgmr.msra.gmra.mrb[16].mxu1 %v874_v2 }
 0x1c4   :  { %3894 = vmatpush1.bf16.msra.mxu0 %v5965_v47  ;;  %3926 = vmatpush1.bf16.msra.mxu1 %v5968_v50 }
 0x1c5   :  { %3896 = vmatprep.subr.bf16.mxu0 %v5971_v53  ;;  %3928 = vmatprep.subr.bf16.mxu1 %v5973_v56 }
 0x1c6   :  { %1109 = vmatprep.mubr.f32.mxu0 %v7342_v35  ;;  %1180 = vmatprep.mubr.f32.mxu1 %v7342_v35 }
 0x1c8   :  { %3898 = vmatpush1.bf16.msra.mxu0 %v5976_v60  ;;  %3930 = vmatpush1.bf16.msra.mxu1 %v5980_v63 }
 0x1c9   :  { %3900 = vmatprep.subr.bf16.mxu0 %v5984_v3  ;;  %3932 = vmatprep.subr.bf16.mxu1 %v5987_v6 }
 0x1cc   :  { %3902 = vmatpush1.bf16.msra.mxu0 %v5990_v10  ;;  %3934 = vmatpush1.bf16.msra.mxu1 %v5994_v13 }
 0x1cd   :  { %3904 = vmatprep.subr.bf16.mxu0 %v5998_v16  ;;  %3936 = vmatprep.subr.bf16.mxu1 %v6001_v19 }
 0x1d0   :  { %3906 = vmatpush1.bf16.msra.mxu0 %v6004_v23  ;;  %3938 = vmatpush1.bf16.msra.mxu1 %v6008_v26 }
 0x1d1   :  { %3908 = vmatprep.subr.bf16.mxu0 %v6012_v29  ;;  %3940 = vmatprep.subr.bf16.mxu1 %v6015_v32 }
 0x1d4   :  { %3910 = vmatpush1.bf16.msra.mxu0 %v6018_v36  ;;  %3942 = vmatpush1.bf16.msra.mxu1 %v6022_v40 }
 0x1d5   :  { %3912 = vmatprep.subr.bf16.mxu0 %v6026_v44  ;;  %3944 = vmatprep.subr.bf16.mxu1 %v6029_v48 }
 0x1d8   :  { %3914 = vmatpush1.bf16.msra.mxu0 %v6032_v54  ;;  %3946 = vmatpush1.bf16.msra.mxu1 %v6036_v58 }
 0x1d9   :  { %3916 = vmatprep.subr.bf16.mxu0 %v6040_v62  ;;  %3948 = vmatprep.subr.bf16.mxu1 %v6043_v4 }
 0x1dc   :  { %3918 = vmatpush1.bf16.msra.mxu0 %v6046_v9  ;;  %3950 = vmatpush1.bf16.msra.mxu1 %v6050_v14 }
 0x1dd   :  { %3920 = vmatprep.subr.bf16.mxu0 %v6054_v18  ;;  %3952 = vmatprep.subr.bf16.mxu1 %v6057_v22 }
 0x1e0   :  { %3922 = vmatpush1.bf16.msra.mxu0 %v6060_v28  ;;  %3954 = vmatpush1.bf16.msra.mxu1 %v6064_v33 }
 0x1e1   :  { %3956 = vmatprep.subr.bf16.mxu0 %v6068_v39  ;;  %4020 = vmatprep.subr.bf16.mxu1 %v6071_v46 }
 0x1e3   :  { %1110 = vmatmul.mubr.f32.vlgmr.msra.gmra.mrb[2].mxu0 %v874_v2  ;;  %1181 = vmatmul.mubr.f32.vlgmr.msra.gmra.mrb[2].mxu1 %v874_v2  ;;  %v7357_v2 = vld [vmem:[#allocation43_spill] sm:$0xff] }
 0x1e4   :  { %3958 = vmatpush1.bf16.msra.mxu0 %v6077_v55  ;;  %4022 = vmatpush1.bf16.msra.mxu1 %v6081_v57 }
 0x1e5   :  { %3960 = vmatprep.subr.bf16.mxu0 %v6083_v59  ;;  %4024 = vmatprep.subr.bf16.mxu1 %v6087_v5 }
 0x1e8   :  { %3962 = vmatpush1.bf16.msra.mxu0 %v6091_v17  ;;  %4026 = vmatpush1.bf16.msra.mxu1 %v6095_v20 }
 0x1e9   :  { %3964 = vmatprep.subr.bf16.mxu0 %v6097_v21  ;;  %4028 = vmatprep.subr.bf16.mxu1 %v6100_v30 }
 0x1ec   :  { %3966 = vmatpush1.bf16.msra.mxu0 %v6103_v43  ;;  %4030 = vmatpush1.bf16.msra.mxu1 %v6107_v45 }
 0x1ed   :  { %3968 = vmatprep.subr.bf16.mxu0 %v6109_v49  ;;  %4032 = vmatprep.subr.bf16.mxu1 %v6112_v1 }
 0x1f0   :  { %3970 = vmatpush1.bf16.msra.mxu0 %v6115_v15  ;;  %4034 = vmatpush1.bf16.msra.mxu1 %v7343_v52 }
 0x1f1   :  { %3972 = vmatprep.subr.bf16.mxu0 %v7344_v24  ;;  %4036 = vmatprep.subr.bf16.mxu1 %v7345_v31 }
 0x1f4   :  { %3974 = vmatpush1.bf16.msra.mxu0 %v7346_v12  ;;  %4038 = vmatpush1.bf16.msra.mxu1 %v7347_v7  ;;  %v7358_v7 = vld [vmem:[#allocation44_spill] sm:$0xff] }
 0x1f5   :  { %3976 = vmatprep.subr.bf16.mxu0 %v7348_v38  ;;  %4040 = vmatprep.subr.bf16.mxu1 %v7349_v34  ;;  %v7359_v38 = vld [vmem:[#allocation45_spill] sm:$0xff]  ;;  %v7360_v34 = vld [vmem:[#allocation46_spill] sm:$0xff] }
 0x1f8   :  { %3978 = vmatpush1.bf16.msra.mxu0 %v7350_v27  ;;  %4042 = vmatpush1.bf16.msra.mxu1 %v7351_v51  ;;  %v7361_v27 = vld [vmem:[#allocation47_spill] sm:$0xff]  ;;  %v7362_v51 = vld [vmem:[#allocation48_spill] sm:$0xff] }
 0x1f9   :  { %3980 = vmatprep.subr.bf16.mxu0 %v7352_v8  ;;  %4044 = vmatprep.subr.bf16.mxu1 %v7353_v41  ;;  %v7363_v8 = vld [vmem:[#allocation49_spill] sm:$0xff]  ;;  %v7364_v41 = vld [vmem:[#allocation50_spill] sm:$0xff] }
 0x1fc   :  { %3982 = vmatpush1.bf16.msra.mxu0 %v7354_v37  ;;  %4046 = vmatpush1.bf16.msra.mxu1 %v7355_v0  ;;  %v7365_v37 = vld [vmem:[#allocation51_spill] sm:$0xff]  ;;  %v7366_v0 = vld [vmem:[#allocation52_spill] sm:$0xff] }
 0x1fd   :  { %3984 = vmatprep.subr.bf16.mxu0 %v7356_v61  ;;  %4048 = vmatprep.subr.bf16.mxu1 %v7357_v2  ;;  %v7367_v61 = vld [vmem:[#allocation53_spill] sm:$0xff]  ;;  %v7368_v2 = vld [vmem:[#allocation54_spill] sm:$0xff] }
 0x200   :  { %3986 = vmatpush1.bf16.msra.mxu0 %v7358_v7  ;;  %4050 = vmatpush1.bf16.msra.mxu1 %v7359_v38  ;;  %v7369_v7 = vld [vmem:[#allocation55_spill] sm:$0xff]  ;;  %v7370_v38 = vld [vmem:[#allocation56_spill] sm:$0xff] }
 0x201   :  { %3988 = vmatprep.subr.bf16.mxu0 %v7360_v34  ;;  %4052 = vmatprep.subr.bf16.mxu1 %v7361_v27  ;;  %v7371_v34 = vld [vmem:[#allocation57_spill] sm:$0xff]  ;;  %v7372_v27 = vld [vmem:[#allocation58_spill] sm:$0xff] }
 0x204   :  { %3990 = vmatpush1.bf16.msra.mxu0 %v7362_v51  ;;  %4054 = vmatpush1.bf16.msra.mxu1 %v7363_v8  ;;  %v7373_v51 = vld [vmem:[#allocation59_spill] sm:$0xff]  ;;  %v7374_v8 = vld [vmem:[#allocation60_spill] sm:$0xff] }
 0x205   :  { %3992 = vmatprep.subr.bf16.mxu0 %v7364_v41  ;;  %4056 = vmatprep.subr.bf16.mxu1 %v7365_v37  ;;  %v7375_v41 = vld [vmem:[#allocation61_spill] sm:$0xff]  ;;  %v7376_v37 = vld [vmem:[#allocation62_spill] sm:$0xff] }
 0x208   :  { %3994 = vmatpush1.bf16.msra.mxu0 %v7366_v0  ;;  %4058 = vmatpush1.bf16.msra.mxu1 %v7367_v61  ;;  %v7377_v0 = vld [vmem:[#allocation63_spill] sm:$0xff]  ;;  %v7378_v61 = vld [vmem:[#allocation64_spill] sm:$0xff] }
 0x209   :  { %3996 = vmatprep.subr.bf16.mxu0 %v7368_v2  ;;  %4060 = vmatprep.subr.bf16.mxu1 %v7369_v7  ;;  %v7379_v2 = vld [vmem:[#allocation65_spill] sm:$0xff]  ;;  %v7380_v7 = vld [vmem:[#allocation66_spill] sm:$0xff] }
 0x20c   :  { %3998 = vmatpush1.bf16.msra.mxu0 %v7370_v38  ;;  %4062 = vmatpush1.bf16.msra.mxu1 %v7371_v34  ;;  %v7381_v38 = vld [vmem:[#allocation67_spill] sm:$0xff]  ;;  %v7382_v34 = vld [vmem:[#allocation68_spill] sm:$0xff] }
 0x20d   :  { %4000 = vmatprep.subr.bf16.mxu0 %v7372_v27  ;;  %4064 = vmatprep.subr.bf16.mxu1 %v7373_v51  ;;  %v7383_v27 = vld [vmem:[#allocation69_spill] sm:$0xff] }
 0x210   :  { %4002 = vmatpush1.bf16.msra.mxu0 %v7374_v8  ;;  %4066 = vmatpush1.bf16.msra.mxu1 %v7375_v41  ;;  %v7384_v8 = vld [vmem:[#allocation71_spill] sm:$0xff]  ;;  %v7385_v41 = vld [vmem:[#allocation72_spill] sm:$0xff] }
 0x211   :  { %4004 = vmatprep.subr.bf16.mxu0 %v7376_v37  ;;  %4068 = vmatprep.subr.bf16.mxu1 %v7377_v0  ;;  %v7386_v37 = vld [vmem:[#allocation73_spill] sm:$0xff]  ;;  %v7387_v0 = vld [vmem:[#allocation74_spill] sm:$0xff] }
 0x214   :  { %4006 = vmatpush1.bf16.msra.mxu0 %v7378_v61  ;;  %4070 = vmatpush1.bf16.msra.mxu1 %v7379_v2  ;;  %v7388_v61 = vld [vmem:[#allocation75_spill] sm:$0xff]  ;;  %v7389_v2 = vld [vmem:[#allocation76_spill] sm:$0xff] }
 0x215   :  { %4008 = vmatprep.subr.bf16.mxu0 %v7380_v7  ;;  %4072 = vmatprep.subr.bf16.mxu1 %v7381_v38  ;;  %v7390_v7 = vld [vmem:[#allocation77_spill] sm:$0xff] }
 0x216   :  { %v7391_v38 = vld [vmem:[#allocation21_spill] sm:$0xff] }
 0x218   :  { %4010 = vmatpush1.bf16.msra.mxu0 %v7382_v34  ;;  %4074 = vmatpush1.bf16.msra.mxu1 %v7383_v27  ;;  %v7392_v34 = vld [vmem:[#allocation22_spill] sm:$0xff]  ;;  %v673_v27 = vld [vmem:[#allocation11] sm:$0xf] }
 0x219   :  { %4012 = vmatprep.subr.bf16.mxu0 %v6242_v42  ;;  %4076 = vmatprep.subr.bf16.mxu1 %v7384_v8  ;;  %v7393_v42 = vld [vmem:[#allocation78_spill] sm:$0xff] }
 0x21a   :  { %v7394_v51 = vsub.s32 0, %v7393_v42 }
 0x21c   :  { %4014 = vmatpush1.bf16.msra.mxu0 %v7385_v41  ;;  %4078 = vmatpush1.bf16.msra.mxu1 %v7386_v37  ;;  %v6405_v8 = vrot.slane %v673_v27, %v7394_v51  ;;  %v7396_v41 = vsub.s32 1, %v7393_v42  ;;  %v7400_v51 = vsub.s32 3, %v7393_v42 }
 0x21d   :  { %4016 = vmatprep.subr.bf16.mxu0 %v7387_v0  ;;  %4080 = vmatprep.subr.bf16.mxu1 %v7388_v61 }
 0x21e   :  { %7395 = vst [vmem:[#allocation78_spill] sm:$0xff] %v6405_v8  ;;  %v6409_v37 = vrot.slane %v673_v27, %v7396_v41  ;;  %v6419_v41 = vrot.slane %v673_v27, %v7400_v51 }
 0x220   :  { %4018 = vmatpush1.bf16.msra.mxu0 %v7389_v2  ;;  %4082 = vmatpush1.bf16.msra.mxu1 %v7390_v7  ;;  %7397 = vst [vmem:[#allocation82_spill] sm:$0xff] %v6409_v37  ;;  %7401 = vst [vmem:[#allocation84_spill] sm:$0xff] %v6419_v41 }
 0x221   :  { %4084 = vmatprep.subr.bf16.mxu0 %v7391_v38  ;;  %4116 = vmatprep.subr.bf16.mxu1 %v7392_v34  ;;  %v7398_v34 = vsub.s32 2, %v7393_v42 }
 0x223   :  { %v6415_v52 = vrot.slane %v673_v27, %v7398_v34 }
 0x225   :  { %7399 = vst [vmem:[#allocation83_spill] sm:$0xff] %v6415_v52 }
 0x296   :  { %v941_v0 = vpop.f32.mrb[16].mxu0  ;;  %v1012_v12 = vpop.f32.mrb[16].mxu1 }
 0x297   :  { %v942_v61 = vadd.f32 %v941_v0, %v6405_v8  ;;  %v943_v2 = vpop.f32.mrb[17].mxu0  ;;  %v1014_v31 = vpop.f32.mrb[17].mxu1  ;;  %v1013_v15 = vadd.f32 %v1012_v12, %v6415_v52 }
 0x298   :  { %v944_v7 = vadd.f32 %v943_v2, %v6409_v37  ;;  %v1015_v0 = vadd.f32 %v1014_v31, %v6419_v41  ;;  %v700_v2 = vld [vmem:[#allocation12 + $0x8] sm:$0xff] }
 0x299   :  { %v3537_v38 = vmul.f32 -1.442695, %v942_v61  ;;  %v3539_v8 = vmul.f32 -1.442695, %v1013_v15  ;;  %v7402_v15 = vld [vmem:[#allocation79_spill] sm:$0xff] }
 0x29a   :  { %v3538_v24 = vmul.f32 -1.442695, %v944_v7 }
 0x29b   :  { %5354 = vpow2.f32 %v3537_v38 }
 0x29c   :  { %5356 = vpow2.f32 %v3538_v24 }
 0x29d   :  { %5358 = vtanh.f32 %v1015_v0 }
 0x29e   :  { %5360 = vpow2.f32 %v3539_v8 }
 0x2a5   :  { %v5355_v1 = vpop.eup %5354 }
 0x2a6   :  { %v1026_v49 = vadd.f32 1.0, %v5355_v1  ;;  %v5357_v61 = vpop.eup %5356 }
 0x2a7   :  { %v1027_v7 = vadd.f32 1.0, %v5357_v61  ;;  %v5359_v38 = vpop.eup %5358 }
 0x2a8   :  { %5362 = vrcp.f32 %v1026_v49  ;;  %v5361_v34 = vpop.eup %5360  ;;  %v7403_v49 = vld [vmem:[#allocation80_spill] sm:$0xff] }
 0x2a9   :  { %5364 = vrcp.f32 %v1027_v7  ;;  %v1028_v51 = vadd.f32 1.0, %v5361_v34 }
 0x2ab   :  { %5366 = vrcp.f32 %v1028_v51 }
 0x2b2   :  { %v5363_v24 = vpop.eup %5362 }
 0x2b3   :  { %v1037_v42 = vmul.f32 %v5363_v24, %v5359_v38  ;;  %v5365_v27 = vpop.eup %5364  ;;  %v7404_v38 = vld [vmem:[#allocation81_spill] sm:$0xff] }
 0x2b4   :  { %v1036_v37 = vmul.f32 %v5365_v27, %v700_v2 }
 0x2b5   :  { %v5367_v24 = vpop.eup %5366 }
 0x2b6   :  { %v1111_v12 = vpop.f32.mrb[2].mxu0  ;;  %v1182_v52 = vpop.f32.mrb[2].mxu1  ;;  %v6423_v31 = vadd.f32 %v1037_v42, %v1036_v37 }
 0x2b7   :  { %v5261_v1 = vadd.f32 %v1111_v12, %v7402_v15  ;;  %v1113_v0 = vpop.f32.mrb[3].mxu0  ;;  %v1184_v41 = vpop.f32.mrb[3].mxu1  ;;  %v5277_v34 = vadd.f32 %v1182_v52, %v7404_v38 }
 0x2b8   :  { %v5262_v8 = vadd.f32 %v1113_v0, %v7403_v49  ;;  %5368 = vtanh.f32 %v6423_v31  ;;  %v5278_v2 = vadd.f32 %v1184_v41, %v6299_v25 }
 0x2b9   :  { %v3540_v61 = vmul.f32 -1.442695, %v5261_v1  ;;  %v3542_v42 = vmul.f32 -1.442695, %v5277_v34 }
 0x2ba   :  { %v3541_v7 = vmul.f32 -1.442695, %v5262_v8 }
 0x2bb   :  { %5370 = vpow2.f32 %v3540_v61 }
 0x2bc   :  { %5372 = vpow2.f32 %v3541_v7 }
 0x2bd   :  { %5374 = vtanh.f32 %v5278_v2 }
 0x2be   :  { %5376 = vpow2.f32 %v3542_v42  ;;  %v7408_v42 = vld [vmem:[#allocation29_spill] sm:$0xff] }
 0x2c2   :  { %v5369_v37 = vpop.eup %5368 }
 0x2c3   :  { %v1040_v27 = vmul.f32 %v5369_v37, %v5367_v24 }
 0x2c5   :  { %v5371_v12 = vpop.eup %5370  ;;  %1279 = vmatprep.mubr.f32.mxu0 %v1040_v27  ;;  %1350 = vmatprep.mubr.f32.mxu1 %v1040_v27  ;;  %v7409_v27 = vld [vmem:[#allocation30_spill] sm:$0xff] }
 0x2c6   :  { %v1200_v15 = vadd.f32 1.0, %v5371_v12  ;;  %v5373_v51 = vpop.eup %5372  ;;  %v7410_v12 = vld [vmem:[#allocation31_spill] sm:$0xff] }
 0x2c7   :  { %v1201_v1 = vadd.f32 1.0, %v5373_v51  ;;  %v5375_v0 = vpop.eup %5374  ;;  %v7411_v51 = vld [vmem:[#allocation32_spill] sm:$0xff] }
 0x2c8   :  { %5378 = vrcp.f32 %v1200_v15  ;;  %v5377_v8 = vpop.eup %5376  ;;  %v7406_v15 = vld [vmem:[#allocation27_spill] sm:$0xff] }
 0x2c9   :  { %5380 = vrcp.f32 %v1201_v1  ;;  %v1202_v38 = vadd.f32 1.0, %v5377_v8  ;;  %v7412_v1 = vld [vmem:[#allocation33_spill] sm:$0xff]  ;;  %v7414_v8 = vld [vmem:[#allocation35_spill] sm:$0xff] }
 0x2cb   :  { %5382 = vrcp.f32 %v1202_v38  ;;  %v7407_v38 = vld [vmem:[#allocation28_spill] sm:$0xff] }
 0x2d2   :  { %v5379_v61 = vpop.eup %5378 }
 0x2d3   :  { %v1211_v52 = vmul.f32 %v5379_v61, %v5375_v0  ;;  %v5381_v7 = vpop.eup %5380  ;;  %v7413_v0 = vld [vmem:[#allocation34_spill] sm:$0xff]  ;;  %v7415_v61 = vld [vmem:[#allocation36_spill] sm:$0xff] }
 0x2d4   :  { %v1210_v41 = vmul.f32 %v5381_v7, %v6302_v11  ;;  %v7405_v11 = vld [vmem:[#allocation26_spill] sm:$0xff] }
 0x2d5   :  { %v5383_v24 = vpop.eup %5382  ;;  %v7417_v7 = vld [vmem:[#allocation38_spill] sm:$0xff] }
 0x2d6   :  { %v6431_v34 = vadd.f32 %v1211_v52, %v1210_v41  ;;  %v7416_v52 = vld [vmem:[#allocation37_spill] sm:$0xff]  ;;  %v7418_v41 = vld [vmem:[#allocation39_spill] sm:$0xff] }
 0x2d8   :  { %5384 = vtanh.f32 %v6431_v34 }
 0x2e2   :  { %v5385_v2 = vpop.eup %5384 }
 0x2e3   :  { %v1214_v37 = vmul.f32 %v5385_v2, %v5383_v24  ;;  %v7419_v24 = vld [vmem:[#allocation40_spill] sm:$0xff]  ;;  %v7420_v2 = vld [vmem:[#allocation41_spill] sm:$0xff] }
 0x2e5   :  { %1280 = vmatmul.mubr.f32.vlgmr.msra.gmra.mrb[18].mxu0 %v1214_v37  ;;  %1351 = vmatmul.mubr.f32.vlgmr.msra.gmra.mrb[18].mxu1 %v1214_v37 }
 0x2e6   :  { %4086 = vmatpush1.bf16.msra.mxu0 %v5965_v47  ;;  %4118 = vmatpush1.bf16.msra.mxu1 %v5968_v50 }
 0x2e7   :  { %4088 = vmatprep.subr.bf16.mxu0 %v5971_v53  ;;  %4120 = vmatprep.subr.bf16.mxu1 %v5973_v56 }
 0x2e8   :  { %1449 = vmatprep.mubr.f32.mxu0 %v7342_v35  ;;  %1520 = vmatprep.mubr.f32.mxu1 %v7342_v35 }
 0x2ea   :  { %4090 = vmatpush1.bf16.msra.mxu0 %v5976_v60  ;;  %4122 = vmatpush1.bf16.msra.mxu1 %v5980_v63 }
 0x2eb   :  { %4092 = vmatprep.subr.bf16.mxu0 %v5984_v3  ;;  %4124 = vmatprep.subr.bf16.mxu1 %v5987_v6 }
 0x2ee   :  { %4094 = vmatpush1.bf16.msra.mxu0 %v5990_v10  ;;  %4126 = vmatpush1.bf16.msra.mxu1 %v5994_v13 }
 0x2ef   :  { %4096 = vmatprep.subr.bf16.mxu0 %v5998_v16  ;;  %4128 = vmatprep.subr.bf16.mxu1 %v6001_v19 }
 0x2f2   :  { %4098 = vmatpush1.bf16.msra.mxu0 %v6004_v23  ;;  %4130 = vmatpush1.bf16.msra.mxu1 %v6008_v26 }
 0x2f3   :  { %4100 = vmatprep.subr.bf16.mxu0 %v6012_v29  ;;  %4132 = vmatprep.subr.bf16.mxu1 %v6015_v32 }
 0x2f6   :  { %4102 = vmatpush1.bf16.msra.mxu0 %v6018_v36  ;;  %4134 = vmatpush1.bf16.msra.mxu1 %v6022_v40 }
 0x2f7   :  { %4104 = vmatprep.subr.bf16.mxu0 %v6026_v44  ;;  %4136 = vmatprep.subr.bf16.mxu1 %v6029_v48 }
 0x2fa   :  { %4106 = vmatpush1.bf16.msra.mxu0 %v6032_v54  ;;  %4138 = vmatpush1.bf16.msra.mxu1 %v6036_v58 }
 0x2fb   :  { %4108 = vmatprep.subr.bf16.mxu0 %v6040_v62  ;;  %4140 = vmatprep.subr.bf16.mxu1 %v6043_v4 }
 0x2fe   :  { %4110 = vmatpush1.bf16.msra.mxu0 %v6046_v9  ;;  %4142 = vmatpush1.bf16.msra.mxu1 %v6050_v14 }
 0x2ff   :  { %4112 = vmatprep.subr.bf16.mxu0 %v6054_v18  ;;  %4144 = vmatprep.subr.bf16.mxu1 %v6057_v22 }
 0x302   :  { %4114 = vmatpush1.bf16.msra.mxu0 %v6060_v28  ;;  %4146 = vmatpush1.bf16.msra.mxu1 %v6064_v33 }
 0x303   :  { %4148 = vmatprep.subr.bf16.mxu0 %v6068_v39  ;;  %4212 = vmatprep.subr.bf16.mxu1 %v6071_v46 }
 0x305   :  { %1450 = vmatmul.mubr.f32.vlgmr.msra.gmra.mrb[4].mxu0 %v1214_v37  ;;  %1521 = vmatmul.mubr.f32.vlgmr.msra.gmra.mrb[4].mxu1 %v1214_v37  ;;  %v7421_v37 = vld [vmem:[#allocation42_spill] sm:$0xff] }
 0x306   :  { %4150 = vmatpush1.bf16.msra.mxu0 %v6077_v55  ;;  %4214 = vmatpush1.bf16.msra.mxu1 %v6081_v57 }
 0x307   :  { %4152 = vmatprep.subr.bf16.mxu0 %v6083_v59  ;;  %4216 = vmatprep.subr.bf16.mxu1 %v6087_v5 }
 0x30a   :  { %4154 = vmatpush1.bf16.msra.mxu0 %v6091_v17  ;;  %4218 = vmatpush1.bf16.msra.mxu1 %v6095_v20 }
 0x30b   :  { %4156 = vmatprep.subr.bf16.mxu0 %v6097_v21  ;;  %4220 = vmatprep.subr.bf16.mxu1 %v6100_v30 }
 0x30e   :  { %4158 = vmatpush1.bf16.msra.mxu0 %v6103_v43  ;;  %4222 = vmatpush1.bf16.msra.mxu1 %v6107_v45 }
 0x30f   :  { %4160 = vmatprep.subr.bf16.mxu0 %v7405_v11  ;;  %4224 = vmatprep.subr.bf16.mxu1 %v7406_v15  ;;  %v7462_v15 = vld [vmem:[#allocation84_spill] sm:$0xff] }
 0x312   :  { %4162 = vmatpush1.bf16.msra.mxu0 %v7407_v38  ;;  %4226 = vmatpush1.bf16.msra.mxu1 %v7408_v42  ;;  %v7460_v42 = vld [vmem:[#allocation82_spill] sm:$0xff] }
 0x313   :  { %4164 = vmatprep.subr.bf16.mxu0 %v7409_v27  ;;  %4228 = vmatprep.subr.bf16.mxu1 %v7410_v12  ;;  %v7459_v12 = vld [vmem:[#allocation78_spill] sm:$0xff] }
 0x316   :  { %4166 = vmatpush1.bf16.msra.mxu0 %v7411_v51  ;;  %4230 = vmatpush1.bf16.msra.mxu1 %v7412_v1  ;;  %v7422_v51 = vld [vmem:[#allocation43_spill] sm:$0xff]  ;;  %v7423_v1 = vld [vmem:[#allocation44_spill] sm:$0xff] }
 0x317   :  { %4168 = vmatprep.subr.bf16.mxu0 %v7413_v0  ;;  %4232 = vmatprep.subr.bf16.mxu1 %v7414_v8  ;;  %v7424_v0 = vld [vmem:[#allocation45_spill] sm:$0xff]  ;;  %v7425_v8 = vld [vmem:[#allocation46_spill] sm:$0xff] }
 0x31a   :  { %4170 = vmatpush1.bf16.msra.mxu0 %v7415_v61  ;;  %4234 = vmatpush1.bf16.msra.mxu1 %v7416_v52  ;;  %v7426_v61 = vld [vmem:[#allocation47_spill] sm:$0xff]  ;;  %v7427_v52 = vld [vmem:[#allocation48_spill] sm:$0xff] }
 0x31b   :  { %4172 = vmatprep.subr.bf16.mxu0 %v7417_v7  ;;  %4236 = vmatprep.subr.bf16.mxu1 %v7418_v41  ;;  %v7428_v7 = vld [vmem:[#allocation49_spill] sm:$0xff]  ;;  %v7429_v41 = vld [vmem:[#allocation50_spill] sm:$0xff] }
 0x31e   :  { %4174 = vmatpush1.bf16.msra.mxu0 %v7419_v24  ;;  %4238 = vmatpush1.bf16.msra.mxu1 %v7420_v2  ;;  %v7430_v24 = vld [vmem:[#allocation51_spill] sm:$0xff]  ;;  %v7431_v2 = vld [vmem:[#allocation52_spill] sm:$0xff] }
 0x31f   :  { %4176 = vmatprep.subr.bf16.mxu0 %v7421_v37  ;;  %4240 = vmatprep.subr.bf16.mxu1 %v7422_v51  ;;  %v7432_v37 = vld [vmem:[#allocation53_spill] sm:$0xff]  ;;  %v7433_v51 = vld [vmem:[#allocation54_spill] sm:$0xff] }
 0x322   :  { %4178 = vmatpush1.bf16.msra.mxu0 %v7423_v1  ;;  %4242 = vmatpush1.bf16.msra.mxu1 %v7424_v0  ;;  %v7434_v1 = vld [vmem:[#allocation55_spill] sm:$0xff]  ;;  %v7435_v0 = vld [vmem:[#allocation56_spill] sm:$0xff] }
 0x323   :  { %4180 = vmatprep.subr.bf16.mxu0 %v7425_v8  ;;  %4244 = vmatprep.subr.bf16.mxu1 %v7426_v61  ;;  %v7436_v8 = vld [vmem:[#allocation57_spill] sm:$0xff]  ;;  %v7437_v61 = vld [vmem:[#allocation58_spill] sm:$0xff] }
 0x326   :  { %4182 = vmatpush1.bf16.msra.mxu0 %v7427_v52  ;;  %4246 = vmatpush1.bf16.msra.mxu1 %v7428_v7  ;;  %v7438_v52 = vld [vmem:[#allocation59_spill] sm:$0xff]  ;;  %v7439_v7 = vld [vmem:[#allocation60_spill] sm:$0xff] }
 0x327   :  { %4184 = vmatprep.subr.bf16.mxu0 %v7429_v41  ;;  %4248 = vmatprep.subr.bf16.mxu1 %v7430_v24  ;;  %v7440_v41 = vld [vmem:[#allocation61_spill] sm:$0xff]  ;;  %v7441_v24 = vld [vmem:[#allocation62_spill] sm:$0xff] }
 0x32a   :  { %4186 = vmatpush1.bf16.msra.mxu0 %v7431_v2  ;;  %4250 = vmatpush1.bf16.msra.mxu1 %v7432_v37  ;;  %v7442_v2 = vld [vmem:[#allocation63_spill] sm:$0xff]  ;;  %v7443_v37 = vld [vmem:[#allocation64_spill] sm:$0xff] }
 0x32b   :  { %4188 = vmatprep.subr.bf16.mxu0 %v7433_v51  ;;  %4252 = vmatprep.subr.bf16.mxu1 %v7434_v1  ;;  %v7444_v51 = vld [vmem:[#allocation65_spill] sm:$0xff]  ;;  %v7445_v1 = vld [vmem:[#allocation66_spill] sm:$0xff] }
 0x32e   :  { %4190 = vmatpush1.bf16.msra.mxu0 %v7435_v0  ;;  %4254 = vmatpush1.bf16.msra.mxu1 %v7436_v8  ;;  %v7446_v0 = vld [vmem:[#allocation67_spill] sm:$0xff]  ;;  %v7447_v8 = vld [vmem:[#allocation68_spill] sm:$0xff] }
 0x32f   :  { %4192 = vmatprep.subr.bf16.mxu0 %v7437_v61  ;;  %4256 = vmatprep.subr.bf16.mxu1 %v7438_v52  ;;  %v7448_v61 = vld [vmem:[#allocation69_spill] sm:$0xff]  ;;  %v7449_v52 = vld [vmem:[#allocation70_spill] sm:$0xff] }
 0x332   :  { %4194 = vmatpush1.bf16.msra.mxu0 %v7439_v7  ;;  %4258 = vmatpush1.bf16.msra.mxu1 %v7440_v41  ;;  %v7450_v7 = vld [vmem:[#allocation71_spill] sm:$0xff]  ;;  %v7451_v41 = vld [vmem:[#allocation72_spill] sm:$0xff] }
 0x333   :  { %4196 = vmatprep.subr.bf16.mxu0 %v7441_v24  ;;  %4260 = vmatprep.subr.bf16.mxu1 %v7442_v2  ;;  %v7452_v24 = vld [vmem:[#allocation73_spill] sm:$0xff]  ;;  %v7453_v2 = vld [vmem:[#allocation74_spill] sm:$0xff] }
 0x336   :  { %4198 = vmatpush1.bf16.msra.mxu0 %v7443_v37  ;;  %4262 = vmatpush1.bf16.msra.mxu1 %v7444_v51  ;;  %v7454_v37 = vld [vmem:[#allocation75_spill] sm:$0xff]  ;;  %v7455_v51 = vld [vmem:[#allocation76_spill] sm:$0xff] }
 0x337   :  { %4200 = vmatprep.subr.bf16.mxu0 %v7445_v1  ;;  %4264 = vmatprep.subr.bf16.mxu1 %v7446_v0  ;;  %v7456_v1 = vld [vmem:[#allocation77_spill] sm:$0xff] }
 0x338   :  { %v7457_v0 = vld [vmem:[#allocation21_spill] sm:$0xff] }
 0x33a   :  { %4202 = vmatpush1.bf16.msra.mxu0 %v7447_v8  ;;  %4266 = vmatpush1.bf16.msra.mxu1 %v7448_v61  ;;  %v7458_v8 = vld [vmem:[#allocation22_spill] sm:$0xff] }
 0x33b   :  { %4204 = vmatprep.subr.bf16.mxu0 %v7449_v52  ;;  %4268 = vmatprep.subr.bf16.mxu1 %v7450_v7 }
 0x33e   :  { %4206 = vmatpush1.bf16.msra.mxu0 %v7451_v41  ;;  %4270 = vmatpush1.bf16.msra.mxu1 %v7452_v24 }
 0x33f   :  { %4208 = vmatprep.subr.bf16.mxu0 %v7453_v2  ;;  %4272 = vmatprep.subr.bf16.mxu1 %v7454_v37  ;;  %v7461_v37 = vld [vmem:[#allocation83_spill] sm:$0xff] }
 0x342   :  { %4210 = vmatpush1.bf16.msra.mxu0 %v7455_v51  ;;  %4274 = vmatpush1.bf16.msra.mxu1 %v7456_v1 }
 0x343   :  { %4276 = vmatprep.subr.bf16.mxu0 %v7457_v0  ;;  %4308 = vmatprep.subr.bf16.mxu1 %v7458_v8 }
 0x3b8   :  { %v1281_v61 = vpop.f32.mrb[18].mxu0  ;;  %v1352_v52 = vpop.f32.mrb[18].mxu1 }
 0x3b9   :  { %v1282_v7 = vadd.f32 %v1281_v61, %v7459_v12  ;;  %v1283_v27 = vpop.f32.mrb[19].mxu0  ;;  %v1354_v41 = vpop.f32.mrb[19].mxu1  ;;  %v1353_v51 = vadd.f32 %v1352_v52, %v7461_v37 }
 0x3ba   :  { %v1284_v24 = vadd.f32 %v1283_v27, %v7460_v42  ;;  %v1355_v1 = vadd.f32 %v1354_v41, %v7462_v15 }
 0x3bb   :  { %v3543_v38 = vmul.f32 -1.442695, %v1282_v7  ;;  %v3545_v11 = vmul.f32 -1.442695, %v1353_v51  ;;  %v7463_v51 = vld [vmem:[#allocation79_spill] sm:$0xff] }
 0x3bc   :  { %v3544_v2 = vmul.f32 -1.442695, %v1284_v24 }
 0x3bd   :  { %5386 = vpow2.f32 %v3543_v38 }
 0x3be   :  { %5388 = vpow2.f32 %v3544_v2 }
 0x3bf   :  { %5390 = vtanh.f32 %v1355_v1 }
 0x3c0   :  { %5392 = vpow2.f32 %v3545_v11 }
 0x3c7   :  { %v5387_v0 = vpop.eup %5386 }
 0x3c8   :  { %v1366_v45 = vadd.f32 1.0, %v5387_v0  ;;  %v5389_v8 = vpop.eup %5388 }
 0x3c9   :  { %v1367_v61 = vadd.f32 1.0, %v5389_v8  ;;  %v5391_v12 = vpop.eup %5390 }
 0x3ca   :  { %5394 = vrcp.f32 %v1366_v45  ;;  %v5393_v43 = vpop.eup %5392 }
 0x3cb   :  { %5396 = vrcp.f32 %v1367_v61  ;;  %v1368_v38 = vadd.f32 1.0, %v5393_v43  ;;  %v7464_v43 = vld [vmem:[#allocation81_spill] sm:$0xff] }
 0x3cd   :  { %5398 = vrcp.f32 %v1368_v38 }
 0x3d4   :  { %v5395_v27 = vpop.eup %5394 }
 0x3d5   :  { %v1377_v7 = vmul.f32 %v5395_v27, %v5391_v12  ;;  %v5397_v24 = vpop.eup %5396 }
 0x3d6   :  { %v1376_v2 = vmul.f32 %v5397_v24, %v6423_v31 }
 0x3d7   :  { %v5399_v31 = vpop.eup %5398 }
 0x3d8   :  { %v1451_v52 = vpop.f32.mrb[4].mxu0  ;;  %v1522_v37 = vpop.f32.mrb[4].mxu1  ;;  %v6537_v41 = vadd.f32 %v1377_v7, %v1376_v2 }
 0x3d9   :  { %v5263_v0 = vadd.f32 %v1451_v52, %v7463_v51  ;;  %v1453_v1 = vpop.f32.mrb[5].mxu0  ;;  %v1524_v15 = vpop.f32.mrb[5].mxu1  ;;  %v5279_v12 = vadd.f32 %v1522_v37, %v7464_v43 }
 0x3da   :  { %v5264_v45 = vadd.f32 %v1453_v1, %v7403_v49  ;;  %5400 = vtanh.f32 %v6537_v41  ;;  %v5280_v61 = vadd.f32 %v1524_v15, %v6299_v25 }
 0x3db   :  { %v3546_v11 = vmul.f32 -1.442695, %v5263_v0  ;;  %v3548_v7 = vmul.f32 -1.442695, %v5279_v12 }
 0x3dc   :  { %v3547_v8 = vmul.f32 -1.442695, %v5264_v45 }
 0x3dd   :  { %5402 = vpow2.f32 %v3546_v11 }
 0x3de   :  { %5404 = vpow2.f32 %v3547_v8 }
 0x3df   :  { %5406 = vtanh.f32 %v5280_v61 }
 0x3e0   :  { %5408 = vpow2.f32 %v3548_v7  ;;  %v7467_v7 = vld [vmem:[#allocation26_spill] sm:$0xff] }
 0x3e4   :  { %v5401_v27 = vpop.eup %5400 }
 0x3e5   :  { %v1380_v24 = vmul.f32 %v5401_v27, %v5399_v31 }
 0x3e7   :  { %v5403_v2 = vpop.eup %5402  ;;  %1619 = vmatprep.mubr.f32.mxu0 %v1380_v24  ;;  %1690 = vmatprep.mubr.f32.mxu1 %v1380_v24  ;;  %v7468_v24 = vld [vmem:[#allocation27_spill] sm:$0xff] }
 0x3e8   :  { %v1540_v52 = vadd.f32 1.0, %v5403_v2  ;;  %v5405_v38 = vpop.eup %5404  ;;  %v7469_v2 = vld [vmem:[#allocation28_spill] sm:$0xff] }
 0x3e9   :  { %v1541_v0 = vadd.f32 1.0, %v5405_v38  ;;  %v5407_v1 = vpop.eup %5406  ;;  %v7471_v38 = vld [vmem:[#allocation30_spill] sm:$0xff] }
 0x3ea   :  { %5410 = vrcp.f32 %v1540_v52  ;;  %v5409_v45 = vpop.eup %5408  ;;  %v7470_v52 = vld [vmem:[#allocation29_spill] sm:$0xff] }
 0x3eb   :  { %5412 = vrcp.f32 %v1541_v0  ;;  %v1542_v43 = vadd.f32 1.0, %v5409_v45  ;;  %v7472_v0 = vld [vmem:[#allocation31_spill] sm:$0xff]  ;;  %v7474_v45 = vld [vmem:[#allocation33_spill] sm:$0xff] }
 0x3ed   :  { %5414 = vrcp.f32 %v1542_v43  ;;  %v7466_v43 = vld [vmem:[#allocation25_spill] sm:$0xff] }
 0x3f4   :  { %v5411_v11 = vpop.eup %5410 }
 0x3f5   :  { %v1551_v37 = vmul.f32 %v5411_v11, %v5407_v1  ;;  %v5413_v8 = vpop.eup %5412  ;;  %v7473_v1 = vld [vmem:[#allocation32_spill] sm:$0xff]  ;;  %v7475_v11 = vld [vmem:[#allocation34_spill] sm:$0xff] }
 0x3f6   :  { %v1550_v15 = vmul.f32 %v5413_v8, %v6431_v34  ;;  %v7465_v34 = vld [vmem:[#allocation24_spill] sm:$0xff] }
 0x3f7   :  { %v5415_v31 = vpop.eup %5414  ;;  %v7477_v8 = vld [vmem:[#allocation36_spill] sm:$0xff] }
 0x3f8   :  { %v6545_v12 = vadd.f32 %v1551_v37, %v1550_v15  ;;  %v7476_v37 = vld [vmem:[#allocation35_spill] sm:$0xff]  ;;  %v7478_v15 = vld [vmem:[#allocation37_spill] sm:$0xff] }
 0x3fa   :  { %5416 = vtanh.f32 %v6545_v12 }
 0x404   :  { %v5417_v61 = vpop.eup %5416 }
 0x405   :  { %v1554_v27 = vmul.f32 %v5417_v61, %v5415_v31  ;;  %v7479_v31 = vld [vmem:[#allocation38_spill] sm:$0xff]  ;;  %v7480_v61 = vld [vmem:[#allocation39_spill] sm:$0xff] }
 0x407   :  { %1620 = vmatmul.mubr.f32.vlgmr.msra.gmra.mrb[20].mxu0 %v1554_v27  ;;  %1691 = vmatmul.mubr.f32.vlgmr.msra.gmra.mrb[20].mxu1 %v1554_v27 }
 0x408   :  { %4278 = vmatpush1.bf16.msra.mxu0 %v5965_v47  ;;  %4310 = vmatpush1.bf16.msra.mxu1 %v5968_v50 }
 0x409   :  { %4280 = vmatprep.subr.bf16.mxu0 %v5971_v53  ;;  %4312 = vmatprep.subr.bf16.mxu1 %v5973_v56 }
 0x40a   :  { %1789 = vmatprep.mubr.f32.mxu0 %v7342_v35  ;;  %1860 = vmatprep.mubr.f32.mxu1 %v7342_v35 }
 0x40c   :  { %4282 = vmatpush1.bf16.msra.mxu0 %v5976_v60  ;;  %4314 = vmatpush1.bf16.msra.mxu1 %v5980_v63 }
 0x40d   :  { %4284 = vmatprep.subr.bf16.mxu0 %v5984_v3  ;;  %4316 = vmatprep.subr.bf16.mxu1 %v5987_v6 }
 0x410   :  { %4286 = vmatpush1.bf16.msra.mxu0 %v5990_v10  ;;  %4318 = vmatpush1.bf16.msra.mxu1 %v5994_v13 }
 0x411   :  { %4288 = vmatprep.subr.bf16.mxu0 %v5998_v16  ;;  %4320 = vmatprep.subr.bf16.mxu1 %v6001_v19 }
 0x414   :  { %4290 = vmatpush1.bf16.msra.mxu0 %v6004_v23  ;;  %4322 = vmatpush1.bf16.msra.mxu1 %v6008_v26 }
 0x415   :  { %4292 = vmatprep.subr.bf16.mxu0 %v6012_v29  ;;  %4324 = vmatprep.subr.bf16.mxu1 %v6015_v32 }
 0x418   :  { %4294 = vmatpush1.bf16.msra.mxu0 %v6018_v36  ;;  %4326 = vmatpush1.bf16.msra.mxu1 %v6022_v40 }
 0x419   :  { %4296 = vmatprep.subr.bf16.mxu0 %v6026_v44  ;;  %4328 = vmatprep.subr.bf16.mxu1 %v6029_v48 }
 0x41c   :  { %4298 = vmatpush1.bf16.msra.mxu0 %v6032_v54  ;;  %4330 = vmatpush1.bf16.msra.mxu1 %v6036_v58 }
 0x41d   :  { %4300 = vmatprep.subr.bf16.mxu0 %v6040_v62  ;;  %4332 = vmatprep.subr.bf16.mxu1 %v6043_v4 }
 0x420   :  { %4302 = vmatpush1.bf16.msra.mxu0 %v6046_v9  ;;  %4334 = vmatpush1.bf16.msra.mxu1 %v6050_v14 }
 0x421   :  { %4304 = vmatprep.subr.bf16.mxu0 %v6054_v18  ;;  %4336 = vmatprep.subr.bf16.mxu1 %v6057_v22 }
 0x424   :  { %4306 = vmatpush1.bf16.msra.mxu0 %v6060_v28  ;;  %4338 = vmatpush1.bf16.msra.mxu1 %v6064_v33 }
 0x425   :  { %4340 = vmatprep.subr.bf16.mxu0 %v6068_v39  ;;  %4404 = vmatprep.subr.bf16.mxu1 %v6071_v46 }
 0x427   :  { %1790 = vmatmul.mubr.f32.vlgmr.msra.gmra.mrb[6].mxu0 %v1554_v27  ;;  %1861 = vmatmul.mubr.f32.vlgmr.msra.gmra.mrb[6].mxu1 %v1554_v27  ;;  %v7481_v27 = vld [vmem:[#allocation40_spill] sm:$0xff] }
 0x428   :  { %4342 = vmatpush1.bf16.msra.mxu0 %v6077_v55  ;;  %4406 = vmatpush1.bf16.msra.mxu1 %v6081_v57 }
 0x429   :  { %4344 = vmatprep.subr.bf16.mxu0 %v6083_v59  ;;  %4408 = vmatprep.subr.bf16.mxu1 %v6087_v5 }
 0x42c   :  { %4346 = vmatpush1.bf16.msra.mxu0 %v6091_v17  ;;  %4410 = vmatpush1.bf16.msra.mxu1 %v6095_v20 }
 0x42d   :  { %4348 = vmatprep.subr.bf16.mxu0 %v6097_v21  ;;  %4412 = vmatprep.subr.bf16.mxu1 %v6100_v30 }
 0x430   :  { %4350 = vmatpush1.bf16.msra.mxu0 %v7465_v34  ;;  %4414 = vmatpush1.bf16.msra.mxu1 %v7466_v43 }
 0x431   :  { %4352 = vmatprep.subr.bf16.mxu0 %v7467_v7  ;;  %4416 = vmatprep.subr.bf16.mxu1 %v7468_v24  ;;  %v7523_v7 = vld [vmem:[#allocation84_spill] sm:$0xff] }
 0x434   :  { %4354 = vmatpush1.bf16.msra.mxu0 %v7469_v2  ;;  %4418 = vmatpush1.bf16.msra.mxu1 %v7470_v52  ;;  %v7521_v52 = vld [vmem:[#allocation78_spill] sm:$0xff] }
 0x435   :  { %4356 = vmatprep.subr.bf16.mxu0 %v7471_v38  ;;  %4420 = vmatprep.subr.bf16.mxu1 %v7472_v0  ;;  %v7482_v38 = vld [vmem:[#allocation41_spill] sm:$0xff]  ;;  %v7483_v0 = vld [vmem:[#allocation42_spill] sm:$0xff] }
 0x438   :  { %4358 = vmatpush1.bf16.msra.mxu0 %v7473_v1  ;;  %4422 = vmatpush1.bf16.msra.mxu1 %v7474_v45  ;;  %v7484_v1 = vld [vmem:[#allocation43_spill] sm:$0xff]  ;;  %v7485_v45 = vld [vmem:[#allocation44_spill] sm:$0xff] }
 0x439   :  { %4360 = vmatprep.subr.bf16.mxu0 %v7475_v11  ;;  %4424 = vmatprep.subr.bf16.mxu1 %v7476_v37  ;;  %v7486_v11 = vld [vmem:[#allocation45_spill] sm:$0xff]  ;;  %v7487_v37 = vld [vmem:[#allocation46_spill] sm:$0xff] }
 0x43c   :  { %4362 = vmatpush1.bf16.msra.mxu0 %v7477_v8  ;;  %4426 = vmatpush1.bf16.msra.mxu1 %v7478_v15  ;;  %v7488_v8 = vld [vmem:[#allocation47_spill] sm:$0xff]  ;;  %v7489_v15 = vld [vmem:[#allocation48_spill] sm:$0xff] }
 0x43d   :  { %4364 = vmatprep.subr.bf16.mxu0 %v7479_v31  ;;  %4428 = vmatprep.subr.bf16.mxu1 %v7480_v61  ;;  %v7490_v31 = vld [vmem:[#allocation49_spill] sm:$0xff]  ;;  %v7491_v61 = vld [vmem:[#allocation50_spill] sm:$0xff] }
 0x440   :  { %4366 = vmatpush1.bf16.msra.mxu0 %v7481_v27  ;;  %4430 = vmatpush1.bf16.msra.mxu1 %v7482_v38  ;;  %v7492_v27 = vld [vmem:[#allocation51_spill] sm:$0xff]  ;;  %v7493_v38 = vld [vmem:[#allocation52_spill] sm:$0xff] }
 0x441   :  { %4368 = vmatprep.subr.bf16.mxu0 %v7483_v0  ;;  %4432 = vmatprep.subr.bf16.mxu1 %v7484_v1  ;;  %v7494_v0 = vld [vmem:[#allocation53_spill] sm:$0xff]  ;;  %v7495_v1 = vld [vmem:[#allocation54_spill] sm:$0xff] }
 0x444   :  { %4370 = vmatpush1.bf16.msra.mxu0 %v7485_v45  ;;  %4434 = vmatpush1.bf16.msra.mxu1 %v7486_v11  ;;  %v7496_v45 = vld [vmem:[#allocation55_spill] sm:$0xff]  ;;  %v7497_v11 = vld [vmem:[#allocation56_spill] sm:$0xff] }
 0x445   :  { %4372 = vmatprep.subr.bf16.mxu0 %v7487_v37  ;;  %4436 = vmatprep.subr.bf16.mxu1 %v7488_v8  ;;  %v7498_v37 = vld [vmem:[#allocation57_spill] sm:$0xff]  ;;  %v7499_v8 = vld [vmem:[#allocation58_spill] sm:$0xff] }
 0x448   :  { %4374 = vmatpush1.bf16.msra.mxu0 %v7489_v15  ;;  %4438 = vmatpush1.bf16.msra.mxu1 %v7490_v31  ;;  %v7500_v15 = vld [vmem:[#allocation59_spill] sm:$0xff]  ;;  %v7501_v31 = vld [vmem:[#allocation60_spill] sm:$0xff] }
 0x449   :  { %4376 = vmatprep.subr.bf16.mxu0 %v7491_v61  ;;  %4440 = vmatprep.subr.bf16.mxu1 %v7492_v27  ;;  %v7502_v61 = vld [vmem:[#allocation61_spill] sm:$0xff]  ;;  %v7503_v27 = vld [vmem:[#allocation62_spill] sm:$0xff] }
 0x44c   :  { %4378 = vmatpush1.bf16.msra.mxu0 %v7493_v38  ;;  %4442 = vmatpush1.bf16.msra.mxu1 %v7494_v0  ;;  %v7504_v38 = vld [vmem:[#allocation63_spill] sm:$0xff]  ;;  %v7505_v0 = vld [vmem:[#allocation64_spill] sm:$0xff] }
 0x44d   :  { %4380 = vmatprep.subr.bf16.mxu0 %v7495_v1  ;;  %4444 = vmatprep.subr.bf16.mxu1 %v7496_v45  ;;  %v7506_v1 = vld [vmem:[#allocation65_spill] sm:$0xff]  ;;  %v7507_v45 = vld [vmem:[#allocation66_spill] sm:$0xff] }
 0x450   :  { %4382 = vmatpush1.bf16.msra.mxu0 %v7497_v11  ;;  %4446 = vmatpush1.bf16.msra.mxu1 %v7498_v37  ;;  %v7508_v11 = vld [vmem:[#allocation67_spill] sm:$0xff]  ;;  %v7509_v37 = vld [vmem:[#allocation68_spill] sm:$0xff] }
 0x451   :  { %4384 = vmatprep.subr.bf16.mxu0 %v7499_v8  ;;  %4448 = vmatprep.subr.bf16.mxu1 %v7500_v15  ;;  %v7510_v8 = vld [vmem:[#allocation69_spill] sm:$0xff]  ;;  %v7511_v15 = vld [vmem:[#allocation70_spill] sm:$0xff] }
 0x454   :  { %4386 = vmatpush1.bf16.msra.mxu0 %v7501_v31  ;;  %4450 = vmatpush1.bf16.msra.mxu1 %v7502_v61  ;;  %v7512_v31 = vld [vmem:[#allocation71_spill] sm:$0xff]  ;;  %v7513_v61 = vld [vmem:[#allocation72_spill] sm:$0xff] }
 0x455   :  { %4388 = vmatprep.subr.bf16.mxu0 %v7503_v27  ;;  %4452 = vmatprep.subr.bf16.mxu1 %v7504_v38  ;;  %v7514_v27 = vld [vmem:[#allocation73_spill] sm:$0xff]  ;;  %v7515_v38 = vld [vmem:[#allocation74_spill] sm:$0xff] }
 0x458   :  { %4390 = vmatpush1.bf16.msra.mxu0 %v7505_v0  ;;  %4454 = vmatpush1.bf16.msra.mxu1 %v7506_v1  ;;  %v7516_v0 = vld [vmem:[#allocation75_spill] sm:$0xff]  ;;  %v7517_v1 = vld [vmem:[#allocation76_spill] sm:$0xff] }
 0x459   :  { %4392 = vmatprep.subr.bf16.mxu0 %v7507_v45  ;;  %4456 = vmatprep.subr.bf16.mxu1 %v7508_v11  ;;  %v7518_v45 = vld [vmem:[#allocation77_spill] sm:$0xff] }
 0x45a   :  { %v7519_v11 = vld [vmem:[#allocation21_spill] sm:$0xff] }
 0x45c   :  { %4394 = vmatpush1.bf16.msra.mxu0 %v7509_v37  ;;  %4458 = vmatpush1.bf16.msra.mxu1 %v7510_v8  ;;  %v7520_v37 = vld [vmem:[#allocation22_spill] sm:$0xff] }
 0x45d   :  { %4396 = vmatprep.subr.bf16.mxu0 %v7511_v15  ;;  %4460 = vmatprep.subr.bf16.mxu1 %v7512_v31 }
 0x460   :  { %4398 = vmatpush1.bf16.msra.mxu0 %v7513_v61  ;;  %4462 = vmatpush1.bf16.msra.mxu1 %v7514_v27 }
 0x461   :  { %4400 = vmatprep.subr.bf16.mxu0 %v7515_v38  ;;  %4464 = vmatprep.subr.bf16.mxu1 %v7516_v0  ;;  %v7522_v0 = vld [vmem:[#allocation83_spill] sm:$0xff] }
 0x464   :  { %4402 = vmatpush1.bf16.msra.mxu0 %v7517_v1  ;;  %4466 = vmatpush1.bf16.msra.mxu1 %v7518_v45 }
 0x465   :  { %4468 = vmatprep.subr.bf16.mxu0 %v7519_v11  ;;  %4500 = vmatprep.subr.bf16.mxu1 %v7520_v37 }
 0x4da   :  { %v1621_v8 = vpop.f32.mrb[20].mxu0  ;;  %v1692_v15 = vpop.f32.mrb[20].mxu1 }
 0x4db   :  { %v1622_v31 = vadd.f32 %v1621_v8, %v7521_v52  ;;  %v1623_v2 = vpop.f32.mrb[21].mxu0  ;;  %v1694_v61 = vpop.f32.mrb[21].mxu1  ;;  %v1693_v1 = vadd.f32 %v1692_v15, %v7522_v0 }
 0x4dc   :  { %v1624_v27 = vadd.f32 %v1623_v2, %v7460_v42  ;;  %v1695_v45 = vadd.f32 %v1694_v61, %v7523_v7 }
 0x4dd   :  { %v3549_v24 = vmul.f32 -1.442695, %v1622_v31  ;;  %v3551_v43 = vmul.f32 -1.442695, %v1693_v1 }
 0x4de   :  { %v3550_v38 = vmul.f32 -1.442695, %v1624_v27 }
 0x4df   :  { %5418 = vpow2.f32 %v3549_v24 }
 0x4e0   :  { %5420 = vpow2.f32 %v3550_v38 }
 0x4e1   :  { %5422 = vtanh.f32 %v1695_v45 }
 0x4e2   :  { %5424 = vpow2.f32 %v3551_v43 }
 0x4e9   :  { %v5419_v11 = vpop.eup %5418 }
 0x4ea   :  { %v1706_v34 = vadd.f32 1.0, %v5419_v11  ;;  %v5421_v37 = vpop.eup %5420 }
 0x4eb   :  { %v1707_v8 = vadd.f32 1.0, %v5421_v37  ;;  %v5423_v52 = vpop.eup %5422 }
 0x4ec   :  { %5426 = vrcp.f32 %v1706_v34  ;;  %v5425_v30 = vpop.eup %5424 }
 0x4ed   :  { %5428 = vrcp.f32 %v1707_v8  ;;  %v1708_v24 = vadd.f32 1.0, %v5425_v30  ;;  %v7524_v30 = vld [vmem:[#allocation81_spill] sm:$0xff] }
 0x4ef   :  { %5430 = vrcp.f32 %v1708_v24 }
 0x4f6   :  { %v5427_v2 = vpop.eup %5426 }
 0x4f7   :  { %v1717_v31 = vmul.f32 %v5427_v2, %v5423_v52  ;;  %v5429_v27 = vpop.eup %5428 }
 0x4f8   :  { %v1716_v38 = vmul.f32 %v5429_v27, %v6537_v41 }
 0x4f9   :  { %v5431_v41 = vpop.eup %5430 }
 0x4fa   :  { %v1791_v15 = vpop.f32.mrb[6].mxu0  ;;  %v1862_v0 = vpop.f32.mrb[6].mxu1  ;;  %v6651_v61 = vadd.f32 %v1717_v31, %v1716_v38 }
 0x4fb   :  { %v5265_v1 = vadd.f32 %v1791_v15, %v7463_v51  ;;  %v1793_v45 = vpop.f32.mrb[7].mxu0  ;;  %v1864_v11 = vpop.f32.mrb[7].mxu1  ;;  %v5281_v52 = vadd.f32 %v1862_v0, %v7524_v30 }
 0x4fc   :  { %v5266_v34 = vadd.f32 %v1793_v45, %v7403_v49  ;;  %5432 = vtanh.f32 %v6651_v61  ;;  %v5282_v8 = vadd.f32 %v1864_v11, %v6299_v25 }
 0x4fd   :  { %v3552_v43 = vmul.f32 -1.442695, %v5265_v1  ;;  %v3554_v31 = vmul.f32 -1.442695, %v5281_v52 }
 0x4fe   :  { %v3553_v37 = vmul.f32 -1.442695, %v5266_v34 }
 0x4ff   :  { %5434 = vpow2.f32 %v3552_v43 }
 0x500   :  { %5436 = vpow2.f32 %v3553_v37 }
 0x501   :  { %5438 = vtanh.f32 %v5282_v8 }
 0x502   :  { %5440 = vpow2.f32 %v3554_v31  ;;  %v7527_v31 = vld [vmem:[#allocation25_spill] sm:$0xff] }
 0x506   :  { %v5433_v2 = vpop.eup %5432 }
 0x507   :  { %v1720_v27 = vmul.f32 %v5433_v2, %v5431_v41 }
 0x509   :  { %v5435_v38 = vpop.eup %5434  ;;  %1959 = vmatprep.mubr.f32.mxu0 %v1720_v27  ;;  %2030 = vmatprep.mubr.f32.mxu1 %v1720_v27  ;;  %v7528_v27 = vld [vmem:[#allocation26_spill] sm:$0xff] }
 0x50a   :  { %v1880_v15 = vadd.f32 1.0, %v5435_v38  ;;  %v5437_v24 = vpop.eup %5436  ;;  %v7529_v38 = vld [vmem:[#allocation27_spill] sm:$0xff] }
 0x50b   :  { %v1881_v1 = vadd.f32 1.0, %v5437_v24  ;;  %v5439_v45 = vpop.eup %5438  ;;  %v7531_v24 = vld [vmem:[#allocation29_spill] sm:$0xff] }
 0x50c   :  { %5442 = vrcp.f32 %v1880_v15  ;;  %v5441_v34 = vpop.eup %5440  ;;  %v7530_v15 = vld [vmem:[#allocation28_spill] sm:$0xff] }
 0x50d   :  { %5444 = vrcp.f32 %v1881_v1  ;;  %v1882_v30 = vadd.f32 1.0, %v5441_v34  ;;  %v7532_v1 = vld [vmem:[#allocation30_spill] sm:$0xff]  ;;  %v7534_v34 = vld [vmem:[#allocation32_spill] sm:$0xff] }
 0x50f   :  { %5446 = vrcp.f32 %v1882_v30  ;;  %v7526_v30 = vld [vmem:[#allocation24_spill] sm:$0xff] }
 0x516   :  { %v5443_v43 = vpop.eup %5442 }
 0x517   :  { %v1891_v0 = vmul.f32 %v5443_v43, %v5439_v45  ;;  %v5445_v37 = vpop.eup %5444  ;;  %v7533_v45 = vld [vmem:[#allocation31_spill] sm:$0xff]  ;;  %v7535_v43 = vld [vmem:[#allocation33_spill] sm:$0xff] }
 0x518   :  { %v1890_v11 = vmul.f32 %v5445_v37, %v6545_v12  ;;  %v7525_v12 = vld [vmem:[#allocation23_spill] sm:$0xff] }
 0x519   :  { %v5447_v41 = vpop.eup %5446  ;;  %v7537_v37 = vld [vmem:[#allocation35_spill] sm:$0xff] }
 0x51a   :  { %v6659_v52 = vadd.f32 %v1891_v0, %v1890_v11  ;;  %v7536_v0 = vld [vmem:[#allocation34_spill] sm:$0xff]  ;;  %v7538_v11 = vld [vmem:[#allocation36_spill] sm:$0xff] }
 0x51c   :  { %5448 = vtanh.f32 %v6659_v52 }
 0x526   :  { %v5449_v8 = vpop.eup %5448 }
 0x527   :  { %v1894_v2 = vmul.f32 %v5449_v8, %v5447_v41  ;;  %v7539_v41 = vld [vmem:[#allocation37_spill] sm:$0xff]  ;;  %v7540_v8 = vld [vmem:[#allocation38_spill] sm:$0xff] }
 0x529   :  { %1960 = vmatmul.mubr.f32.vlgmr.msra.gmra.mrb[22].mxu0 %v1894_v2  ;;  %2031 = vmatmul.mubr.f32.vlgmr.msra.gmra.mrb[22].mxu1 %v1894_v2 }
 0x52a   :  { %4470 = vmatpush1.bf16.msra.mxu0 %v5965_v47  ;;  %4502 = vmatpush1.bf16.msra.mxu1 %v5968_v50 }
 0x52b   :  { %4472 = vmatprep.subr.bf16.mxu0 %v5971_v53  ;;  %4504 = vmatprep.subr.bf16.mxu1 %v5973_v56 }
 0x52c   :  { %2129 = vmatprep.mubr.f32.mxu0 %v7342_v35  ;;  %2200 = vmatprep.mubr.f32.mxu1 %v7342_v35 }
 0x52e   :  { %4474 = vmatpush1.bf16.msra.mxu0 %v5976_v60  ;;  %4506 = vmatpush1.bf16.msra.mxu1 %v5980_v63 }
 0x52f   :  { %4476 = vmatprep.subr.bf16.mxu0 %v5984_v3  ;;  %4508 = vmatprep.subr.bf16.mxu1 %v5987_v6 }
 0x532   :  { %4478 = vmatpush1.bf16.msra.mxu0 %v5990_v10  ;;  %4510 = vmatpush1.bf16.msra.mxu1 %v5994_v13 }
 0x533   :  { %4480 = vmatprep.subr.bf16.mxu0 %v5998_v16  ;;  %4512 = vmatprep.subr.bf16.mxu1 %v6001_v19 }
 0x536   :  { %4482 = vmatpush1.bf16.msra.mxu0 %v6004_v23  ;;  %4514 = vmatpush1.bf16.msra.mxu1 %v6008_v26 }
 0x537   :  { %4484 = vmatprep.subr.bf16.mxu0 %v6012_v29  ;;  %4516 = vmatprep.subr.bf16.mxu1 %v6015_v32 }
 0x53a   :  { %4486 = vmatpush1.bf16.msra.mxu0 %v6018_v36  ;;  %4518 = vmatpush1.bf16.msra.mxu1 %v6022_v40 }
 0x53b   :  { %4488 = vmatprep.subr.bf16.mxu0 %v6026_v44  ;;  %4520 = vmatprep.subr.bf16.mxu1 %v6029_v48 }
 0x53e   :  { %4490 = vmatpush1.bf16.msra.mxu0 %v6032_v54  ;;  %4522 = vmatpush1.bf16.msra.mxu1 %v6036_v58 }
 0x53f   :  { %4492 = vmatprep.subr.bf16.mxu0 %v6040_v62  ;;  %4524 = vmatprep.subr.bf16.mxu1 %v6043_v4 }
 0x542   :  { %4494 = vmatpush1.bf16.msra.mxu0 %v6046_v9  ;;  %4526 = vmatpush1.bf16.msra.mxu1 %v6050_v14 }
 0x543   :  { %4496 = vmatprep.subr.bf16.mxu0 %v6054_v18  ;;  %4528 = vmatprep.subr.bf16.mxu1 %v6057_v22 }
 0x546   :  { %4498 = vmatpush1.bf16.msra.mxu0 %v6060_v28  ;;  %4530 = vmatpush1.bf16.msra.mxu1 %v6064_v33 }
 0x547   :  { %4532 = vmatprep.subr.bf16.mxu0 %v6068_v39  ;;  %4596 = vmatprep.subr.bf16.mxu1 %v6071_v46 }
 0x549   :  { %2130 = vmatmul.mubr.f32.vlgmr.msra.gmra.mrb[8].mxu0 %v1894_v2  ;;  %2201 = vmatmul.mubr.f32.vlgmr.msra.gmra.mrb[8].mxu1 %v1894_v2  ;;  %v7541_v2 = vld [vmem:[#allocation39_spill] sm:$0xff] }
 0x54a   :  { %4534 = vmatpush1.bf16.msra.mxu0 %v6077_v55  ;;  %4598 = vmatpush1.bf16.msra.mxu1 %v6081_v57 }
 0x54b   :  { %4536 = vmatprep.subr.bf16.mxu0 %v6083_v59  ;;  %4600 = vmatprep.subr.bf16.mxu1 %v6087_v5 }
 0x54e   :  { %4538 = vmatpush1.bf16.msra.mxu0 %v6091_v17  ;;  %4602 = vmatpush1.bf16.msra.mxu1 %v6095_v20 }
 0x54f   :  { %4540 = vmatprep.subr.bf16.mxu0 %v6097_v21  ;;  %4604 = vmatprep.subr.bf16.mxu1 %v7525_v12 }
 0x552   :  { %4542 = vmatpush1.bf16.msra.mxu0 %v7526_v30  ;;  %4606 = vmatpush1.bf16.msra.mxu1 %v7527_v31 }
 0x553   :  { %4544 = vmatprep.subr.bf16.mxu0 %v7528_v27  ;;  %4608 = vmatprep.subr.bf16.mxu1 %v7529_v38 }
 0x556   :  { %4546 = vmatpush1.bf16.msra.mxu0 %v7530_v15  ;;  %4610 = vmatpush1.bf16.msra.mxu1 %v7531_v24  ;;  %v7542_v24 = vld [vmem:[#allocation40_spill] sm:$0xff]  ;;  %v7582_v15 = vld [vmem:[#allocation78_spill] sm:$0xff] }
 0x557   :  { %4548 = vmatprep.subr.bf16.mxu0 %v7532_v1  ;;  %4612 = vmatprep.subr.bf16.mxu1 %v7533_v45  ;;  %v7543_v1 = vld [vmem:[#allocation41_spill] sm:$0xff]  ;;  %v7544_v45 = vld [vmem:[#allocation42_spill] sm:$0xff] }
 0x55a   :  { %4550 = vmatpush1.bf16.msra.mxu0 %v7534_v34  ;;  %4614 = vmatpush1.bf16.msra.mxu1 %v7535_v43  ;;  %v7545_v34 = vld [vmem:[#allocation43_spill] sm:$0xff]  ;;  %v7546_v43 = vld [vmem:[#allocation44_spill] sm:$0xff] }
 0x55b   :  { %4552 = vmatprep.subr.bf16.mxu0 %v7536_v0  ;;  %4616 = vmatprep.subr.bf16.mxu1 %v7537_v37  ;;  %v7547_v0 = vld [vmem:[#allocation45_spill] sm:$0xff]  ;;  %v7548_v37 = vld [vmem:[#allocation46_spill] sm:$0xff] }
 0x55e   :  { %4554 = vmatpush1.bf16.msra.mxu0 %v7538_v11  ;;  %4618 = vmatpush1.bf16.msra.mxu1 %v7539_v41  ;;  %v7549_v11 = vld [vmem:[#allocation47_spill] sm:$0xff]  ;;  %v7550_v41 = vld [vmem:[#allocation48_spill] sm:$0xff] }
 0x55f   :  { %4556 = vmatprep.subr.bf16.mxu0 %v7540_v8  ;;  %4620 = vmatprep.subr.bf16.mxu1 %v7541_v2  ;;  %v7551_v8 = vld [vmem:[#allocation49_spill] sm:$0xff]  ;;  %v7552_v2 = vld [vmem:[#allocation50_spill] sm:$0xff] }
 0x562   :  { %4558 = vmatpush1.bf16.msra.mxu0 %v7542_v24  ;;  %4622 = vmatpush1.bf16.msra.mxu1 %v7543_v1  ;;  %v7553_v24 = vld [vmem:[#allocation51_spill] sm:$0xff]  ;;  %v7554_v1 = vld [vmem:[#allocation52_spill] sm:$0xff] }
 0x563   :  { %4560 = vmatprep.subr.bf16.mxu0 %v7544_v45  ;;  %4624 = vmatprep.subr.bf16.mxu1 %v7545_v34  ;;  %v7555_v45 = vld [vmem:[#allocation53_spill] sm:$0xff]  ;;  %v7556_v34 = vld [vmem:[#allocation54_spill] sm:$0xff] }
 0x566   :  { %4562 = vmatpush1.bf16.msra.mxu0 %v7546_v43  ;;  %4626 = vmatpush1.bf16.msra.mxu1 %v7547_v0  ;;  %v7557_v43 = vld [vmem:[#allocation55_spill] sm:$0xff]  ;;  %v7558_v0 = vld [vmem:[#allocation56_spill] sm:$0xff] }
 0x567   :  { %4564 = vmatprep.subr.bf16.mxu0 %v7548_v37  ;;  %4628 = vmatprep.subr.bf16.mxu1 %v7549_v11  ;;  %v7559_v37 = vld [vmem:[#allocation57_spill] sm:$0xff]  ;;  %v7560_v11 = vld [vmem:[#allocation58_spill] sm:$0xff] }
 0x56a   :  { %4566 = vmatpush1.bf16.msra.mxu0 %v7550_v41  ;;  %4630 = vmatpush1.bf16.msra.mxu1 %v7551_v8  ;;  %v7561_v41 = vld [vmem:[#allocation59_spill] sm:$0xff]  ;;  %v7562_v8 = vld [vmem:[#allocation60_spill] sm:$0xff] }
 0x56b   :  { %4568 = vmatprep.subr.bf16.mxu0 %v7552_v2  ;;  %4632 = vmatprep.subr.bf16.mxu1 %v7553_v24  ;;  %v7563_v2 = vld [vmem:[#allocation61_spill] sm:$0xff]  ;;  %v7564_v24 = vld [vmem:[#allocation62_spill] sm:$0xff] }
 0x56e   :  { %4570 = vmatpush1.bf16.msra.mxu0 %v7554_v1  ;;  %4634 = vmatpush1.bf16.msra.mxu1 %v7555_v45  ;;  %v7565_v1 = vld [vmem:[#allocation63_spill] sm:$0xff]  ;;  %v7566_v45 = vld [vmem:[#allocation64_spill] sm:$0xff] }
 0x56f   :  { %4572 = vmatprep.subr.bf16.mxu0 %v7556_v34  ;;  %4636 = vmatprep.subr.bf16.mxu1 %v7557_v43  ;;  %v7567_v34 = vld [vmem:[#allocation65_spill] sm:$0xff]  ;;  %v7568_v43 = vld [vmem:[#allocation66_spill] sm:$0xff] }
 0x572   :  { %4574 = vmatpush1.bf16.msra.mxu0 %v7558_v0  ;;  %4638 = vmatpush1.bf16.msra.mxu1 %v7559_v37  ;;  %v7569_v0 = vld [vmem:[#allocation67_spill] sm:$0xff]  ;;  %v7570_v37 = vld [vmem:[#allocation68_spill] sm:$0xff] }
 0x573   :  { %4576 = vmatprep.subr.bf16.mxu0 %v7560_v11  ;;  %4640 = vmatprep.subr.bf16.mxu1 %v7561_v41  ;;  %v7571_v11 = vld [vmem:[#allocation69_spill] sm:$0xff]  ;;  %v7572_v41 = vld [vmem:[#allocation70_spill] sm:$0xff] }
 0x576   :  { %4578 = vmatpush1.bf16.msra.mxu0 %v7562_v8  ;;  %4642 = vmatpush1.bf16.msra.mxu1 %v7563_v2  ;;  %v7573_v8 = vld [vmem:[#allocation71_spill] sm:$0xff]  ;;  %v7574_v2 = vld [vmem:[#allocation72_spill] sm:$0xff] }
 0x577   :  { %4580 = vmatprep.subr.bf16.mxu0 %v7564_v24  ;;  %4644 = vmatprep.subr.bf16.mxu1 %v7565_v1  ;;  %v7575_v24 = vld [vmem:[#allocation73_spill] sm:$0xff]  ;;  %v7576_v1 = vld [vmem:[#allocation74_spill] sm:$0xff] }
 0x57a   :  { %4582 = vmatpush1.bf16.msra.mxu0 %v7566_v45  ;;  %4646 = vmatpush1.bf16.msra.mxu1 %v7567_v34  ;;  %v7577_v45 = vld [vmem:[#allocation75_spill] sm:$0xff]  ;;  %v7578_v34 = vld [vmem:[#allocation76_spill] sm:$0xff] }
 0x57b   :  { %4584 = vmatprep.subr.bf16.mxu0 %v7568_v43  ;;  %4648 = vmatprep.subr.bf16.mxu1 %v7569_v0  ;;  %v7579_v43 = vld [vmem:[#allocation77_spill] sm:$0xff] }
 0x57c   :  { %v7580_v0 = vld [vmem:[#allocation21_spill] sm:$0xff] }
 0x57e   :  { %4586 = vmatpush1.bf16.msra.mxu0 %v7570_v37  ;;  %4650 = vmatpush1.bf16.msra.mxu1 %v7571_v11  ;;  %v7581_v37 = vld [vmem:[#allocation22_spill] sm:$0xff] }
 0x57f   :  { %4588 = vmatprep.subr.bf16.mxu0 %v7572_v41  ;;  %4652 = vmatprep.subr.bf16.mxu1 %v7573_v8 }
 0x582   :  { %4590 = vmatpush1.bf16.msra.mxu0 %v7574_v2  ;;  %4654 = vmatpush1.bf16.msra.mxu1 %v7575_v24 }
 0x583   :  { %4592 = vmatprep.subr.bf16.mxu0 %v7576_v1  ;;  %4656 = vmatprep.subr.bf16.mxu1 %v7577_v45  ;;  %v7583_v45 = vld [vmem:[#allocation83_spill] sm:$0xff] }
 0x586   :  { %4594 = vmatpush1.bf16.msra.mxu0 %v7578_v34  ;;  %4658 = vmatpush1.bf16.msra.mxu1 %v7579_v43 }
 0x587   :  { %4660 = vmatprep.subr.bf16.mxu0 %v7580_v0  ;;  %4692 = vmatprep.subr.bf16.mxu1 %v7581_v37 }
 0x5fc   :  { %v1961_v11 = vpop.f32.mrb[22].mxu0  ;;  %v2032_v41 = vpop.f32.mrb[22].mxu1 }
 0x5fd   :  { %v1962_v8 = vadd.f32 %v1961_v11, %v7582_v15  ;;  %v1963_v38 = vpop.f32.mrb[23].mxu0  ;;  %v2034_v2 = vpop.f32.mrb[23].mxu1  ;;  %v2033_v34 = vadd.f32 %v2032_v41, %v7583_v45 }
 0x5fe   :  { %v1964_v24 = vadd.f32 %v1963_v38, %v7460_v42  ;;  %v2035_v43 = vadd.f32 %v2034_v2, %v7523_v7 }
 0x5ff   :  { %v3555_v27 = vmul.f32 -1.442695, %v1962_v8  ;;  %v3557_v31 = vmul.f32 -1.442695, %v2033_v34 }
 0x600   :  { %v3556_v1 = vmul.f32 -1.442695, %v1964_v24 }
 0x601   :  { %5450 = vpow2.f32 %v3555_v27 }
 0x602   :  { %5452 = vpow2.f32 %v3556_v1 }
 0x603   :  { %5454 = vtanh.f32 %v2035_v43 }
 0x604   :  { %5456 = vpow2.f32 %v3557_v31 }
 0x60b   :  { %v5451_v0 = vpop.eup %5450 }
 0x60c   :  { %v2046_v30 = vadd.f32 1.0, %v5451_v0  ;;  %v5453_v37 = vpop.eup %5452 }
 0x60d   :  { %v2047_v11 = vadd.f32 1.0, %v5453_v37  ;;  %v5455_v15 = vpop.eup %5454 }
 0x60e   :  { %5458 = vrcp.f32 %v2046_v30  ;;  %v5457_v12 = vpop.eup %5456 }
 0x60f   :  { %5460 = vrcp.f32 %v2047_v11  ;;  %v2048_v27 = vadd.f32 1.0, %v5457_v12  ;;  %v7584_v12 = vld [vmem:[#allocation81_spill] sm:$0xff] }
 0x611   :  { %5462 = vrcp.f32 %v2048_v27 }
 0x618   :  { %v5459_v38 = vpop.eup %5458 }
 0x619   :  { %v2057_v8 = vmul.f32 %v5459_v38, %v5455_v15  ;;  %v5461_v24 = vpop.eup %5460 }
 0x61a   :  { %v2056_v1 = vmul.f32 %v5461_v24, %v6651_v61 }
 0x61b   :  { %v5463_v61 = vpop.eup %5462 }
 0x61c   :  { %v2131_v41 = vpop.f32.mrb[8].mxu0  ;;  %v2202_v45 = vpop.f32.mrb[8].mxu1  ;;  %v6765_v2 = vadd.f32 %v2057_v8, %v2056_v1 }
 0x61d   :  { %v5267_v34 = vadd.f32 %v2131_v41, %v7463_v51  ;;  %v2133_v43 = vpop.f32.mrb[9].mxu0  ;;  %v2204_v0 = vpop.f32.mrb[9].mxu1  ;;  %v5283_v15 = vadd.f32 %v2202_v45, %v7584_v12 }
 0x61e   :  { %v5268_v30 = vadd.f32 %v2133_v43, %v7403_v49  ;;  %5464 = vtanh.f32 %v6765_v2  ;;  %v5284_v11 = vadd.f32 %v2204_v0, %v6299_v25 }
 0x61f   :  { %v3558_v31 = vmul.f32 -1.442695, %v5267_v34  ;;  %v3560_v8 = vmul.f32 -1.442695, %v5283_v15 }
 0x620   :  { %v3559_v37 = vmul.f32 -1.442695, %v5268_v30 }
 0x621   :  { %5466 = vpow2.f32 %v3558_v31 }
 0x622   :  { %5468 = vpow2.f32 %v3559_v37 }
 0x623   :  { %5470 = vtanh.f32 %v5284_v11 }
 0x624   :  { %5472 = vpow2.f32 %v3560_v8  ;;  %v7587_v8 = vld [vmem:[#allocation25_spill] sm:$0xff] }
 0x628   :  { %v5465_v38 = vpop.eup %5464 }
 0x629   :  { %v2060_v24 = vmul.f32 %v5465_v38, %v5463_v61 }
 0x62b   :  { %v5467_v1 = vpop.eup %5466  ;;  %2299 = vmatprep.mubr.f32.mxu0 %v2060_v24  ;;  %2370 = vmatprep.mubr.f32.mxu1 %v2060_v24  ;;  %v7588_v24 = vld [vmem:[#allocation26_spill] sm:$0xff] }
 0x62c   :  { %v2220_v41 = vadd.f32 1.0, %v5467_v1  ;;  %v5469_v27 = vpop.eup %5468  ;;  %v7589_v1 = vld [vmem:[#allocation27_spill] sm:$0xff] }
 0x62d   :  { %v2221_v34 = vadd.f32 1.0, %v5469_v27  ;;  %v5471_v43 = vpop.eup %5470  ;;  %v7591_v27 = vld [vmem:[#allocation29_spill] sm:$0xff] }
 0x62e   :  { %5474 = vrcp.f32 %v2220_v41  ;;  %v5473_v30 = vpop.eup %5472  ;;  %v7590_v41 = vld [vmem:[#allocation28_spill] sm:$0xff] }
 0x62f   :  { %5476 = vrcp.f32 %v2221_v34  ;;  %v2222_v12 = vadd.f32 1.0, %v5473_v30  ;;  %v7592_v34 = vld [vmem:[#allocation30_spill] sm:$0xff]  ;;  %v7594_v30 = vld [vmem:[#allocation32_spill] sm:$0xff] }
 0x631   :  { %5478 = vrcp.f32 %v2222_v12  ;;  %v7586_v12 = vld [vmem:[#allocation24_spill] sm:$0xff] }
 0x638   :  { %v5475_v31 = vpop.eup %5474 }
 0x639   :  { %v2231_v45 = vmul.f32 %v5475_v31, %v5471_v43  ;;  %v5477_v37 = vpop.eup %5476  ;;  %v7593_v43 = vld [vmem:[#allocation31_spill] sm:$0xff]  ;;  %v7595_v31 = vld [vmem:[#allocation33_spill] sm:$0xff] }
 0x63a   :  { %v2230_v0 = vmul.f32 %v5477_v37, %v6659_v52  ;;  %v7585_v52 = vld [vmem:[#allocation23_spill] sm:$0xff] }
 0x63b   :  { %v5479_v61 = vpop.eup %5478  ;;  %v7597_v37 = vld [vmem:[#allocation35_spill] sm:$0xff] }
 0x63c   :  { %v6773_v15 = vadd.f32 %v2231_v45, %v2230_v0  ;;  %v7596_v45 = vld [vmem:[#allocation34_spill] sm:$0xff]  ;;  %v7598_v0 = vld [vmem:[#allocation36_spill] sm:$0xff] }
 0x63e   :  { %5480 = vtanh.f32 %v6773_v15 }
 0x648   :  { %v5481_v11 = vpop.eup %5480 }
 0x649   :  { %v2234_v38 = vmul.f32 %v5481_v11, %v5479_v61  ;;  %v7599_v61 = vld [vmem:[#allocation37_spill] sm:$0xff]  ;;  %v7600_v11 = vld [vmem:[#allocation38_spill] sm:$0xff] }
 0x64b   :  { %2300 = vmatmul.mubr.f32.vlgmr.msra.gmra.mrb[24].mxu0 %v2234_v38  ;;  %2371 = vmatmul.mubr.f32.vlgmr.msra.gmra.mrb[24].mxu1 %v2234_v38 }
 0x64c   :  { %4662 = vmatpush1.bf16.msra.mxu0 %v5965_v47  ;;  %4694 = vmatpush1.bf16.msra.mxu1 %v5968_v50 }
 0x64d   :  { %4664 = vmatprep.subr.bf16.mxu0 %v5971_v53  ;;  %4696 = vmatprep.subr.bf16.mxu1 %v5973_v56 }
 0x64e   :  { %2469 = vmatprep.mubr.f32.mxu0 %v7342_v35  ;;  %2540 = vmatprep.mubr.f32.mxu1 %v7342_v35 }
 0x650   :  { %4666 = vmatpush1.bf16.msra.mxu0 %v5976_v60  ;;  %4698 = vmatpush1.bf16.msra.mxu1 %v5980_v63 }
 0x651   :  { %4668 = vmatprep.subr.bf16.mxu0 %v5984_v3  ;;  %4700 = vmatprep.subr.bf16.mxu1 %v5987_v6 }
 0x654   :  { %4670 = vmatpush1.bf16.msra.mxu0 %v5990_v10  ;;  %4702 = vmatpush1.bf16.msra.mxu1 %v5994_v13 }
 0x655   :  { %4672 = vmatprep.subr.bf16.mxu0 %v5998_v16  ;;  %4704 = vmatprep.subr.bf16.mxu1 %v6001_v19 }
 0x658   :  { %4674 = vmatpush1.bf16.msra.mxu0 %v6004_v23  ;;  %4706 = vmatpush1.bf16.msra.mxu1 %v6008_v26 }
 0x659   :  { %4676 = vmatprep.subr.bf16.mxu0 %v6012_v29  ;;  %4708 = vmatprep.subr.bf16.mxu1 %v6015_v32 }
 0x65c   :  { %4678 = vmatpush1.bf16.msra.mxu0 %v6018_v36  ;;  %4710 = vmatpush1.bf16.msra.mxu1 %v6022_v40 }
 0x65d   :  { %4680 = vmatprep.subr.bf16.mxu0 %v6026_v44  ;;  %4712 = vmatprep.subr.bf16.mxu1 %v6029_v48 }
 0x660   :  { %4682 = vmatpush1.bf16.msra.mxu0 %v6032_v54  ;;  %4714 = vmatpush1.bf16.msra.mxu1 %v6036_v58 }
 0x661   :  { %4684 = vmatprep.subr.bf16.mxu0 %v6040_v62  ;;  %4716 = vmatprep.subr.bf16.mxu1 %v6043_v4 }
 0x664   :  { %4686 = vmatpush1.bf16.msra.mxu0 %v6046_v9  ;;  %4718 = vmatpush1.bf16.msra.mxu1 %v6050_v14 }
 0x665   :  { %4688 = vmatprep.subr.bf16.mxu0 %v6054_v18  ;;  %4720 = vmatprep.subr.bf16.mxu1 %v6057_v22 }
 0x668   :  { %4690 = vmatpush1.bf16.msra.mxu0 %v6060_v28  ;;  %4722 = vmatpush1.bf16.msra.mxu1 %v6064_v33 }
 0x669   :  { %4724 = vmatprep.subr.bf16.mxu0 %v6068_v39  ;;  %4788 = vmatprep.subr.bf16.mxu1 %v6071_v46 }
 0x66b   :  { %2470 = vmatmul.mubr.f32.vlgmr.msra.gmra.mrb[10].mxu0 %v2234_v38  ;;  %2541 = vmatmul.mubr.f32.vlgmr.msra.gmra.mrb[10].mxu1 %v2234_v38  ;;  %v7601_v38 = vld [vmem:[#allocation39_spill] sm:$0xff] }
 0x66c   :  { %4726 = vmatpush1.bf16.msra.mxu0 %v6077_v55  ;;  %4790 = vmatpush1.bf16.msra.mxu1 %v6081_v57 }
 0x66d   :  { %4728 = vmatprep.subr.bf16.mxu0 %v6083_v59  ;;  %4792 = vmatprep.subr.bf16.mxu1 %v6087_v5 }
 0x670   :  { %4730 = vmatpush1.bf16.msra.mxu0 %v6091_v17  ;;  %4794 = vmatpush1.bf16.msra.mxu1 %v6095_v20 }
 0x671   :  { %4732 = vmatprep.subr.bf16.mxu0 %v6097_v21  ;;  %4796 = vmatprep.subr.bf16.mxu1 %v7585_v52 }
 0x674   :  { %4734 = vmatpush1.bf16.msra.mxu0 %v7586_v12  ;;  %4798 = vmatpush1.bf16.msra.mxu1 %v7587_v8 }
 0x675   :  { %4736 = vmatprep.subr.bf16.mxu0 %v7588_v24  ;;  %4800 = vmatprep.subr.bf16.mxu1 %v7589_v1 }
 0x678   :  { %4738 = vmatpush1.bf16.msra.mxu0 %v7590_v41  ;;  %4802 = vmatpush1.bf16.msra.mxu1 %v7591_v27  ;;  %v7602_v27 = vld [vmem:[#allocation40_spill] sm:$0xff]  ;;  %v7642_v41 = vld [vmem:[#allocation78_spill] sm:$0xff] }
 0x679   :  { %4740 = vmatprep.subr.bf16.mxu0 %v7592_v34  ;;  %4804 = vmatprep.subr.bf16.mxu1 %v7593_v43  ;;  %v7603_v34 = vld [vmem:[#allocation41_spill] sm:$0xff]  ;;  %v7604_v43 = vld [vmem:[#allocation42_spill] sm:$0xff] }
 0x67c   :  { %4742 = vmatpush1.bf16.msra.mxu0 %v7594_v30  ;;  %4806 = vmatpush1.bf16.msra.mxu1 %v7595_v31  ;;  %v7605_v30 = vld [vmem:[#allocation43_spill] sm:$0xff]  ;;  %v7606_v31 = vld [vmem:[#allocation44_spill] sm:$0xff] }
 0x67d   :  { %4744 = vmatprep.subr.bf16.mxu0 %v7596_v45  ;;  %4808 = vmatprep.subr.bf16.mxu1 %v7597_v37  ;;  %v7607_v45 = vld [vmem:[#allocation45_spill] sm:$0xff]  ;;  %v7608_v37 = vld [vmem:[#allocation46_spill] sm:$0xff] }
 0x680   :  { %4746 = vmatpush1.bf16.msra.mxu0 %v7598_v0  ;;  %4810 = vmatpush1.bf16.msra.mxu1 %v7599_v61  ;;  %v7609_v0 = vld [vmem:[#allocation47_spill] sm:$0xff]  ;;  %v7610_v61 = vld [vmem:[#allocation48_spill] sm:$0xff] }
 0x681   :  { %4748 = vmatprep.subr.bf16.mxu0 %v7600_v11  ;;  %4812 = vmatprep.subr.bf16.mxu1 %v7601_v38  ;;  %v7611_v11 = vld [vmem:[#allocation49_spill] sm:$0xff]  ;;  %v7612_v38 = vld [vmem:[#allocation50_spill] sm:$0xff] }
 0x684   :  { %4750 = vmatpush1.bf16.msra.mxu0 %v7602_v27  ;;  %4814 = vmatpush1.bf16.msra.mxu1 %v7603_v34  ;;  %v7613_v27 = vld [vmem:[#allocation51_spill] sm:$0xff]  ;;  %v7614_v34 = vld [vmem:[#allocation52_spill] sm:$0xff] }
 0x685   :  { %4752 = vmatprep.subr.bf16.mxu0 %v7604_v43  ;;  %4816 = vmatprep.subr.bf16.mxu1 %v7605_v30  ;;  %v7615_v43 = vld [vmem:[#allocation53_spill] sm:$0xff]  ;;  %v7616_v30 = vld [vmem:[#allocation54_spill] sm:$0xff] }
 0x688   :  { %4754 = vmatpush1.bf16.msra.mxu0 %v7606_v31  ;;  %4818 = vmatpush1.bf16.msra.mxu1 %v7607_v45  ;;  %v7617_v31 = vld [vmem:[#allocation55_spill] sm:$0xff]  ;;  %v7618_v45 = vld [vmem:[#allocation56_spill] sm:$0xff] }
 0x689   :  { %4756 = vmatprep.subr.bf16.mxu0 %v7608_v37  ;;  %4820 = vmatprep.subr.bf16.mxu1 %v7609_v0  ;;  %v7619_v37 = vld [vmem:[#allocation57_spill] sm:$0xff]  ;;  %v7620_v0 = vld [vmem:[#allocation58_spill] sm:$0xff] }
 0x68c   :  { %4758 = vmatpush1.bf16.msra.mxu0 %v7610_v61  ;;  %4822 = vmatpush1.bf16.msra.mxu1 %v7611_v11  ;;  %v7621_v61 = vld [vmem:[#allocation59_spill] sm:$0xff]  ;;  %v7622_v11 = vld [vmem:[#allocation60_spill] sm:$0xff] }
 0x68d   :  { %4760 = vmatprep.subr.bf16.mxu0 %v7612_v38  ;;  %4824 = vmatprep.subr.bf16.mxu1 %v7613_v27  ;;  %v7623_v38 = vld [vmem:[#allocation61_spill] sm:$0xff]  ;;  %v7624_v27 = vld [vmem:[#allocation62_spill] sm:$0xff] }
 0x690   :  { %4762 = vmatpush1.bf16.msra.mxu0 %v7614_v34  ;;  %4826 = vmatpush1.bf16.msra.mxu1 %v7615_v43  ;;  %v7625_v34 = vld [vmem:[#allocation63_spill] sm:$0xff]  ;;  %v7626_v43 = vld [vmem:[#allocation64_spill] sm:$0xff] }
 0x691   :  { %4764 = vmatprep.subr.bf16.mxu0 %v7616_v30  ;;  %4828 = vmatprep.subr.bf16.mxu1 %v7617_v31  ;;  %v7627_v30 = vld [vmem:[#allocation65_spill] sm:$0xff]  ;;  %v7628_v31 = vld [vmem:[#allocation66_spill] sm:$0xff] }
 0x694   :  { %4766 = vmatpush1.bf16.msra.mxu0 %v7618_v45  ;;  %4830 = vmatpush1.bf16.msra.mxu1 %v7619_v37  ;;  %v7629_v45 = vld [vmem:[#allocation67_spill] sm:$0xff]  ;;  %v7630_v37 = vld [vmem:[#allocation68_spill] sm:$0xff] }
 0x695   :  { %4768 = vmatprep.subr.bf16.mxu0 %v7620_v0  ;;  %4832 = vmatprep.subr.bf16.mxu1 %v7621_v61  ;;  %v7631_v0 = vld [vmem:[#allocation69_spill] sm:$0xff]  ;;  %v7632_v61 = vld [vmem:[#allocation70_spill] sm:$0xff] }
 0x698   :  { %4770 = vmatpush1.bf16.msra.mxu0 %v7622_v11  ;;  %4834 = vmatpush1.bf16.msra.mxu1 %v7623_v38  ;;  %v7633_v11 = vld [vmem:[#allocation71_spill] sm:$0xff]  ;;  %v7634_v38 = vld [vmem:[#allocation72_spill] sm:$0xff] }
 0x699   :  { %4772 = vmatprep.subr.bf16.mxu0 %v7624_v27  ;;  %4836 = vmatprep.subr.bf16.mxu1 %v7625_v34  ;;  %v7635_v27 = vld [vmem:[#allocation73_spill] sm:$0xff]  ;;  %v7636_v34 = vld [vmem:[#allocation74_spill] sm:$0xff] }
 0x69c   :  { %4774 = vmatpush1.bf16.msra.mxu0 %v7626_v43  ;;  %4838 = vmatpush1.bf16.msra.mxu1 %v7627_v30  ;;  %v7637_v43 = vld [vmem:[#allocation75_spill] sm:$0xff]  ;;  %v7638_v30 = vld [vmem:[#allocation76_spill] sm:$0xff] }
 0x69d   :  { %4776 = vmatprep.subr.bf16.mxu0 %v7628_v31  ;;  %4840 = vmatprep.subr.bf16.mxu1 %v7629_v45  ;;  %v7639_v31 = vld [vmem:[#allocation77_spill] sm:$0xff] }
 0x69e   :  { %v7640_v45 = vld [vmem:[#allocation21_spill] sm:$0xff] }
 0x6a0   :  { %4778 = vmatpush1.bf16.msra.mxu0 %v7630_v37  ;;  %4842 = vmatpush1.bf16.msra.mxu1 %v7631_v0  ;;  %v7641_v37 = vld [vmem:[#allocation22_spill] sm:$0xff] }
 0x6a1   :  { %4780 = vmatprep.subr.bf16.mxu0 %v7632_v61  ;;  %4844 = vmatprep.subr.bf16.mxu1 %v7633_v11 }
 0x6a4   :  { %4782 = vmatpush1.bf16.msra.mxu0 %v7634_v38  ;;  %4846 = vmatpush1.bf16.msra.mxu1 %v7635_v27 }
 0x6a5   :  { %4784 = vmatprep.subr.bf16.mxu0 %v7636_v34  ;;  %4848 = vmatprep.subr.bf16.mxu1 %v7637_v43  ;;  %v7643_v43 = vld [vmem:[#allocation83_spill] sm:$0xff] }
 0x6a8   :  { %4786 = vmatpush1.bf16.msra.mxu0 %v7638_v30  ;;  %4850 = vmatpush1.bf16.msra.mxu1 %v7639_v31 }
 0x6a9   :  { %4852 = vmatprep.subr.bf16.mxu0 %v7640_v45  ;;  %4884 = vmatprep.subr.bf16.mxu1 %v7641_v37 }
 0x71e   :  { %v2301_v0 = vpop.f32.mrb[24].mxu0  ;;  %v2372_v61 = vpop.f32.mrb[24].mxu1 }
 0x71f   :  { %v2302_v11 = vadd.f32 %v2301_v0, %v7642_v41  ;;  %v2303_v1 = vpop.f32.mrb[25].mxu0  ;;  %v2374_v38 = vpop.f32.mrb[25].mxu1  ;;  %v2373_v30 = vadd.f32 %v2372_v61, %v7643_v43 }
 0x720   :  { %v2304_v27 = vadd.f32 %v2303_v1, %v7460_v42  ;;  %v2375_v31 = vadd.f32 %v2374_v38, %v7523_v7 }
 0x721   :  { %v3561_v24 = vmul.f32 -1.442695, %v2302_v11  ;;  %v3563_v8 = vmul.f32 -1.442695, %v2373_v30 }
 0x722   :  { %v3562_v34 = vmul.f32 -1.442695, %v2304_v27 }
 0x723   :  { %5482 = vpow2.f32 %v3561_v24 }
 0x724   :  { %5484 = vpow2.f32 %v3562_v34 }
 0x725   :  { %5486 = vtanh.f32 %v2375_v31 }
 0x726   :  { %5488 = vpow2.f32 %v3563_v8 }
 0x72d   :  { %v5483_v45 = vpop.eup %5482 }
 0x72e   :  { %v2386_v12 = vadd.f32 1.0, %v5483_v45  ;;  %v5485_v37 = vpop.eup %5484 }
 0x72f   :  { %v2387_v0 = vadd.f32 1.0, %v5485_v37  ;;  %v5487_v41 = vpop.eup %5486 }
 0x730   :  { %5490 = vrcp.f32 %v2386_v12  ;;  %v5489_v52 = vpop.eup %5488 }
 0x731   :  { %5492 = vrcp.f32 %v2387_v0  ;;  %v2388_v24 = vadd.f32 1.0, %v5489_v52  ;;  %v7644_v52 = vld [vmem:[#allocation81_spill] sm:$0xff] }
 0x733   :  { %5494 = vrcp.f32 %v2388_v24 }
 0x73a   :  { %v5491_v1 = vpop.eup %5490 }
 0x73b   :  { %v2397_v11 = vmul.f32 %v5491_v1, %v5487_v41  ;;  %v5493_v27 = vpop.eup %5492 }
 0x73c   :  { %v2396_v34 = vmul.f32 %v5493_v27, %v6765_v2 }
 0x73d   :  { %v5495_v2 = vpop.eup %5494 }
 0x73e   :  { %v2471_v61 = vpop.f32.mrb[10].mxu0  ;;  %v2542_v43 = vpop.f32.mrb[10].mxu1  ;;  %v6879_v38 = vadd.f32 %v2397_v11, %v2396_v34 }
 0x73f   :  { %v5269_v30 = vadd.f32 %v2471_v61, %v7463_v51  ;;  %v2473_v31 = vpop.f32.mrb[11].mxu0  ;;  %v2544_v45 = vpop.f32.mrb[11].mxu1  ;;  %v5285_v41 = vadd.f32 %v2542_v43, %v7644_v52 }
 0x740   :  { %v5270_v12 = vadd.f32 %v2473_v31, %v7403_v49  ;;  %5496 = vtanh.f32 %v6879_v38  ;;  %v5286_v0 = vadd.f32 %v2544_v45, %v6299_v25 }
 0x741   :  { %v3564_v8 = vmul.f32 -1.442695, %v5269_v30  ;;  %v3566_v11 = vmul.f32 -1.442695, %v5285_v41 }
 0x742   :  { %v3565_v37 = vmul.f32 -1.442695, %v5270_v12 }
 0x743   :  { %5498 = vpow2.f32 %v3564_v8 }
 0x744   :  { %5500 = vpow2.f32 %v3565_v37 }
 0x745   :  { %5502 = vtanh.f32 %v5286_v0 }
 0x746   :  { %5504 = vpow2.f32 %v3566_v11  ;;  %v7647_v11 = vld [vmem:[#allocation25_spill] sm:$0xff] }
 0x74a   :  { %v5497_v1 = vpop.eup %5496 }
 0x74b   :  { %v2400_v27 = vmul.f32 %v5497_v1, %v5495_v2 }
 0x74d   :  { %v5499_v34 = vpop.eup %5498  ;;  %2639 = vmatprep.mubr.f32.mxu0 %v2400_v27  ;;  %2710 = vmatprep.mubr.f32.mxu1 %v2400_v27  ;;  %v7648_v27 = vld [vmem:[#allocation26_spill] sm:$0xff] }
 0x74e   :  { %v2560_v61 = vadd.f32 1.0, %v5499_v34  ;;  %v5501_v24 = vpop.eup %5500  ;;  %v7649_v34 = vld [vmem:[#allocation27_spill] sm:$0xff] }
 0x74f   :  { %v2561_v30 = vadd.f32 1.0, %v5501_v24  ;;  %v5503_v31 = vpop.eup %5502  ;;  %v7651_v24 = vld [vmem:[#allocation29_spill] sm:$0xff] }
 0x750   :  { %5506 = vrcp.f32 %v2560_v61  ;;  %v5505_v12 = vpop.eup %5504  ;;  %v7650_v61 = vld [vmem:[#allocation28_spill] sm:$0xff] }
 0x751   :  { %5508 = vrcp.f32 %v2561_v30  ;;  %v2562_v52 = vadd.f32 1.0, %v5505_v12  ;;  %v7652_v30 = vld [vmem:[#allocation30_spill] sm:$0xff]  ;;  %v7654_v12 = vld [vmem:[#allocation32_spill] sm:$0xff] }
 0x753   :  { %5510 = vrcp.f32 %v2562_v52  ;;  %v7646_v52 = vld [vmem:[#allocation24_spill] sm:$0xff] }
 0x75a   :  { %v5507_v8 = vpop.eup %5506 }
 0x75b   :  { %v2571_v43 = vmul.f32 %v5507_v8, %v5503_v31  ;;  %v5509_v37 = vpop.eup %5508  ;;  %v7653_v31 = vld [vmem:[#allocation31_spill] sm:$0xff]  ;;  %v7655_v8 = vld [vmem:[#allocation33_spill] sm:$0xff] }
 0x75c   :  { %v2570_v45 = vmul.f32 %v5509_v37, %v6773_v15  ;;  %v7645_v15 = vld [vmem:[#allocation23_spill] sm:$0xff] }
 0x75d   :  { %v5511_v2 = vpop.eup %5510  ;;  %v7657_v37 = vld [vmem:[#allocation35_spill] sm:$0xff] }
 0x75e   :  { %v6887_v41 = vadd.f32 %v2571_v43, %v2570_v45  ;;  %v7656_v43 = vld [vmem:[#allocation34_spill] sm:$0xff]  ;;  %v7658_v45 = vld [vmem:[#allocation36_spill] sm:$0xff] }
 0x760   :  { %5512 = vtanh.f32 %v6887_v41 }
 0x76a   :  { %v5513_v0 = vpop.eup %5512 }
 0x76b   :  { %v2574_v1 = vmul.f32 %v5513_v0, %v5511_v2  ;;  %v7659_v2 = vld [vmem:[#allocation37_spill] sm:$0xff]  ;;  %v7660_v0 = vld [vmem:[#allocation38_spill] sm:$0xff] }
 0x76d   :  { %2640 = vmatmul.mubr.f32.vlgmr.msra.gmra.mrb[26].mxu0 %v2574_v1  ;;  %2711 = vmatmul.mubr.f32.vlgmr.msra.gmra.mrb[26].mxu1 %v2574_v1 }
 0x76e   :  { %4854 = vmatpush1.bf16.msra.mxu0 %v5965_v47  ;;  %4886 = vmatpush1.bf16.msra.mxu1 %v5968_v50 }
 0x76f   :  { %4856 = vmatprep.subr.bf16.mxu0 %v5971_v53  ;;  %4888 = vmatprep.subr.bf16.mxu1 %v5973_v56 }
 0x770   :  { %2809 = vmatprep.mubr.f32.mxu0 %v7342_v35  ;;  %2880 = vmatprep.mubr.f32.mxu1 %v7342_v35 }
 0x772   :  { %4858 = vmatpush1.bf16.msra.mxu0 %v5976_v60  ;;  %4890 = vmatpush1.bf16.msra.mxu1 %v5980_v63 }
 0x773   :  { %4860 = vmatprep.subr.bf16.mxu0 %v5984_v3  ;;  %4892 = vmatprep.subr.bf16.mxu1 %v5987_v6 }
 0x776   :  { %4862 = vmatpush1.bf16.msra.mxu0 %v5990_v10  ;;  %4894 = vmatpush1.bf16.msra.mxu1 %v5994_v13 }
 0x777   :  { %4864 = vmatprep.subr.bf16.mxu0 %v5998_v16  ;;  %4896 = vmatprep.subr.bf16.mxu1 %v6001_v19 }
 0x77a   :  { %4866 = vmatpush1.bf16.msra.mxu0 %v6004_v23  ;;  %4898 = vmatpush1.bf16.msra.mxu1 %v6008_v26 }
 0x77b   :  { %4868 = vmatprep.subr.bf16.mxu0 %v6012_v29  ;;  %4900 = vmatprep.subr.bf16.mxu1 %v6015_v32 }
 0x77e   :  { %4870 = vmatpush1.bf16.msra.mxu0 %v6018_v36  ;;  %4902 = vmatpush1.bf16.msra.mxu1 %v6022_v40 }
 0x77f   :  { %4872 = vmatprep.subr.bf16.mxu0 %v6026_v44  ;;  %4904 = vmatprep.subr.bf16.mxu1 %v6029_v48 }
 0x782   :  { %4874 = vmatpush1.bf16.msra.mxu0 %v6032_v54  ;;  %4906 = vmatpush1.bf16.msra.mxu1 %v6036_v58 }
 0x783   :  { %4876 = vmatprep.subr.bf16.mxu0 %v6040_v62  ;;  %4908 = vmatprep.subr.bf16.mxu1 %v6043_v4 }
 0x786   :  { %4878 = vmatpush1.bf16.msra.mxu0 %v6046_v9  ;;  %4910 = vmatpush1.bf16.msra.mxu1 %v6050_v14 }
 0x787   :  { %4880 = vmatprep.subr.bf16.mxu0 %v6054_v18  ;;  %4912 = vmatprep.subr.bf16.mxu1 %v6057_v22 }
 0x78a   :  { %4882 = vmatpush1.bf16.msra.mxu0 %v6060_v28  ;;  %4914 = vmatpush1.bf16.msra.mxu1 %v6064_v33 }
 0x78b   :  { %4916 = vmatprep.subr.bf16.mxu0 %v6068_v39  ;;  %4980 = vmatprep.subr.bf16.mxu1 %v6071_v46 }
 0x78d   :  { %2810 = vmatmul.mubr.f32.vlgmr.msra.gmra.mrb[12].mxu0 %v2574_v1  ;;  %2881 = vmatmul.mubr.f32.vlgmr.msra.gmra.mrb[12].mxu1 %v2574_v1  ;;  %v7661_v1 = vld [vmem:[#allocation39_spill] sm:$0xff] }
 0x78e   :  { %4918 = vmatpush1.bf16.msra.mxu0 %v6077_v55  ;;  %4982 = vmatpush1.bf16.msra.mxu1 %v6081_v57 }
 0x78f   :  { %4920 = vmatprep.subr.bf16.mxu0 %v6083_v59  ;;  %4984 = vmatprep.subr.bf16.mxu1 %v6087_v5 }
 0x792   :  { %4922 = vmatpush1.bf16.msra.mxu0 %v6091_v17  ;;  %4986 = vmatpush1.bf16.msra.mxu1 %v6095_v20 }
 0x793   :  { %4924 = vmatprep.subr.bf16.mxu0 %v6097_v21  ;;  %4988 = vmatprep.subr.bf16.mxu1 %v7645_v15 }
 0x796   :  { %4926 = vmatpush1.bf16.msra.mxu0 %v7646_v52  ;;  %4990 = vmatpush1.bf16.msra.mxu1 %v7647_v11 }
 0x797   :  { %4928 = vmatprep.subr.bf16.mxu0 %v7648_v27  ;;  %4992 = vmatprep.subr.bf16.mxu1 %v7649_v34 }
 0x79a   :  { %4930 = vmatpush1.bf16.msra.mxu0 %v7650_v61  ;;  %4994 = vmatpush1.bf16.msra.mxu1 %v7651_v24  ;;  %v7662_v24 = vld [vmem:[#allocation40_spill] sm:$0xff]  ;;  %v7702_v61 = vld [vmem:[#allocation78_spill] sm:$0xff] }
 0x79b   :  { %4932 = vmatprep.subr.bf16.mxu0 %v7652_v30  ;;  %4996 = vmatprep.subr.bf16.mxu1 %v7653_v31  ;;  %v7663_v30 = vld [vmem:[#allocation41_spill] sm:$0xff]  ;;  %v7664_v31 = vld [vmem:[#allocation42_spill] sm:$0xff] }
 0x79e   :  { %4934 = vmatpush1.bf16.msra.mxu0 %v7654_v12  ;;  %4998 = vmatpush1.bf16.msra.mxu1 %v7655_v8  ;;  %v7665_v12 = vld [vmem:[#allocation43_spill] sm:$0xff]  ;;  %v7666_v8 = vld [vmem:[#allocation44_spill] sm:$0xff] }
 0x79f   :  { %4936 = vmatprep.subr.bf16.mxu0 %v7656_v43  ;;  %5000 = vmatprep.subr.bf16.mxu1 %v7657_v37  ;;  %v7667_v43 = vld [vmem:[#allocation45_spill] sm:$0xff]  ;;  %v7668_v37 = vld [vmem:[#allocation46_spill] sm:$0xff] }
 0x7a2   :  { %4938 = vmatpush1.bf16.msra.mxu0 %v7658_v45  ;;  %5002 = vmatpush1.bf16.msra.mxu1 %v7659_v2  ;;  %v7669_v45 = vld [vmem:[#allocation47_spill] sm:$0xff]  ;;  %v7670_v2 = vld [vmem:[#allocation48_spill] sm:$0xff] }
 0x7a3   :  { %4940 = vmatprep.subr.bf16.mxu0 %v7660_v0  ;;  %5004 = vmatprep.subr.bf16.mxu1 %v7661_v1  ;;  %v7671_v0 = vld [vmem:[#allocation49_spill] sm:$0xff]  ;;  %v7672_v1 = vld [vmem:[#allocation50_spill] sm:$0xff] }
 0x7a6   :  { %4942 = vmatpush1.bf16.msra.mxu0 %v7662_v24  ;;  %5006 = vmatpush1.bf16.msra.mxu1 %v7663_v30  ;;  %v7673_v24 = vld [vmem:[#allocation51_spill] sm:$0xff]  ;;  %v7674_v30 = vld [vmem:[#allocation52_spill] sm:$0xff] }
 0x7a7   :  { %4944 = vmatprep.subr.bf16.mxu0 %v7664_v31  ;;  %5008 = vmatprep.subr.bf16.mxu1 %v7665_v12  ;;  %v7675_v31 = vld [vmem:[#allocation53_spill] sm:$0xff]  ;;  %v7676_v12 = vld [vmem:[#allocation54_spill] sm:$0xff] }
 0x7aa   :  { %4946 = vmatpush1.bf16.msra.mxu0 %v7666_v8  ;;  %5010 = vmatpush1.bf16.msra.mxu1 %v7667_v43  ;;  %v7677_v8 = vld [vmem:[#allocation55_spill] sm:$0xff]  ;;  %v7678_v43 = vld [vmem:[#allocation56_spill] sm:$0xff] }
 0x7ab   :  { %4948 = vmatprep.subr.bf16.mxu0 %v7668_v37  ;;  %5012 = vmatprep.subr.bf16.mxu1 %v7669_v45  ;;  %v7679_v37 = vld [vmem:[#allocation57_spill] sm:$0xff]  ;;  %v7680_v45 = vld [vmem:[#allocation58_spill] sm:$0xff] }
 0x7ae   :  { %4950 = vmatpush1.bf16.msra.mxu0 %v7670_v2  ;;  %5014 = vmatpush1.bf16.msra.mxu1 %v7671_v0  ;;  %v7681_v2 = vld [vmem:[#allocation59_spill] sm:$0xff]  ;;  %v7682_v0 = vld [vmem:[#allocation60_spill] sm:$0xff] }
 0x7af   :  { %4952 = vmatprep.subr.bf16.mxu0 %v7672_v1  ;;  %5016 = vmatprep.subr.bf16.mxu1 %v7673_v24  ;;  %v7683_v1 = vld [vmem:[#allocation61_spill] sm:$0xff]  ;;  %v7684_v24 = vld [vmem:[#allocation62_spill] sm:$0xff] }
 0x7b2   :  { %4954 = vmatpush1.bf16.msra.mxu0 %v7674_v30  ;;  %5018 = vmatpush1.bf16.msra.mxu1 %v7675_v31  ;;  %v7685_v30 = vld [vmem:[#allocation63_spill] sm:$0xff]  ;;  %v7686_v31 = vld [vmem:[#allocation64_spill] sm:$0xff] }
 0x7b3   :  { %4956 = vmatprep.subr.bf16.mxu0 %v7676_v12  ;;  %5020 = vmatprep.subr.bf16.mxu1 %v7677_v8  ;;  %v7687_v12 = vld [vmem:[#allocation65_spill] sm:$0xff]  ;;  %v7688_v8 = vld [vmem:[#allocation66_spill] sm:$0xff] }
 0x7b6   :  { %4958 = vmatpush1.bf16.msra.mxu0 %v7678_v43  ;;  %5022 = vmatpush1.bf16.msra.mxu1 %v7679_v37  ;;  %v7689_v43 = vld [vmem:[#allocation67_spill] sm:$0xff]  ;;  %v7690_v37 = vld [vmem:[#allocation68_spill] sm:$0xff] }
 0x7b7   :  { %4960 = vmatprep.subr.bf16.mxu0 %v7680_v45  ;;  %5024 = vmatprep.subr.bf16.mxu1 %v7681_v2  ;;  %v7691_v45 = vld [vmem:[#allocation69_spill] sm:$0xff]  ;;  %v7692_v2 = vld [vmem:[#allocation70_spill] sm:$0xff] }
 0x7ba   :  { %4962 = vmatpush1.bf16.msra.mxu0 %v7682_v0  ;;  %5026 = vmatpush1.bf16.msra.mxu1 %v7683_v1  ;;  %v7693_v0 = vld [vmem:[#allocation71_spill] sm:$0xff]  ;;  %v7694_v1 = vld [vmem:[#allocation72_spill] sm:$0xff] }
 0x7bb   :  { %4964 = vmatprep.subr.bf16.mxu0 %v7684_v24  ;;  %5028 = vmatprep.subr.bf16.mxu1 %v7685_v30  ;;  %v7695_v24 = vld [vmem:[#allocation73_spill] sm:$0xff]  ;;  %v7696_v30 = vld [vmem:[#allocation74_spill] sm:$0xff] }
 0x7be   :  { %4966 = vmatpush1.bf16.msra.mxu0 %v7686_v31  ;;  %5030 = vmatpush1.bf16.msra.mxu1 %v7687_v12  ;;  %v7697_v31 = vld [vmem:[#allocation75_spill] sm:$0xff]  ;;  %v7698_v12 = vld [vmem:[#allocation76_spill] sm:$0xff] }
 0x7bf   :  { %4968 = vmatprep.subr.bf16.mxu0 %v7688_v8  ;;  %5032 = vmatprep.subr.bf16.mxu1 %v7689_v43  ;;  %v7699_v8 = vld [vmem:[#allocation77_spill] sm:$0xff] }
 0x7c0   :  { %v7700_v43 = vld [vmem:[#allocation21_spill] sm:$0xff] }
 0x7c2   :  { %4970 = vmatpush1.bf16.msra.mxu0 %v7690_v37  ;;  %5034 = vmatpush1.bf16.msra.mxu1 %v7691_v45  ;;  %v7701_v37 = vld [vmem:[#allocation22_spill] sm:$0xff] }
 0x7c3   :  { %4972 = vmatprep.subr.bf16.mxu0 %v7692_v2  ;;  %5036 = vmatprep.subr.bf16.mxu1 %v7693_v0 }
 0x7c6   :  { %4974 = vmatpush1.bf16.msra.mxu0 %v7694_v1  ;;  %5038 = vmatpush1.bf16.msra.mxu1 %v7695_v24 }
 0x7c7   :  { %4976 = vmatprep.subr.bf16.mxu0 %v7696_v30  ;;  %5040 = vmatprep.subr.bf16.mxu1 %v7697_v31  ;;  %v7703_v31 = vld [vmem:[#allocation83_spill] sm:$0xff] }
 0x7ca   :  { %4978 = vmatpush1.bf16.msra.mxu0 %v7698_v12  ;;  %5042 = vmatpush1.bf16.msra.mxu1 %v7699_v8 }
 0x7cb   :  { %5044 = vmatprep.subr.bf16.mxu0 %v7700_v43  ;;  %5076 = vmatprep.subr.bf16.mxu1 %v7701_v37 }
 0x840   :  { %v2641_v45 = vpop.f32.mrb[26].mxu0  ;;  %v2712_v2 = vpop.f32.mrb[26].mxu1 }
 0x841   :  { %v2642_v0 = vadd.f32 %v2641_v45, %v7702_v61  ;;  %v2643_v34 = vpop.f32.mrb[27].mxu0  ;;  %v2714_v1 = vpop.f32.mrb[27].mxu1  ;;  %v2713_v12 = vadd.f32 %v2712_v2, %v7703_v31 }
 0x842   :  { %v2644_v24 = vadd.f32 %v2643_v34, %v7460_v42  ;;  %v2715_v8 = vadd.f32 %v2714_v1, %v7523_v7 }
 0x843   :  { %v3567_v27 = vmul.f32 -1.442695, %v2642_v0  ;;  %v3569_v11 = vmul.f32 -1.442695, %v2713_v12 }
 0x844   :  { %v3568_v30 = vmul.f32 -1.442695, %v2644_v24 }
 0x845   :  { %5514 = vpow2.f32 %v3567_v27 }
 0x846   :  { %5516 = vpow2.f32 %v3568_v30 }
 0x847   :  { %5518 = vtanh.f32 %v2715_v8 }
 0x848   :  { %5520 = vpow2.f32 %v3569_v11 }
 0x84f   :  { %v5515_v43 = vpop.eup %5514 }
 0x850   :  { %v2726_v52 = vadd.f32 1.0, %v5515_v43  ;;  %v5517_v37 = vpop.eup %5516 }
 0x851   :  { %v2727_v45 = vadd.f32 1.0, %v5517_v37  ;;  %v5519_v61 = vpop.eup %5518 }
 0x852   :  { %5522 = vrcp.f32 %v2726_v52  ;;  %v5521_v15 = vpop.eup %5520 }
 0x853   :  { %5524 = vrcp.f32 %v2727_v45  ;;  %v2728_v27 = vadd.f32 1.0, %v5521_v15  ;;  %v7704_v15 = vld [vmem:[#allocation81_spill] sm:$0xff] }
 0x855   :  { %5526 = vrcp.f32 %v2728_v27 }
 0x85c   :  { %v5523_v34 = vpop.eup %5522 }
 0x85d   :  { %v2737_v0 = vmul.f32 %v5523_v34, %v5519_v61  ;;  %v5525_v24 = vpop.eup %5524 }
 0x85e   :  { %v2736_v30 = vmul.f32 %v5525_v24, %v6879_v38 }
 0x85f   :  { %v5527_v38 = vpop.eup %5526 }
 0x860   :  { %v2811_v2 = vpop.f32.mrb[12].mxu0  ;;  %v2882_v31 = vpop.f32.mrb[12].mxu1  ;;  %v6993_v1 = vadd.f32 %v2737_v0, %v2736_v30 }
 0x861   :  { %v5271_v12 = vadd.f32 %v2811_v2, %v7463_v51  ;;  %v2813_v8 = vpop.f32.mrb[13].mxu0  ;;  %v2884_v43 = vpop.f32.mrb[13].mxu1  ;;  %v5287_v61 = vadd.f32 %v2882_v31, %v7704_v15 }
 0x862   :  { %v5272_v52 = vadd.f32 %v2813_v8, %v7403_v49  ;;  %5528 = vtanh.f32 %v6993_v1  ;;  %v5288_v45 = vadd.f32 %v2884_v43, %v6299_v25 }
 0x863   :  { %v3570_v11 = vmul.f32 -1.442695, %v5271_v12  ;;  %v3572_v0 = vmul.f32 -1.442695, %v5287_v61 }
 0x864   :  { %v3571_v37 = vmul.f32 -1.442695, %v5272_v52 }
 0x865   :  { %5530 = vpow2.f32 %v3570_v11 }
 0x866   :  { %5532 = vpow2.f32 %v3571_v37 }
 0x867   :  { %5534 = vtanh.f32 %v5288_v45 }
 0x868   :  { %5536 = vpow2.f32 %v3572_v0  ;;  %v7746_v0 = vld [vmem:[#allocation64_spill] sm:$0xff] }
 0x86c   :  { %v5529_v34 = vpop.eup %5528 }
 0x86d   :  { %v2740_v24 = vmul.f32 %v5529_v34, %v5527_v38 }
 0x86f   :  { %v5531_v30 = vpop.eup %5530  ;;  %2979 = vmatprep.mubr.f32.mxu0 %v2740_v24  ;;  %3050 = vmatprep.mubr.f32.mxu1 %v2740_v24  ;;  %v7747_v24 = vld [vmem:[#allocation65_spill] sm:$0xff] }
 0x870   :  { %v2900_v2 = vadd.f32 1.0, %v5531_v30  ;;  %v5533_v27 = vpop.eup %5532  ;;  %v7748_v30 = vld [vmem:[#allocation66_spill] sm:$0xff] }
 0x871   :  { %v2901_v12 = vadd.f32 1.0, %v5533_v27  ;;  %v5535_v8 = vpop.eup %5534  ;;  %v7750_v27 = vld [vmem:[#allocation68_spill] sm:$0xff] }
 0x872   :  { %5538 = vrcp.f32 %v2900_v2  ;;  %v5537_v52 = vpop.eup %5536  ;;  %v7749_v2 = vld [vmem:[#allocation67_spill] sm:$0xff] }
 0x873   :  { %5540 = vrcp.f32 %v2901_v12  ;;  %v2902_v15 = vadd.f32 1.0, %v5537_v52  ;;  %v7751_v12 = vld [vmem:[#allocation69_spill] sm:$0xff]  ;;  %v7753_v52 = vld [vmem:[#allocation71_spill] sm:$0xff] }
 0x875   :  { %5542 = vrcp.f32 %v2902_v15  ;;  %v7745_v15 = vld [vmem:[#allocation63_spill] sm:$0xff] }
 0x87c   :  { %v5539_v11 = vpop.eup %5538 }
 0x87d   :  { %v2911_v31 = vmul.f32 %v5539_v11, %v5535_v8  ;;  %v5541_v37 = vpop.eup %5540  ;;  %v7752_v8 = vld [vmem:[#allocation70_spill] sm:$0xff]  ;;  %v7754_v11 = vld [vmem:[#allocation72_spill] sm:$0xff] }
 0x87e   :  { %v2910_v43 = vmul.f32 %v5541_v37, %v6887_v41  ;;  %v7744_v41 = vld [vmem:[#allocation62_spill] sm:$0xff] }
 0x87f   :  { %v5543_v38 = vpop.eup %5542  ;;  %v7756_v37 = vld [vmem:[#allocation74_spill] sm:$0xff] }
 0x880   :  { %v7001_v61 = vadd.f32 %v2911_v31, %v2910_v43  ;;  %v7755_v31 = vld [vmem:[#allocation73_spill] sm:$0xff]  ;;  %v7757_v43 = vld [vmem:[#allocation75_spill] sm:$0xff] }
 0x882   :  { %5544 = vtanh.f32 %v7001_v61 }
 0x88c   :  { %v5545_v45 = vpop.eup %5544 }
 0x88d   :  { %v2914_v34 = vmul.f32 %v5545_v45, %v5543_v38  ;;  %v7758_v38 = vld [vmem:[#allocation76_spill] sm:$0xff]  ;;  %v7759_v45 = vld [vmem:[#allocation77_spill] sm:$0xff] }
 0x88f   :  { %2980 = vmatmul.mubr.f32.vlgmr.msra.gmra.mrb[28].mxu0 %v2914_v34  ;;  %3051 = vmatmul.mubr.f32.vlgmr.msra.gmra.mrb[28].mxu1 %v2914_v34 }
 0x890   :  { %5046 = vmatpush1.bf16.msra.mxu0 %v5965_v47  ;;  %5078 = vmatpush1.bf16.msra.mxu1 %v5968_v50  ;;  %v7705_v47 = vld [vmem:[#allocation23_spill] sm:$0xff]  ;;  %v7706_v50 = vld [vmem:[#allocation24_spill] sm:$0xff] }
 0x891   :  { %5048 = vmatprep.subr.bf16.mxu0 %v5971_v53  ;;  %5080 = vmatprep.subr.bf16.mxu1 %v5973_v56  ;;  %v7707_v53 = vld [vmem:[#allocation25_spill] sm:$0xff]  ;;  %v7708_v56 = vld [vmem:[#allocation26_spill] sm:$0xff] }
 0x892   :  { %3149 = vmatprep.mubr.f32.mxu0 %v7342_v35  ;;  %3220 = vmatprep.mubr.f32.mxu1 %v7342_v35 }
 0x894   :  { %5050 = vmatpush1.bf16.msra.mxu0 %v5976_v60  ;;  %5082 = vmatpush1.bf16.msra.mxu1 %v5980_v63  ;;  %v7709_v60 = vld [vmem:[#allocation27_spill] sm:$0xff]  ;;  %v7710_v63 = vld [vmem:[#allocation28_spill] sm:$0xff] }
 0x895   :  { %5052 = vmatprep.subr.bf16.mxu0 %v5984_v3  ;;  %5084 = vmatprep.subr.bf16.mxu1 %v5987_v6  ;;  %v7711_v3 = vld [vmem:[#allocation29_spill] sm:$0xff]  ;;  %v7712_v6 = vld [vmem:[#allocation30_spill] sm:$0xff] }
 0x898   :  { %5054 = vmatpush1.bf16.msra.mxu0 %v5990_v10  ;;  %5086 = vmatpush1.bf16.msra.mxu1 %v5994_v13  ;;  %v7713_v10 = vld [vmem:[#allocation31_spill] sm:$0xff]  ;;  %v7714_v13 = vld [vmem:[#allocation32_spill] sm:$0xff] }
 0x899   :  { %5056 = vmatprep.subr.bf16.mxu0 %v5998_v16  ;;  %5088 = vmatprep.subr.bf16.mxu1 %v6001_v19  ;;  %v7715_v16 = vld [vmem:[#allocation33_spill] sm:$0xff]  ;;  %v7716_v19 = vld [vmem:[#allocation34_spill] sm:$0xff] }
 0x89c   :  { %5058 = vmatpush1.bf16.msra.mxu0 %v6004_v23  ;;  %5090 = vmatpush1.bf16.msra.mxu1 %v6008_v26  ;;  %v7717_v23 = vld [vmem:[#allocation35_spill] sm:$0xff]  ;;  %v7718_v26 = vld [vmem:[#allocation36_spill] sm:$0xff] }
 0x89d   :  { %5060 = vmatprep.subr.bf16.mxu0 %v6012_v29  ;;  %5092 = vmatprep.subr.bf16.mxu1 %v6015_v32  ;;  %v7719_v29 = vld [vmem:[#allocation37_spill] sm:$0xff]  ;;  %v7720_v32 = vld [vmem:[#allocation38_spill] sm:$0xff] }
 0x8a0   :  { %5062 = vmatpush1.bf16.msra.mxu0 %v6018_v36  ;;  %5094 = vmatpush1.bf16.msra.mxu1 %v6022_v40  ;;  %v7721_v36 = vld [vmem:[#allocation39_spill] sm:$0xff]  ;;  %v7722_v40 = vld [vmem:[#allocation40_spill] sm:$0xff] }
 0x8a1   :  { %5064 = vmatprep.subr.bf16.mxu0 %v6026_v44  ;;  %5096 = vmatprep.subr.bf16.mxu1 %v6029_v48  ;;  %v7723_v44 = vld [vmem:[#allocation41_spill] sm:$0xff]  ;;  %v7724_v48 = vld [vmem:[#allocation42_spill] sm:$0xff] }
 0x8a4   :  { %5066 = vmatpush1.bf16.msra.mxu0 %v6032_v54  ;;  %5098 = vmatpush1.bf16.msra.mxu1 %v6036_v58  ;;  %v7725_v54 = vld [vmem:[#allocation43_spill] sm:$0xff]  ;;  %v7726_v58 = vld [vmem:[#allocation44_spill] sm:$0xff] }
 0x8a5   :  { %5068 = vmatprep.subr.bf16.mxu0 %v6040_v62  ;;  %5100 = vmatprep.subr.bf16.mxu1 %v6043_v4  ;;  %v7727_v62 = vld [vmem:[#allocation45_spill] sm:$0xff]  ;;  %v7728_v4 = vld [vmem:[#allocation46_spill] sm:$0xff] }
 0x8a8   :  { %5070 = vmatpush1.bf16.msra.mxu0 %v6046_v9  ;;  %5102 = vmatpush1.bf16.msra.mxu1 %v6050_v14  ;;  %v7729_v9 = vld [vmem:[#allocation47_spill] sm:$0xff]  ;;  %v7730_v14 = vld [vmem:[#allocation48_spill] sm:$0xff] }
 0x8a9   :  { %5072 = vmatprep.subr.bf16.mxu0 %v6054_v18  ;;  %5104 = vmatprep.subr.bf16.mxu1 %v6057_v22  ;;  %v7731_v18 = vld [vmem:[#allocation49_spill] sm:$0xff]  ;;  %v7732_v22 = vld [vmem:[#allocation50_spill] sm:$0xff] }
 0x8ac   :  { %5074 = vmatpush1.bf16.msra.mxu0 %v6060_v28  ;;  %5106 = vmatpush1.bf16.msra.mxu1 %v6064_v33  ;;  %v7733_v28 = vld [vmem:[#allocation51_spill] sm:$0xff]  ;;  %v7734_v33 = vld [vmem:[#allocation52_spill] sm:$0xff] }
 0x8ad   :  { %5108 = vmatprep.subr.bf16.mxu0 %v6068_v39  ;;  %5172 = vmatprep.subr.bf16.mxu1 %v6071_v46  ;;  %v7735_v39 = vld [vmem:[#allocation53_spill] sm:$0xff]  ;;  %v7736_v46 = vld [vmem:[#allocation54_spill] sm:$0xff] }
 0x8af   :  { %3150 = vmatmul.mubr.f32.vlgmr.msra.gmra.mrb[14].mxu0 %v2914_v34  ;;  %3221 = vmatmul.mubr.f32.vlgmr.msra.gmra.mrb[14].mxu1 %v2914_v34 }
 0x8b0   :  { %5110 = vmatpush1.bf16.msra.mxu0 %v6077_v55  ;;  %5174 = vmatpush1.bf16.msra.mxu1 %v6081_v57  ;;  %v7737_v55 = vld [vmem:[#allocation55_spill] sm:$0xff]  ;;  %v7738_v57 = vld [vmem:[#allocation56_spill] sm:$0xff] }
 0x8b1   :  { %5112 = vmatprep.subr.bf16.mxu0 %v6083_v59  ;;  %5176 = vmatprep.subr.bf16.mxu1 %v6087_v5  ;;  %v7739_v59 = vld [vmem:[#allocation57_spill] sm:$0xff]  ;;  %v7740_v5 = vld [vmem:[#allocation58_spill] sm:$0xff] }
 0x8b4   :  { %5114 = vmatpush1.bf16.msra.mxu0 %v6091_v17  ;;  %5178 = vmatpush1.bf16.msra.mxu1 %v6095_v20  ;;  %v7741_v17 = vld [vmem:[#allocation59_spill] sm:$0xff]  ;;  %v7742_v20 = vld [vmem:[#allocation60_spill] sm:$0xff] }
 0x8b5   :  { %5116 = vmatprep.subr.bf16.mxu0 %v6097_v21  ;;  %5180 = vmatprep.subr.bf16.mxu1 %v7705_v47  ;;  %v7743_v21 = vld [vmem:[#allocation61_spill] sm:$0xff] }
 0x8b8   :  { %5118 = vmatpush1.bf16.msra.mxu0 %v7706_v50  ;;  %5182 = vmatpush1.bf16.msra.mxu1 %v7707_v53  ;;  %v7760_v50 = vld [vmem:[#allocation78_spill] sm:$0xff] }
 0x8b9   :  { %5120 = vmatprep.subr.bf16.mxu0 %v7708_v56  ;;  %5184 = vmatprep.subr.bf16.mxu1 %v7709_v60 }
 0x8bc   :  { %5122 = vmatpush1.bf16.msra.mxu0 %v7710_v63  ;;  %5186 = vmatpush1.bf16.msra.mxu1 %v7711_v3 }
 0x8bd   :  { %5124 = vmatprep.subr.bf16.mxu0 %v7712_v6  ;;  %5188 = vmatprep.subr.bf16.mxu1 %v7713_v10  ;;  %v7761_v10 = vld [vmem:[#allocation83_spill] sm:$0xff] }
 0x8c0   :  { %5126 = vmatpush1.bf16.msra.mxu0 %v7714_v13  ;;  %5190 = vmatpush1.bf16.msra.mxu1 %v7715_v16 }
 0x8c1   :  { %5128 = vmatprep.subr.bf16.mxu0 %v7716_v19  ;;  %5192 = vmatprep.subr.bf16.mxu1 %v7717_v23 }
 0x8c4   :  { %5130 = vmatpush1.bf16.msra.mxu0 %v7718_v26  ;;  %5194 = vmatpush1.bf16.msra.mxu1 %v7719_v29 }
 0x8c5   :  { %5132 = vmatprep.subr.bf16.mxu0 %v7720_v32  ;;  %5196 = vmatprep.subr.bf16.mxu1 %v7721_v36 }
 0x8c8   :  { %5134 = vmatpush1.bf16.msra.mxu0 %v7722_v40  ;;  %5198 = vmatpush1.bf16.msra.mxu1 %v7723_v44 }
 0x8c9   :  { %5136 = vmatprep.subr.bf16.mxu0 %v7724_v48  ;;  %5200 = vmatprep.subr.bf16.mxu1 %v7725_v54 }
 0x8cc   :  { %5138 = vmatpush1.bf16.msra.mxu0 %v7726_v58  ;;  %5202 = vmatpush1.bf16.msra.mxu1 %v7727_v62 }
 0x8cd   :  { %5140 = vmatprep.subr.bf16.mxu0 %v7728_v4  ;;  %5204 = vmatprep.subr.bf16.mxu1 %v7729_v9 }
 0x8d0   :  { %5142 = vmatpush1.bf16.msra.mxu0 %v7730_v14  ;;  %5206 = vmatpush1.bf16.msra.mxu1 %v7731_v18 }
 0x8d1   :  { %5144 = vmatprep.subr.bf16.mxu0 %v7732_v22  ;;  %5208 = vmatprep.subr.bf16.mxu1 %v7733_v28 }
 0x8d4   :  { %5146 = vmatpush1.bf16.msra.mxu0 %v7734_v33  ;;  %5210 = vmatpush1.bf16.msra.mxu1 %v7735_v39 }
 0x8d5   :  { %5148 = vmatprep.subr.bf16.mxu0 %v7736_v46  ;;  %5212 = vmatprep.subr.bf16.mxu1 %v7737_v55  ;;  %v7762_v55 = vld [vmem:[#allocation81_spill] sm:$0xff] }
 0x8d8   :  { %5150 = vmatpush1.bf16.msra.mxu0 %v7738_v57  ;;  %5214 = vmatpush1.bf16.msra.mxu1 %v7739_v59 }
 0x8d9   :  { %5152 = vmatprep.subr.bf16.mxu0 %v7740_v5  ;;  %5216 = vmatprep.subr.bf16.mxu1 %v7741_v17 }
 0x8dc   :  { %5154 = vmatpush1.bf16.msra.mxu0 %v7742_v20  ;;  %5218 = vmatpush1.bf16.msra.mxu1 %v7743_v21 }
 0x8dd   :  { %5156 = vmatprep.subr.bf16.mxu0 %v7744_v41  ;;  %5220 = vmatprep.subr.bf16.mxu1 %v7745_v15 }
 0x8e0   :  { %5158 = vmatpush1.bf16.msra.mxu0 %v7746_v0  ;;  %5222 = vmatpush1.bf16.msra.mxu1 %v7747_v24 }
 0x8e1   :  { %5160 = vmatprep.subr.bf16.mxu0 %v7748_v30  ;;  %5224 = vmatprep.subr.bf16.mxu1 %v7749_v2 }
 0x8e4   :  { %5162 = vmatpush1.bf16.msra.mxu0 %v7750_v27  ;;  %5226 = vmatpush1.bf16.msra.mxu1 %v7751_v12 }
 0x8e5   :  { %5164 = vmatprep.subr.bf16.mxu0 %v7752_v8  ;;  %5228 = vmatprep.subr.bf16.mxu1 %v7753_v52 }
 0x8e8   :  { %5166 = vmatpush1.bf16.msra.mxu0 %v7754_v11  ;;  %5230 = vmatpush1.bf16.msra.mxu1 %v7755_v31  ;;  %v3421_v31 = vld [vmem:[#allocation14] sm:$0xff] }
 0x8e9   :  { %5168 = vmatprep.subr.bf16.mxu0 %v7756_v37  ;;  %5232 = vmatprep.subr.bf16.mxu1 %v7757_v43  ;;  %v3422_v37 = vld [vmem:[#allocation14 + $0x8] sm:$0xff] }
 0x8ea   :  { %v5236_v43 = vpack.c.bf16 %v3422_v37, %v3421_v31 }
 0x8ec   :  { %5170 = vmatpush1.bf16.msra.mxu0 %v7758_v38  ;;  %5234 = vmatpush1.bf16.msra.mxu1 %v7759_v45  ;;  %v5792_v38 = vmov 0.0|0.0   ;;  %v3423_v45 = vld [vmem:[#allocation14 + $0x10] sm:$0xff] }
 0x8ed   :  { %5235 = vmatprep.subr.bf16.mxu0 %v5792_v38 }
 0x962   :  { %v2981_v34 = vpop.f32.mrb[28].mxu0  ;;  %v3052_v47 = vpop.f32.mrb[28].mxu1 }
 0x963   :  { %v2982_v53 = vadd.f32 %v2981_v34, %v7760_v50  ;;  %v2983_v56 = vpop.f32.mrb[29].mxu0  ;;  %v3054_v60 = vpop.f32.mrb[29].mxu1  ;;  %v3053_v13 = vadd.f32 %v3052_v47, %v7761_v10  ;;  %v3424_v34 = vld [vmem:[#allocation14 + $0x18] sm:$0xff] }
 0x964   :  { %v2984_v63 = vadd.f32 %v2983_v56, %v7460_v42  ;;  %v3055_v16 = vadd.f32 %v3054_v60, %v7523_v7  ;;  %v5239_v47 = vpack.c.bf16 %v3424_v34, %v3423_v45  ;;  %v3427_v60 = vld [vmem:[#allocation14 + $0x30] sm:$0xff] }
 0x965   :  { %v3573_v3 = vmul.f32 -1.442695, %v2982_v53  ;;  %v3575_v19 = vmul.f32 -1.442695, %v3053_v13  ;;  %v3426_v53 = vld [vmem:[#allocation14 + $0x28] sm:$0xff] }
 0x966   :  { %v3574_v6 = vmul.f32 -1.442695, %v2984_v63  ;;  %v3428_v63 = vld [vmem:[#allocation14 + $0x38] sm:$0xff]  ;;  %v3430_v13 = vld [vmem:[#allocation14 + $0x48] sm:$0xff] }
 0x967   :  { %5546 = vpow2.f32 %v3573_v3  ;;  %v5245_v3 = vpack.c.bf16 %v3428_v63, %v3427_v60 }
 0x968   :  { %5548 = vpow2.f32 %v3574_v6  ;;  %v3429_v6 = vld [vmem:[#allocation14 + $0x40] sm:$0xff] }
 0x969   :  { %5550 = vtanh.f32 %v3055_v16  ;;  %v5248_v16 = vpack.c.bf16 %v3430_v13, %v3429_v6 }
 0x96a   :  { %5552 = vpow2.f32 %v3575_v19  ;;  %v3431_v19 = vld [vmem:[#allocation14 + $0x50] sm:$0xff] }
 0x971   :  { %v5547_v23 = vpop.eup %5546 }
 0x972   :  { %v3066_v26 = vadd.f32 1.0, %v5547_v23  ;;  %v5549_v29 = vpop.eup %5548  ;;  %v3432_v23 = vld [vmem:[#allocation14 + $0x58] sm:$0xff] }
 0x973   :  { %v3067_v32 = vadd.f32 1.0, %v5549_v29  ;;  %v5551_v36 = vpop.eup %5550  ;;  %v3433_v29 = vld [vmem:[#allocation14 + $0x60] sm:$0xff] }
 0x974   :  { %5554 = vrcp.f32 %v3066_v26  ;;  %v5553_v40 = vpop.eup %5552  ;;  %v5251_v26 = vpack.c.bf16 %v3432_v23, %v3431_v19 }
 0x975   :  { %5556 = vrcp.f32 %v3067_v32  ;;  %v3068_v58 = vadd.f32 1.0, %v5553_v40  ;;  %v3434_v32 = vld [vmem:[#allocation14 + $0x68] sm:$0xff]  ;;  %v3435_v40 = vld [vmem:[#allocation14 + $0x70] sm:$0xff] }
 0x977   :  { %5558 = vrcp.f32 %v3068_v58 }
 0x97e   :  { %v5555_v44 = vpop.eup %5554 }
 0x97f   :  { %v3077_v48 = vmul.f32 %v5555_v44, %v5551_v36  ;;  %v5557_v54 = vpop.eup %5556  ;;  %v5254_v36 = vpack.c.bf16 %v3434_v32, %v3433_v29  ;;  %v3436_v44 = vld [vmem:[#allocation14 + $0x78] sm:$0xff] }
 0x980   :  { %v3076_v62 = vmul.f32 %v5557_v54, %v6993_v1 }
 0x981   :  { %v5559_v1 = vpop.eup %5558 }
 0x982   :  { %v3151_v4 = vpop.f32.mrb[14].mxu0  ;;  %v3222_v9 = vpop.f32.mrb[14].mxu1  ;;  %v7105_v14 = vadd.f32 %v3077_v48, %v3076_v62  ;;  %v5257_v48 = vpack.c.bf16 %v3436_v44, %v3435_v40 }
 0x983   :  { %v5273_v18 = vadd.f32 %v3151_v4, %v7463_v51  ;;  %v3153_v22 = vpop.f32.mrb[15].mxu0  ;;  %v3224_v28 = vpop.f32.mrb[15].mxu1  ;;  %v5289_v57 = vadd.f32 %v3222_v9, %v7762_v55 }
 0x984   :  { %v5274_v33 = vadd.f32 %v3153_v22, %v7403_v49  ;;  %5560 = vtanh.f32 %v7105_v14  ;;  %v5290_v59 = vadd.f32 %v3224_v28, %v6299_v25 }
 0x985   :  { %v3576_v39 = vmul.f32 -1.442695, %v5273_v18  ;;  %v3578_v17 = vmul.f32 -1.442695, %v5289_v57 }
 0x986   :  { %v3577_v46 = vmul.f32 -1.442695, %v5274_v33 }
 0x987   :  { %5562 = vpow2.f32 %v3576_v39 }
 0x988   :  { %5564 = vpow2.f32 %v3577_v46 }
 0x989   :  { %5566 = vtanh.f32 %v5290_v59 }
 0x98a   :  { %5568 = vpow2.f32 %v3578_v17 }
 0x98e   :  { %v5561_v5 = vpop.eup %5560 }
 0x98f   :  { %v3080_v20 = vmul.f32 %v5561_v5, %v5559_v1 }
 0x991   :  { %v5563_v51 = vpop.eup %5562  ;;  %3319 = vmatprep.mubr.f32.mxu0 %v3080_v20  ;;  %3390 = vmatprep.mubr.f32.mxu1 %v3080_v20 }
 0x992   :  { %v3240_v21 = vadd.f32 1.0, %v5563_v51  ;;  %v5565_v49 = vpop.eup %5564 }
 0x993   :  { %v3241_v41 = vadd.f32 1.0, %v5565_v49  ;;  %v5567_v15 = vpop.eup %5566 }
 0x994   :  { %5570 = vrcp.f32 %v3240_v21  ;;  %v5569_v0 = vpop.eup %5568 }
 0x995   :  { %5572 = vrcp.f32 %v3241_v41  ;;  %v3242_v27 = vadd.f32 1.0, %v5569_v0  ;;  %v3582_v41 = vld [vmem:[%s7143_s9] ss:$0 sm:$0xff] }
 0x997   :  { %5574 = vrcp.f32 %v3242_v27 }
 0x99e   :  { %v5571_v24 = vpop.eup %5570 }
 0x99f   :  { %v3251_v30 = vmul.f32 %v5571_v24, %v5567_v15  ;;  %v5573_v2 = vpop.eup %5572 }
 0x9a0   :  { %v3250_v25 = vmul.f32 %v5573_v2, %v7001_v61  ;;  %v3425_v61 = vld [vmem:[#allocation14 + $0x20] sm:$0xff] }
 0x9a1   :  { %v5575_v8 = vpop.eup %5574  ;;  %v5242_v56 = vpack.c.bf16 %v3426_v53, %v3425_v61 }
 0x9a2   :  { %v3252_v12 = vadd.f32 %v3251_v30, %v3250_v25 }
 0x9a4   :  { %5576 = vtanh.f32 %v3252_v12 }
 0x9ae   :  { %v5577_v52 = vpop.eup %5576 }
 0x9af   :  { %v3254_v11 = vmul.f32 %v5577_v52, %v5575_v8 }
 0x9b1   :  { %3320 = vmatmul.mubr.f32.vlgmr.msra.gmra.mrb[30].mxu0 %v3254_v11  ;;  %3391 = vmatmul.mubr.f32.vlgmr.msra.gmra.mrb[30].mxu1 %v3254_v11 }
 0x9b2   :  { %5237 = vmatpush3.bf16.msra.mxu0 %v5236_v43  ;;  %3632 = vmatprep.mubr.msk.f32.mxu0 %vm5793_vm0, %v7342_v35 }
 0x9b3   :  { %5238 = vmatprep.subr.bf16.mxu0 %v5792_v38 }
 0x9b6   :  { %5240 = vmatpush3.bf16.msra.mxu0 %v5239_v47 }
 0x9b7   :  { %5241 = vmatprep.subr.bf16.mxu0 %v5792_v38 }
 0x9ba   :  { %5243 = vmatpush3.bf16.msra.mxu0 %v5242_v56 }
 0x9bb   :  { %5244 = vmatprep.subr.bf16.mxu0 %v5792_v38 }
 0x9be   :  { %5246 = vmatpush3.bf16.msra.mxu0 %v5245_v3 }
 0x9bf   :  { %5247 = vmatprep.subr.bf16.mxu0 %v5792_v38 }
 0x9c2   :  { %5249 = vmatpush3.bf16.msra.mxu0 %v5248_v16 }
 0x9c3   :  { %5250 = vmatprep.subr.bf16.mxu0 %v5792_v38 }
 0x9c6   :  { %5252 = vmatpush3.bf16.msra.mxu0 %v5251_v26 }
 0x9c7   :  { %5253 = vmatprep.subr.bf16.mxu0 %v5792_v38 }
 0x9ca   :  { %5255 = vmatpush3.bf16.msra.mxu0 %v5254_v36 }
 0x9cb   :  { %5256 = vmatprep.subr.bf16.mxu0 %v5792_v38 }
 0x9ce   :  { %5258 = vmatpush3.bf16.msra.mxu0 %v5257_v48 }
 0xa84   :  { %v3321_v54 = vpop.f32.mrb[30].mxu0  ;;  %v3392_v58 = vpop.f32.mrb[30].mxu1 }
 0xa85   :  { %v3322_v62 = vadd.f32 %v3321_v54, %v7760_v50  ;;  %v3323_v4 = vpop.f32.mrb[31].mxu0  ;;  %v3394_v9 = vpop.f32.mrb[31].mxu1  ;;  %v3393_v35 = vadd.f32 %v3392_v58, %v7761_v10 }
 0xa86   :  { %v3324_v18 = vadd.f32 %v3323_v4, %v7460_v42  ;;  %v3395_v33 = vadd.f32 %v3394_v9, %v7523_v7 }
 0xa87   :  { %v3579_v22 = vmul.f32 -1.442695, %v3322_v62  ;;  %v3581_v39 = vmul.f32 -1.442695, %v3393_v35 }
 0xa88   :  { %v3580_v28 = vmul.f32 -1.442695, %v3324_v18 }
 0xa89   :  { %5578 = vpow2.f32 %v3579_v22 }
 0xa8a   :  { %5580 = vpow2.f32 %v3580_v28 }
 0xa8b   :  { %5582 = vtanh.f32 %v3395_v33 }
 0xa8c   :  { %5584 = vpow2.f32 %v3581_v39 }
 0xa93   :  { %v5579_v46 = vpop.eup %5578 }
 0xa94   :  { %v3406_v55 = vadd.f32 1.0, %v5579_v46  ;;  %v5581_v57 = vpop.eup %5580 }
 0xa95   :  { %v3407_v50 = vadd.f32 1.0, %v5581_v57  ;;  %v5583_v1 = vpop.eup %5582 }
 0xa96   :  { %5586 = vrcp.f32 %v3406_v55  ;;  %v5585_v59 = vpop.eup %5584 }
 0xa97   :  { %5588 = vrcp.f32 %v3407_v50  ;;  %v3408_v20 = vadd.f32 1.0, %v5585_v59 }
 0xa99   :  { %5590 = vrcp.f32 %v3408_v20 }
 0xaa0   :  { %v5587_v42 = vpop.eup %5586 }
 0xaa1   :  { %v3417_v5 = vmul.f32 %v5587_v42, %v5583_v1  ;;  %v5589_v17 = vpop.eup %5588 }
 0xaa2   :  { %v3416_v51 = vmul.f32 %v5589_v17, %v7105_v14 }
 0xaa3   :  { %v5591_v7 = vpop.eup %5590 }
 0xaa4   :  { %v3418_v10 = vadd.f32 %v3417_v5, %v3416_v51 }
 0xaa6   :  { %5592 = vtanh.f32 %v3418_v10 }
 0xab0   :  { %v5593_v21 = vpop.eup %5592 }
 0xab1   :  { %v3420_v49 = vmul.f32 %v5593_v21, %v5591_v7 }
 0xab3   :  { %3633 = vmatmul.mubr.f32.vlgmr.msra.gmra.mrb[32].mxu0 %v3420_v49 }
 0xb86   :  { %v3510_v15 = vpop.f32.mrb[32].mxu0 }
 0xb87   :  { %v3511_v0 = vadd.f32 %v3582_v41, %v3510_v15  ;;  %v3634_v24 = vpop.f32.mrb[33].mxu0 }
 0xb89   :  { %3514 = vst [vmem:[#allocation15] sm:$0xff] %v3511_v0 }
 0xb8a   :  { %5759 = shalt.err (!%p5756_p4)
}
 0xb8b   :  { %s5760_s26 = scalar_lea.hbm %s7144_s10, 128 }
 0xb8c   :  { %p5761_p5 = scmp.ne.s32.totalorder %s7144_s10, %s5760_s26  ;;  %p5764_p6 = scmp.lt.u32.totalorder %s5760_s26, %s7144_s10 }
 0xb8e   :  { %p5766_p7 = pnand %p5764_p6, %p5761_p5 }
 0xb90   :  { %5769 = shalt.err (!%p5766_p7)
}
 0xb91   :  { %3524 = dma.vmem_to_hbm [thread:$0]  %s3522_s22, 128, %s7144_s10, [#allocation5]  }
 0xb92   :  { %5778 = dma.done.wait [#allocation5], 128  }
 0xb93   :  { %5779 = vsyncadd [#allocation5], 4294967168 }
 0xb94   :  { %3528 = vsyncpa [#allocation4], 1 }
 0xb95   :  { %3529 = vsyncpa [#allocation7], 1 }
 0xb96   :  { %3530 = vsyncpa [#allocation10], 1 }
 0xb97   :  { %3531 = vsyncpa [#allocation13], 1 }
 0xb98   :  { %3532 = vsyncpa [#allocation5], 1 }

</bundles_post_ra>
